<compile_context>
chip_gen: v7x
topology: tpu7x:2x2x1
jax: 0.10.0
libtpu: 0.0.40
codegen_flags: <defaults>
</compile_context>

<pallas_src>
import numpy as np
import jax
import jax.numpy as jnp
from jax import lax
from jax.experimental import pallas as pl
from jax.experimental.pallas import tpu as pltpu


# ------------------------- host-side weight folding -------------------------

def _fold_bn(gamma, beta, mean, var, eps=1e-5):
    scale = gamma / jnp.sqrt(var + eps)
    bias = beta - mean * scale
    return scale, bias


def _row_pair_offsets(stride):
    rpg = 2 // stride  # output rows produced per input row-pair
    js = sorted({(q * stride + dh - 1) // 2 for q in range(rpg) for dh in range(3)})
    return js, rpg


def _toeplitz3x3_pair(w_oihw, wi, stride, dtype):
    """3x3 conv (pad=1, stride in {1,2}) on row-paired packed input as matmuls.

    Returns (js, [W_j]) such that
        out_pairs = sum_j  padded_in_pairs[j+1 : j+1+G]  @  W_j
    with W_j of shape (2*wi*Ci, rpg*wo*Co).  Column stride, zero-padding columns
    and dropped taps are encoded in the (block-Toeplitz) structure of W_j; row
    padding is the two zero pair-rows of the in-kernel scratch.
    """
    co, ci = w_oihw.shape[0], w_oihw.shape[1]
    wo = (wi - 1) // stride + 1
    js, rpg = _row_pair_offsets(stride)
    p = np.arange(2)[:, None, None, None, None, None]
    iw = np.arange(wi)[None, :, None, None, None, None]
    q = np.arange(rpg)[None, None, :, None, None, None]
    ow = np.arange(wo)[None, None, None, :, None, None]
    dh = np.arange(3)[None, None, None, None, :, None]
    dw = np.arange(3)[None, None, None, None, None, :]
    w_t = jnp.transpose(w_oihw, (2, 3, 1, 0))  # (dh, dw, ci, co)
    mats = []
    for j in js:
        sel = ((q * stride + dh - 1) == (2 * j + p)) & (iw == (ow * stride + dw - 1))
        m = jnp.einsum("piqoab,abce->picqoe", jnp.asarray(sel, w_t.dtype), w_t)
        mats.append(m.reshape(2 * wi * ci, rpg * wo * co).astype(dtype))
    return js, mats


def _toeplitz1x1_pair(w_oi, wi, stride, dtype):
    """1x1 conv (pad=0, stride) on the row-paired packed input as one matmul."""
    co, ci = w_oi.shape
    wo = (wi - 1) // stride + 1
    rpg = 2 // stride
    p = np.arange(2)[:, None, None, None]
    iw = np.arange(wi)[None, :, None, None]
    q = np.arange(rpg)[None, None, :, None]
    ow = np.arange(wo)[None, None, None, :]
    sel = (p == q * stride) & (iw == ow * stride)  # (2, wi, rpg, wo)
    m = jnp.einsum("piqo,ce->picqoe", jnp.asarray(sel, w_oi.dtype), w_oi.T)
    return m.reshape(2 * wi * ci, rpg * wo * co).astype(dtype)


# ------------------------------- Pallas kernel -------------------------------

def _make_encoder_kernel(g, w_in, w_mid, js1, js2, shortcut, precision):
    """Fused EncoderBlock kernel, one image (g row pairs) per grid step."""

    def kernel(*refs):
        if shortcut:
            (x_ref, w1_ref, b1_ref, a1_ref, w2_ref, b2_ref, a2_ref,
             wsc_ref, bsc_ref, o_ref, xpp_ref, hpp_ref) = refs
        else:
            (x_ref, w1_ref, b1_ref, a1_ref, w2_ref, b2_ref, a2_ref,
             o_ref, xpp_ref, hpp_ref) = refs

        cdt = xpp_ref.dtype
        xv = x_ref[0]  # (g, w_in) row-paired packed input

        # Stage the paired input with one zero padding pair-row above/below.
        # Only borders + interior are written (no full zero fill); borders are
        # rewritten every step => safe under "parallel" megacore sharding.
        xpp_ref[0:1, :] = jnp.zeros((1, w_in), cdt)
        xpp_ref[g + 1:g + 2, :] = jnp.zeros((1, w_in), cdt)
        xpp_ref[1:g + 1, :] = xv

        def conv(src_ref, center_val, w_ref, js):
            acc = None
            for t, j in enumerate(js):
                lhs = center_val if j == 0 else src_ref[j + 1:j + 1 + g, :]
                d = jnp.dot(lhs, w_ref[t], precision=precision,
                            preferred_element_type=jnp.float32)
                acc = d if acc is None else acc + d
            return acc

        # conv1 (3x3, stride 1, pad 1) + folded BN1 + PReLU1
        h = conv(xpp_ref, xv, w1_ref, js1) + b1_ref[...]
        h = jnp.where(h >= 0, h, a1_ref[...] * h)
        h = h.astype(cdt)

        # Stage h (paired, padded) in VMEM; it never touches HBM.
        hpp_ref[0:1, :] = jnp.zeros((1, w_mid), cdt)
        if max(js2) >= 1:
            hpp_ref[g + 1:g + 2, :] = jnp.zeros((1, w_mid), cdt)
        hpp_ref[1:g + 1, :] = h

        # conv2 (3x3, stride, pad 1) + folded BN2 + PReLU2
        y = conv(hpp_ref, h, w2_ref, js2) + b2_ref[...]
        y = jnp.where(y >= 0, y, a2_ref[...] * y)

        if shortcut:
            # 1x1/stride shortcut conv + folded BN, fused (no extra launch).
            y = y + (jnp.dot(xv, wsc_ref[...], precision=precision,
                             preferred_element_type=jnp.float32) + bsc_ref[...])

        o_ref[0] = y.astype(o_ref.dtype)

    return kernel


# --------------------------------- wrapper ----------------------------------

def encoder_block_forward(x_nhwc, params, stride, shortcut=True,
                          compute_dtype=jnp.float32):
    n, hi, wi, cin = x_nhwc.shape
    cout = params["w1"].shape[0]
    assert hi % 2 == 0 and stride in (1, 2), (hi, stride)
    g = hi // 2                     # row pairs per image
    rpg = 2 // stride               # output rows per pair
    ho = (hi - 1) // stride + 1
    wo = (wi - 1) // stride + 1
    w_in = 2 * wi * cin             # packed input lane width   (128 here)
    w_mid = 2 * wi * cout           # packed h lane width       (256 here)
    w_out = rpg * wo * cout         # packed output lane width  (64 here)

    precision = (lax.Precision.HIGHEST
                 if compute_dtype == jnp.float32 else None)

    # Fold eval-mode BN into conv weights; build block-Toeplitz matmul weights.
    s1, b1 = _fold_bn(*params["bn1"])
    s2, b2 = _fold_bn(*params["bn2"])
    js1, w1m = _toeplitz3x3_pair(params["w1"] * s1[:, None, None, None],
                                 wi, 1, compute_dtype)
    js2, w2m = _toeplitz3x3_pair(params["w2"] * s2[:, None, None, None],
                                 wi, stride, compute_dtype)
    w1_stack = jnp.stack(w1m)       # (3, w_in, w_mid)
    w2_stack = jnp.stack(w2m)       # (len(js2), w_mid, w_out)

    b1t = jnp.tile(b1, 2 * wi).reshape(1, w_mid).astype(jnp.float32)
    a1t = jnp.tile(params["alpha1"], 2 * wi).reshape(1, w_mid).astype(jnp.float32)
    b2t = jnp.tile(b2, rpg * wo).reshape(1, w_out).astype(jnp.float32)
    a2t = jnp.tile(params["alpha2"], rpg * wo).reshape(1, w_out).astype(jnp.float32)

    # Free, contiguous host reshape: (N,H,W,Cin) -> (N, H/2, 2*W*Cin) row pairs.
    x_pk = x_nhwc.reshape(n, g, w_in).astype(compute_dtype)

    args = [x_pk, w1_stack, b1t, a1t, w2_stack, b2t, a2t]
    in_specs = [
        pl.BlockSpec((1, g, w_in), lambda i: (i, 0, 0)),
        pl.BlockSpec(tuple(w1_stack.shape), lambda i: (0, 0, 0)),
        pl.BlockSpec((1, w_mid), lambda i: (0, 0)),
        pl.BlockSpec((1, w_mid), lambda i: (0, 0)),
        pl.BlockSpec(tuple(w2_stack.shape), lambda i: (0, 0, 0)),
        pl.BlockSpec((1, w_out), lambda i: (0, 0)),
        pl.BlockSpec((1, w_out), lambda i: (0, 0)),
    ]
    if shortcut:
        ssc, bsc = _fold_bn(*params["bn_sc"])
        wsc = _toeplitz1x1_pair(params["w_sc"].reshape(cout, cin) * ssc[:, None],
                                wi, stride, compute_dtype)
        bsct = jnp.tile(bsc, rpg * wo).reshape(1, w_out).astype(jnp.float32)
        args += [wsc, bsct]
        in_specs += [pl.BlockSpec((w_in, w_out), lambda i: (0, 0)),
                     pl.BlockSpec((1, w_out), lambda i: (0, 0))]

    kernel = _make_encoder_kernel(g, w_in, w_mid, tuple(js1), tuple(js2),
                                  shortcut, precision)

    out = pl.pallas_call(
        kernel,
        out_shape=jax.ShapeDtypeStruct((n, g, w_out), x_nhwc.dtype),
        grid=(n,),
        in_specs=in_specs,
        out_specs=pl.BlockSpec((1, g, w_out), lambda i: (i, 0, 0)),
        scratch_shapes=[pltpu.VMEM((g + 2, w_in), compute_dtype),
                        pltpu.VMEM((g + 2, w_mid), compute_dtype)],
        compiler_params=pltpu.CompilerParams(
            dimension_semantics=("parallel",)),
    )(*args)

    # (N, G, rpg*Wo*Cout) -> NHWC; host-side layout plumbing only.
    return out.reshape(n, g, rpg, wo, cout).reshape(n, ho, wo, cout)


# ------------------------------ JAX reference --------------------------------

def _ref_conv(x_nhwc, w_oihw, stride, pad):
    w_hwio = jnp.transpose(w_oihw, (2, 3, 1, 0))
    return lax.conv_general_dilated(
        x_nhwc, w_hwio, (stride, stride), [(pad, pad), (pad, pad)],
        dimension_numbers=("NHWC", "HWIO", "NHWC"),
        precision=lax.Precision.HIGHEST)


def _ref_bn(x, gamma, beta, mean, var, eps=1e-5):
    return (x - mean) / jnp.sqrt(var + eps) * gamma + beta


def _ref_prelu(x, alpha):
    return jnp.where(x >= 0, x, alpha * x)


def encoder_block_reference(x_nhwc, params, stride, shortcut=True):
    if shortcut:
        sc = _ref_bn(_ref_conv(x_nhwc, params["w_sc"], stride, 0), *params["bn_sc"])
    h = _ref_prelu(_ref_bn(_ref_conv(x_nhwc, params["w1"], 1, 1), *params["bn1"]),
                   params["alpha1"])
    out = _ref_prelu(_ref_bn(_ref_conv(h, params["w2"], stride, 1), *params["bn2"]),
                     params["alpha2"])
    if shortcut:
        out = out + sc
    return out


# ----------------------------------- main ------------------------------------

def _init_bn(key, c):
    k1, k2, k3, k4 = jax.random.split(key, 4)
    gamma = jax.random.uniform(k1, (c,), jnp.float32, 0.5, 1.5)
    beta = 0.1 * jax.random.normal(k2, (c,), jnp.float32)
    mean = 0.1 * jax.random.normal(k3, (c,), jnp.float32)
    var = jax.random.uniform(k4, (c,), jnp.float32, 0.5, 1.5)
    return (gamma, beta, mean, var)


if __name__ == "__main__":
    key = jax.random.PRNGKey(0)
    n, cin, h, w = 2, 4, 16, 16
    cout, stride = 8, 2

    keys = jax.random.split(key, 7)
    params = {
        "w_sc": 0.2 * jax.random.normal(keys[0], (cout, cin, 1, 1), jnp.float32),
        "bn_sc": _init_bn(keys[1], cout),
        "w1": 0.2 * jax.random.normal(keys[2], (cout, cin, 3, 3), jnp.float32),
        "bn1": _init_bn(keys[3], cout),
        "alpha1": jnp.full((cout,), 0.25, jnp.float32),   # PyTorch PReLU default
        "w2": 0.2 * jax.random.normal(keys[4], (cout, cout, 3, 3), jnp.float32),
        "bn2": _init_bn(keys[5], cout),
        "alpha2": jnp.full((cout,), 0.25, jnp.float32),
    }

    # Input constructed NCHW (PyTorch convention), transposed once to NHWC.
    x_nchw = jax.random.normal(keys[6], (n, cin, h, w), jnp.float32)
    x_nhwc = jnp.transpose(x_nchw, (0, 2, 3, 1))

    ref = encoder_block_reference(x_nhwc, params, stride, shortcut=True)

    # f32 matmul inputs.  Tolerance covers MXU accumulation / BN-folding
    # rounding and any matmul-precision policy differences.
    fwd_f32 = jax.jit(lambda x, p: encoder_block_forward(
        x, p, stride, shortcut=True, compute_dtype=jnp.float32))
    out = jax.block_until_ready(fwd_f32(x_nhwc, params))
    assert out.shape == (n, h // stride, w // stride, cout), out.shape
    err_f32 = float(jnp.max(jnp.abs(out - ref)))
    assert jnp.allclose(out, ref, atol=2e-2, rtol=2e-2), err_f32

    # bf16 matmul inputs / bf16 h scratch (v6e/v7x default per review), f32
    # accumulation and f32 epilogues -> looser bound.
    fwd_bf16 = jax.jit(lambda x, p: encoder_block_forward(
        x, p, stride, shortcut=True, compute_dtype=jnp.bfloat16))
    out_bf16 = jax.block_until_ready(fwd_bf16(x_nhwc, params))
    err_bf16 = float(jnp.max(jnp.abs(out_bf16 - ref)))
    assert err_bf16 < 0.15, err_bf16

    print("KERNEL_OK")
</pallas_src>

<mosaic_0001>
module attributes {stable_mosaic.version = 11 : i64} {
  func.func @kernel(%arg0: i32, %arg1: memref<1x8x128xf32, #tpu.memory_space<vmem>>, %arg2: memref<3x128x256xf32, #tpu.memory_space<vmem>>, %arg3: memref<1x256xf32, #tpu.memory_space<vmem>>, %arg4: memref<1x256xf32, #tpu.memory_space<vmem>>, %arg5: memref<2x256x64xf32, #tpu.memory_space<vmem>>, %arg6: memref<1x64xf32, #tpu.memory_space<vmem>>, %arg7: memref<1x64xf32, #tpu.memory_space<vmem>>, %arg8: memref<128x64xf32, #tpu.memory_space<vmem>>, %arg9: memref<1x64xf32, #tpu.memory_space<vmem>>, %arg10: memref<1x8x64xf32, #tpu.memory_space<vmem>>, %arg11: memref<10x128xf32, #tpu.memory_space<vmem>>, %arg12: memref<10x256xf32, #tpu.memory_space<vmem>>) attributes {dimension_semantics = [#tpu.dimension_semantics<parallel>], iteration_bounds = array<i64: 2>, scalar_prefetch = 0 : i64, scratch_operands = 2 : i64, tpu.core_type = #tpu.core_type<tc>, window_params = [{transform_indices = @transform_0, window_bounds = array<i64: 1, 8, 128>}, {pipeline_mode = #tpu.pipeline_mode<synchronous>, transform_indices = @transform_1, window_bounds = array<i64: 3, 128, 256>}, {pipeline_mode = #tpu.pipeline_mode<synchronous>, transform_indices = @transform_2, window_bounds = array<i64: 1, 256>}, {pipeline_mode = #tpu.pipeline_mode<synchronous>, transform_indices = @transform_3, window_bounds = array<i64: 1, 256>}, {pipeline_mode = #tpu.pipeline_mode<synchronous>, transform_indices = @transform_4, window_bounds = array<i64: 2, 256, 64>}, {pipeline_mode = #tpu.pipeline_mode<synchronous>, transform_indices = @transform_5, window_bounds = array<i64: 1, 64>}, {pipeline_mode = #tpu.pipeline_mode<synchronous>, transform_indices = @transform_6, window_bounds = array<i64: 1, 64>}, {pipeline_mode = #tpu.pipeline_mode<synchronous>, transform_indices = @transform_7, window_bounds = array<i64: 128, 64>}, {pipeline_mode = #tpu.pipeline_mode<synchronous>, transform_indices = @transform_8, window_bounds = array<i64: 1, 64>}, {transform_indices = @transform_9, window_bounds = array<i64: 1, 8, 64>}]} {
    %c0 = arith.constant 0 : index
    %c0_0 = arith.constant 0 : index
    %c0_1 = arith.constant 0 : index
    %0 = vector.load %arg1[%c0, %c0_0, %c0_1] : memref<1x8x128xf32, #tpu.memory_space<vmem>>, vector<1x8x128xf32>
    %1 = vector.shape_cast %0 : vector<1x8x128xf32> to vector<8x128xf32>
    %cst = arith.constant 0.000000e+00 : f32
    %2 = vector.broadcast %cst : f32 to vector<1x128xf32>
    %c0_2 = arith.constant 0 : index
    %c0_3 = arith.constant 0 : index
    %3 = vector.load %arg11[%c0_2, %c0_3] : memref<10x128xf32, #tpu.memory_space<vmem>>, vector<1x128xf32>
    tpu.vector_store %arg11[%c0_2, %c0_3], %2 {strides = array<i32>} : memref<10x128xf32, #tpu.memory_space<vmem>>, vector<1x128xf32>,
    %cst_4 = arith.constant 0.000000e+00 : f32
    %4 = vector.broadcast %cst_4 : f32 to vector<1x128xf32>
    %c9 = arith.constant 9 : index
    %c0_5 = arith.constant 0 : index
    %5 = vector.load %arg11[%c9, %c0_5] : memref<10x128xf32, #tpu.memory_space<vmem>>, vector<1x128xf32>
    tpu.vector_store %arg11[%c9, %c0_5], %4 {strides = array<i32>} : memref<10x128xf32, #tpu.memory_space<vmem>>, vector<1x128xf32>,
    %c1 = arith.constant 1 : index
    %c0_6 = arith.constant 0 : index
    %6 = vector.load %arg11[%c1, %c0_6] : memref<10x128xf32, #tpu.memory_space<vmem>>, vector<8x128xf32>
    tpu.vector_store %arg11[%c1, %c0_6], %1 {strides = array<i32>} : memref<10x128xf32, #tpu.memory_space<vmem>>, vector<8x128xf32>,
    %c0_7 = arith.constant 0 : index
    %c0_8 = arith.constant 0 : index
    %7 = vector.load %arg11[%c0_7, %c0_8] : memref<10x128xf32, #tpu.memory_space<vmem>>, vector<8x128xf32>
    %c0_9 = arith.constant 0 : index
    %c0_10 = arith.constant 0 : index
    %c0_11 = arith.constant 0 : index
    %8 = vector.load %arg2[%c0_9, %c0_10, %c0_11] : memref<3x128x256xf32, #tpu.memory_space<vmem>>, vector<1x128x256xf32>
    %9 = vector.shape_cast %8 : vector<1x128x256xf32> to vector<128x256xf32>
    %cst_12 = arith.constant dense<0.000000e+00> : vector<8x256xf32>
    %10 = tpu.matmul %7, %9, %cst_12 {dimension_numbers = #tpu.dot_dimension_numbers<[1], [0], [0], [1], [0, 0, 1, 1], [], []>, precision = #tpu.contract_precision<fp32>} : vector<8x128xf32>, vector<128x256xf32>, vector<8x256xf32> -> vector<8x256xf32>
    %c1_13 = arith.constant 1 : index
    %c0_14 = arith.constant 0 : index
    %c0_15 = arith.constant 0 : index
    %11 = vector.load %arg2[%c1_13, %c0_14, %c0_15] : memref<3x128x256xf32, #tpu.memory_space<vmem>>, vector<1x128x256xf32>
    %12 = vector.shape_cast %11 : vector<1x128x256xf32> to vector<128x256xf32>
    %cst_16 = arith.constant dense<0.000000e+00> : vector<8x256xf32>
    %13 = tpu.matmul %1, %12, %cst_16 {dimension_numbers = #tpu.dot_dimension_numbers<[1], [0], [0], [1], [0, 0, 1, 1], [], []>, precision = #tpu.contract_precision<fp32>} : vector<8x128xf32>, vector<128x256xf32>, vector<8x256xf32> -> vector<8x256xf32>
    %14 = arith.addf %10, %13 : vector<8x256xf32>
    %c2 = arith.constant 2 : index
    %c0_17 = arith.constant 0 : index
    %15 = vector.load %arg11[%c2, %c0_17] : memref<10x128xf32, #tpu.memory_space<vmem>>, vector<8x128xf32>
    %c2_18 = arith.constant 2 : index
    %c0_19 = arith.constant 0 : index
    %c0_20 = arith.constant 0 : index
    %16 = vector.load %arg2[%c2_18, %c0_19, %c0_20] : memref<3x128x256xf32, #tpu.memory_space<vmem>>, vector<1x128x256xf32>
    %17 = vector.shape_cast %16 : vector<1x128x256xf32> to vector<128x256xf32>
    %cst_21 = arith.constant dense<0.000000e+00> : vector<8x256xf32>
    %18 = tpu.matmul %15, %17, %cst_21 {dimension_numbers = #tpu.dot_dimension_numbers<[1], [0], [0], [1], [0, 0, 1, 1], [], []>, precision = #tpu.contract_precision<fp32>} : vector<8x128xf32>, vector<128x256xf32>, vector<8x256xf32> -> vector<8x256xf32>
    %19 = arith.addf %14, %18 : vector<8x256xf32>
    %c0_22 = arith.constant 0 : index
    %c0_23 = arith.constant 0 : index
    %20 = vector.load %arg3[%c0_22, %c0_23] : memref<1x256xf32, #tpu.memory_space<vmem>>, vector<1x256xf32>
    %21 = vector.broadcast %20 : vector<1x256xf32> to vector<8x256xf32>
    %22 = arith.addf %19, %21 : vector<8x256xf32>
    %cst_24 = arith.constant 0.000000e+00 : f32
    %23 = vector.broadcast %cst_24 : f32 to vector<8x256xf32>
    %24 = arith.cmpf oge, %22, %23 : vector<8x256xf32>
    %c0_25 = arith.constant 0 : index
    %c0_26 = arith.constant 0 : index
    %25 = vector.load %arg4[%c0_25, %c0_26] : memref<1x256xf32, #tpu.memory_space<vmem>>, vector<1x256xf32>
    %26 = vector.broadcast %25 : vector<1x256xf32> to vector<8x256xf32>
    %27 = arith.mulf %26, %22 : vector<8x256xf32>
    %28 = arith.select %24, %22, %27 : vector<8x256xi1>, vector<8x256xf32>
    %cst_27 = arith.constant 0.000000e+00 : f32
    %29 = vector.broadcast %cst_27 : f32 to vector<1x256xf32>
    %c0_28 = arith.constant 0 : index
    %c0_29 = arith.constant 0 : index
    %30 = vector.load %arg12[%c0_28, %c0_29] : memref<10x256xf32, #tpu.memory_space<vmem>>, vector<1x256xf32>
    tpu.vector_store %arg12[%c0_28, %c0_29], %29 {strides = array<i32>} : memref<10x256xf32, #tpu.memory_space<vmem>>, vector<1x256xf32>,
    %c1_30 = arith.constant 1 : index
    %c0_31 = arith.constant 0 : index
    %31 = vector.load %arg12[%c1_30, %c0_31] : memref<10x256xf32, #tpu.memory_space<vmem>>, vector<8x256xf32>
    tpu.vector_store %arg12[%c1_30, %c0_31], %28 {strides = array<i32>} : memref<10x256xf32, #tpu.memory_space<vmem>>, vector<8x256xf32>,
    %c0_32 = arith.constant 0 : index
    %c0_33 = arith.constant 0 : index
    %32 = vector.load %arg12[%c0_32, %c0_33] : memref<10x256xf32, #tpu.memory_space<vmem>>, vector<8x256xf32>
    %c0_34 = arith.constant 0 : index
    %c0_35 = arith.constant 0 : index
    %c0_36 = arith.constant 0 : index
    %33 = vector.load %arg5[%c0_34, %c0_35, %c0_36] : memref<2x256x64xf32, #tpu.memory_space<vmem>>, vector<1x256x64xf32>
    %34 = vector.shape_cast %33 : vector<1x256x64xf32> to vector<256x64xf32>
    %cst_37 = arith.constant dense<0.000000e+00> : vector<8x64xf32>
    %35 = tpu.matmul %32, %34, %cst_37 {dimension_numbers = #tpu.dot_dimension_numbers<[1], [0], [0], [1], [0, 0, 1, 1], [], []>, precision = #tpu.contract_precision<fp32>} : vector<8x256xf32>, vector<256x64xf32>, vector<8x64xf32> -> vector<8x64xf32>
    %c1_38 = arith.constant 1 : index
    %c0_39 = arith.constant 0 : index
    %c0_40 = arith.constant 0 : index
    %36 = vector.load %arg5[%c1_38, %c0_39, %c0_40] : memref<2x256x64xf32, #tpu.memory_space<vmem>>, vector<1x256x64xf32>
    %37 = vector.shape_cast %36 : vector<1x256x64xf32> to vector<256x64xf32>
    %cst_41 = arith.constant dense<0.000000e+00> : vector<8x64xf32>
    %38 = tpu.matmul %28, %37, %cst_41 {dimension_numbers = #tpu.dot_dimension_numbers<[1], [0], [0], [1], [0, 0, 1, 1], [], []>, precision = #tpu.contract_precision<fp32>} : vector<8x256xf32>, vector<256x64xf32>, vector<8x64xf32> -> vector<8x64xf32>
    %39 = arith.addf %35, %38 : vector<8x64xf32>
    %c0_42 = arith.constant 0 : index
    %c0_43 = arith.constant 0 : index
    %40 = vector.load %arg6[%c0_42, %c0_43] : memref<1x64xf32, #tpu.memory_space<vmem>>, vector<1x64xf32>
    %41 = vector.broadcast %40 : vector<1x64xf32> to vector<8x64xf32>
    %42 = arith.addf %39, %41 : vector<8x64xf32>
    %cst_44 = arith.constant 0.000000e+00 : f32
    %43 = vector.broadcast %cst_44 : f32 to vector<8x64xf32>
    %44 = arith.cmpf oge, %42, %43 : vector<8x64xf32>
    %c0_45 = arith.constant 0 : index
    %c0_46 = arith.constant 0 : index
    %45 = vector.load %arg7[%c0_45, %c0_46] : memref<1x64xf32, #tpu.memory_space<vmem>>, vector<1x64xf32>
    %46 = vector.broadcast %45 : vector<1x64xf32> to vector<8x64xf32>
    %47 = arith.mulf %46, %42 : vector<8x64xf32>
    %48 = arith.select %44, %42, %47 : vector<8x64xi1>, vector<8x64xf32>
    %c0_47 = arith.constant 0 : index
    %c0_48 = arith.constant 0 : index
    %49 = vector.load %arg8[%c0_47, %c0_48] : memref<128x64xf32, #tpu.memory_space<vmem>>, vector<128x64xf32>
    %cst_49 = arith.constant dense<0.000000e+00> : vector<8x64xf32>
    %50 = tpu.matmul %1, %49, %cst_49 {dimension_numbers = #tpu.dot_dimension_numbers<[1], [0], [0], [1], [0, 0, 1, 1], [], []>, precision = #tpu.contract_precision<fp32>} : vector<8x128xf32>, vector<128x64xf32>, vector<8x64xf32> -> vector<8x64xf32>
    %c0_50 = arith.constant 0 : index
    %c0_51 = arith.constant 0 : index
    %51 = vector.load %arg9[%c0_50, %c0_51] : memref<1x64xf32, #tpu.memory_space<vmem>>, vector<1x64xf32>
    %52 = vector.broadcast %51 : vector<1x64xf32> to vector<8x64xf32>
    %53 = arith.addf %50, %52 : vector<8x64xf32>
    %54 = arith.addf %48, %53 : vector<8x64xf32>
    %c0_52 = arith.constant 0 : index
    %c0_53 = arith.constant 0 : index
    %c0_54 = arith.constant 0 : index
    %55 = vector.load %arg10[%c0_52, %c0_53, %c0_54] : memref<1x8x64xf32, #tpu.memory_space<vmem>>, vector<1x8x64xf32>
    %56 = vector.shape_cast %55 : vector<1x8x64xf32> to vector<8x64xf32>
    %57 = vector.shape_cast %54 : vector<8x64xf32> to vector<1x8x64xf32>
    tpu.vector_store %arg10[%c0_52, %c0_53, %c0_54], %57 {strides = array<i32>} : memref<1x8x64xf32, #tpu.memory_space<vmem>>, vector<1x8x64xf32>,
    return
  }
  func.func @transform_0(%arg0: i32) -> (i32, i32, i32) {
    %c0_i32 = arith.constant 0 : i32
    %c0_i32_0 = arith.constant 0 : i32
    %c0_i32_1 = arith.constant 0 : i32
    return %arg0, %c0_i32, %c0_i32_0 : i32, i32, i32
  }
  func.func @transform_1(%arg0: i32) -> (i32, i32, i32) {
    %c0_i32 = arith.constant 0 : i32
    %c0_i32_0 = arith.constant 0 : i32
    %c0_i32_1 = arith.constant 0 : i32
    %c0_i32_2 = arith.constant 0 : i32
    return %c0_i32, %c0_i32_0, %c0_i32_1 : i32, i32, i32
  }
  func.func @transform_2(%arg0: i32) -> (i32, i32) {
    %c0_i32 = arith.constant 0 : i32
    %c0_i32_0 = arith.constant 0 : i32
    %c0_i32_1 = arith.constant 0 : i32
    return %c0_i32, %c0_i32_0 : i32, i32
  }
  func.func @transform_3(%arg0: i32) -> (i32, i32) {
    %c0_i32 = arith.constant 0 : i32
    %c0_i32_0 = arith.constant 0 : i32
    %c0_i32_1 = arith.constant 0 : i32
    return %c0_i32, %c0_i32_0 : i32, i32
  }
  func.func @transform_4(%arg0: i32) -> (i32, i32, i32) {
    %c0_i32 = arith.constant 0 : i32
    %c0_i32_0 = arith.constant 0 : i32
    %c0_i32_1 = arith.constant 0 : i32
    %c0_i32_2 = arith.constant 0 : i32
    return %c0_i32, %c0_i32_0, %c0_i32_1 : i32, i32, i32
  }
  func.func @transform_5(%arg0: i32) -> (i32, i32) {
    %c0_i32 = arith.constant 0 : i32
    %c0_i32_0 = arith.constant 0 : i32
    %c0_i32_1 = arith.constant 0 : i32
    return %c0_i32, %c0_i32_0 : i32, i32
  }
  func.func @transform_6(%arg0: i32) -> (i32, i32) {
    %c0_i32 = arith.constant 0 : i32
    %c0_i32_0 = arith.constant 0 : i32
    %c0_i32_1 = arith.constant 0 : i32
    return %c0_i32, %c0_i32_0 : i32, i32
  }
  func.func @transform_7(%arg0: i32) -> (i32, i32) {
    %c0_i32 = arith.constant 0 : i32
    %c0_i32_0 = arith.constant 0 : i32
    %c0_i32_1 = arith.constant 0 : i32
    return %c0_i32, %c0_i32_0 : i32, i32
  }
  func.func @transform_8(%arg0: i32) -> (i32, i32) {
    %c0_i32 = arith.constant 0 : i32
    %c0_i32_0 = arith.constant 0 : i32
    %c0_i32_1 = arith.constant 0 : i32
    return %c0_i32, %c0_i32_0 : i32, i32
  }
  func.func @transform_9(%arg0: i32) -> (i32, i32, i32) {
    %c0_i32 = arith.constant 0 : i32
    %c0_i32_0 = arith.constant 0 : i32
    %c0_i32_1 = arith.constant 0 : i32
    return %arg0, %c0_i32, %c0_i32_0 : i32, i32, i32
  }
}

</mosaic_0001>

<bundles_post_ra>
// kernel: tile.28
= control target key start
LH: loop header
LB: loop body
LE: loop exit
PB: predicated region body
PF: predicated region fallthrough
CT: control target
= control target key end

     0   :  { %s40_s0 = inlined_call_operand.vmem [shape: f32[8], index: 0, kind: input, shape index: {}]   ;;  %s41_s1 = inlined_call_operand.vmem [shape: f32[32,8], index: 1, kind: output, shape index: {}]  }
   0x1   :  { %v4_v0 = vld [vmem:[%s40_s0] ss:$0 sm:$0xff] }
   0x2   :  { %5 = vst [vmem:[%s41_s1] sm:$0xff] %v4_v0  ;;  %12 = vst [vmem:[%s41_s1 + $0x8] sm:$0xff] %v4_v0 }
   0x3   :  { %13 = vst [vmem:[%s41_s1 + $0x10] sm:$0xff] %v4_v0  ;;  %14 = vst [vmem:[%s41_s1 + $0x18] sm:$0xff] %v4_v0 }

// kernel: tile.29
= control target key start
LH: loop header
LB: loop body
LE: loop exit
PB: predicated region body
PF: predicated region fallthrough
CT: control target
= control target key end

     0   :  { %s7_s6 = smov 3  ;;  %s21_s9 = smov 3  ;;  %vm4_vm0 = vcmask 64512   ;;  %vm11_vm1 = vcmask 1048512   ;;  %vm18_vm2 = vcmask 982912   ;;  %vm25_vm3 = vcmask 917312   ;;  %s232_s0 = inlined_call_operand.vmem [shape: f32[32,8], index: 0, kind: input, shape index: {}]   ;;  %s233_s1 = inlined_call_operand.vmem [shape: f32[1,256], index: 1, kind: output, shape index: {}]  }
   0x1   :  { %v122_v0 = vld [vmem:[%s232_s0 + $0xf] ss:$16 sm:%s7_s6]   ;;  %s153_s10 = smov 120   ;;  %v124_v1 = vld [vmem:[%s232_s0 + $0xd] ss:$16 sm:%s21_s9]   ;;  %s14_s13 = smov 3 }
   0x2   :  { %9 = vrot.lane.b32.xlu0 %v122_v0, %s153_s10  ;;  %s154_s14 = smov 104   ;;  %v123_v2 = vld [vmem:[%s232_s0 + $0xe] ss:$16 sm:%s14_s13]   ;;  %s28_s17 = smov 3  ;;  %vm32_vm4 = vcmask 851712   ;;  %vm39_vm5 = vcmask 786112  }
   0x3   :  { %23 = vrot.lane.b32.xlu1 %v124_v1, %s154_s14  ;;  %v125_v3 = vld [vmem:[%s232_s0 + $0xc] ss:$16 sm:%s28_s17]   ;;  %s35_s20 = smov 3  ;;  %s42_s21 = smov 3  ;;  %vm46_vm6 = vcmask 720512   ;;  %vm53_vm7 = vcmask 654912  }
   0x4   :  { %s155_s22 = smov 112   ;;  %s156_s23 = smov 96   ;;  %v126_v4 = vld [vmem:[%s232_s0 + $0xb] ss:$16 sm:%s35_s20]   ;;  %v127_v5 = vld [vmem:[%s232_s0 + $0xa] ss:$16 sm:%s42_s21]  }
   0x5   :  { %s49_s28 = smov 3  ;;  %s56_s29 = smov 3  ;;  %vm60_vm8 = vcmask 589312   ;;  %vm67_vm9 = vcmask 523712   ;;  %vm74_vm10 = vcmask 458112   ;;  %vm81_vm11 = vcmask 392512  }
   0x6   :  { %16 = vrot.lane.b32.xlu0 %v123_v2, %s155_s22  ;;  %s157_s30 = smov 88   ;;  %s158_s2 = smov 80   ;;  %v128_v6 = vld [vmem:[%s232_s0 + $0x9] ss:$16 sm:%s49_s28]   ;;  %vm88_vm12 = vcmask 326912   ;;  %vm95_vm13 = vcmask 261312  }
   0x7   :  { %30 = vrot.lane.b32.xlu1 %v125_v3, %s156_s23  ;;  %v129_v7 = vld [vmem:[%s232_s0 + $0x8] ss:$16 sm:%s56_s29]   ;;  %s63_s7 = smov 3  ;;  %s70_s8 = smov 3  ;;  %vm102_vm14 = vcmask 195712   ;;  %vm109_vm15 = vcmask 130112  }
   0x8   :  { %s159_s9 = smov 72   ;;  %s160_s10 = smov 64   ;;  %v130_v8 = vld [vmem:[%s232_s0 + $0x7] ss:$16 sm:%s63_s7]   ;;  %v131_v9 = vld [vmem:[%s232_s0 + $0x6] ss:$16 sm:%s70_s8]  }
   0x9   :  { %s2_s13 = smov 3  ;;  %s77_s16 = smov 3 }
   0xa   :  { %37 = vrot.lane.b32.xlu0 %v126_v4, %s157_s30  ;;  %v3_v10 = vld [vmem:[%s232_s0] ss:$16 sm:%s2_s13]   ;;  %s84_s19 = smov 3  ;;  %s161_s20 = smov 56  }
   0xb   :  { %44 = vrot.lane.b32.xlu1 %v127_v5, %s158_s2  ;;  %5 = vst.msk [vmem:[#allocation0] ss:$8 sm:$0x3] %vm4_vm0, %v3_v10   ;;  %s162_s21 = smov 48   ;;  %v132_v11 = vld [vmem:[%s232_s0 + $0x5] ss:$16 sm:%s77_s16]  }
   0xc   :  { %v133_v12 = vld [vmem:[%s232_s0 + $0x4] ss:$16 sm:%s84_s19]   ;;  %s91_s26 = smov 3  ;;  %s98_s27 = smov 3 }
   0xd   :  { %s163_s28 = smov 40   ;;  %s164_s29 = smov 32   ;;  %v134_v13 = vld [vmem:[%s232_s0 + $0x3] ss:$16 sm:%s91_s26]   ;;  %v135_v14 = vld [vmem:[%s232_s0 + $0x2] ss:$16 sm:%s98_s27]  }
   0xe   :  { %51 = vrot.lane.b32.xlu0 %v128_v6, %s159_s9  ;;  %s105_s5 = smov 3  ;;  %s165_s6 = smov 24  }
   0xf   :  { %58 = vrot.lane.b32.xlu1 %v129_v7, %s160_s10  ;;  %s166_s7 = smov 16   ;;  %v136_v15 = vld [vmem:[%s232_s0 + $0x1] ss:$16 sm:%s105_s5]   ;;  %s167_s0 = smov 8  }
  0x12   :  { %65 = vrot.lane.b32.xlu0 %v130_v8, %s161_s20 }
  0x13   :  { %72 = vrot.lane.b32.xlu1 %v131_v9, %s162_s21 }
  0x16   :  { %79 = vrot.lane.b32.xlu0 %v132_v11, %s163_s28 }
  0x17   :  { %86 = vrot.lane.b32.xlu1 %v133_v12, %s164_s29 }
  0x1a   :  { %93 = vrot.lane.b32.xlu0 %v134_v13, %s165_s6 }
  0x1b   :  { %100 = vrot.lane.b32.xlu1 %v135_v14, %s166_s7 }
  0x1e   :  { %107 = vrot.lane.b32.xlu0 %v136_v15, %s167_s0 }
  0x74   :  { %v10_v16 = vpop.permute.xlu0 %9  }
  0x75   :  { %12 = vst.msk [vmem:[#allocation0] ss:$8 sm:$0x3] %vm11_vm1, %v10_v16   ;;  %v24_v17 = vpop.permute.xlu1 %23  }
  0x78   :  { %v17_v18 = vpop.permute.xlu0 %16  }
  0x79   :  { %19 = vst.msk [vmem:[#allocation0] ss:$8 sm:$0x3] %vm18_vm2, %v17_v18   ;;  %v31_v19 = vpop.permute.xlu1 %30  }
  0x7a   :  { %26 = vst.msk [vmem:[#allocation0] ss:$8 sm:$0x3] %vm25_vm3, %v24_v17  }
  0x7b   :  { %33 = vst.msk [vmem:[#allocation0] ss:$8 sm:$0x3] %vm32_vm4, %v31_v19  }
  0x7c   :  { %v38_v20 = vpop.permute.xlu0 %37  }
  0x7d   :  { %40 = vst.msk [vmem:[#allocation0] ss:$8 sm:$0x3] %vm39_vm5, %v38_v20   ;;  %v45_v21 = vpop.permute.xlu1 %44  }
  0x7e   :  { %47 = vst.msk [vmem:[#allocation0] ss:$8 sm:$0x3] %vm46_vm6, %v45_v21  }
  0x80   :  { %v52_v22 = vpop.permute.xlu0 %51  }
  0x81   :  { %54 = vst.msk [vmem:[#allocation0] ss:$8 sm:$0x3] %vm53_vm7, %v52_v22   ;;  %v59_v23 = vpop.permute.xlu1 %58  }
  0x82   :  { %61 = vst.msk [vmem:[#allocation0] ss:$8 sm:$0x3] %vm60_vm8, %v59_v23  }
  0x84   :  { %v66_v24 = vpop.permute.xlu0 %65  }
  0x85   :  { %68 = vst.msk [vmem:[#allocation0] ss:$8 sm:$0x3] %vm67_vm9, %v66_v24   ;;  %v73_v25 = vpop.permute.xlu1 %72  }
  0x86   :  { %75 = vst.msk [vmem:[#allocation0] ss:$8 sm:$0x3] %vm74_vm10, %v73_v25  }
  0x88   :  { %v80_v26 = vpop.permute.xlu0 %79  }
  0x89   :  { %82 = vst.msk [vmem:[#allocation0] ss:$8 sm:$0x3] %vm81_vm11, %v80_v26   ;;  %v87_v27 = vpop.permute.xlu1 %86  }
  0x8a   :  { %89 = vst.msk [vmem:[#allocation0] ss:$8 sm:$0x3] %vm88_vm12, %v87_v27  }
  0x8c   :  { %v94_v28 = vpop.permute.xlu0 %93  }
  0x8d   :  { %96 = vst.msk [vmem:[#allocation0] ss:$8 sm:$0x3] %vm95_vm13, %v94_v28   ;;  %v101_v29 = vpop.permute.xlu1 %100  }
  0x8e   :  { %103 = vst.msk [vmem:[#allocation0] ss:$8 sm:$0x3] %vm102_vm14, %v101_v29  }
  0x90   :  { %v108_v30 = vpop.permute.xlu0 %107  }
  0x91   :  { %110 = vst.msk [vmem:[#allocation0] ss:$8 sm:$0x3] %vm109_vm15, %v108_v30  }
  0x98   :  { %v114_v31 = vld [vmem:[#allocation0] sm:$0x1]  ;;  %v118_v32 = vld [vmem:[#allocation0 + $0x8] sm:$0x1] }
  0x99   :  { %116 = vst [vmem:[%s233_s1] sm:$0x1] %v114_v31  ;;  %137 = vst [vmem:[%s233_s1 + $0x1] sm:$0x1] %v118_v32 }

// kernel: tile.38
= control target key start
LH: loop header
LB: loop body
LE: loop exit
PB: predicated region body
PF: predicated region fallthrough
CT: control target
= control target key end

     0   :  { %s22_s0 = inlined_call_operand.vmem [shape: f32[8], index: 0, kind: input, shape index: {}]   ;;  %s23_s1 = inlined_call_operand.vmem [shape: f32[8,8], index: 1, kind: output, shape index: {}]  }
   0x1   :  { %v4_v0 = vld [vmem:[%s22_s0] ss:$0 sm:$0xff] }
   0x2   :  { %5 = vst [vmem:[%s23_s1] sm:$0xff] %v4_v0 }

// kernel: tile.39
= control target key start
LH: loop header
LB: loop body
LE: loop exit
PB: predicated region body
PF: predicated region fallthrough
CT: control target
= control target key end

     0   :  { %s67_s10 = smov 56   ;;  %s68_s11 = smov 40   ;;  %vm3_vm0 = vcmask 64512   ;;  %vm9_vm1 = vcmask 523712   ;;  %vm15_vm2 = vcmask 458112   ;;  %vm21_vm3 = vcmask 392512   ;;  %s111_s0 = inlined_call_operand.vmem [shape: f32[8,8], index: 0, kind: input, shape index: {}]   ;;  %s112_s1 = inlined_call_operand.vmem [shape: f32[1,64], index: 1, kind: output, shape index: {}]  }
   0x1   :  { %v53_v0 = vld [vmem:[%s111_s0 + $0x7] sm:$0x1]   ;;  %v55_v1 = vld [vmem:[%s111_s0 + $0x5] sm:$0x1]   ;;  %v54_v2 = vld [vmem:[%s111_s0 + $0x6] sm:$0x1]  }
   0x2   :  { %7 = vrot.lane.b32.xlu0 %v53_v0, %s67_s10  ;;  %19 = vrot.lane.b32.xlu1 %v55_v1, %s68_s11  ;;  %v56_v3 = vld [vmem:[%s111_s0 + $0x4] sm:$0x1]   ;;  %v2_v4 = vld [vmem:[%s111_s0] sm:$0x1]   ;;  %s69_s18 = smov 48   ;;  %s70_s19 = smov 32  }
   0x3   :  { %4 = vst.msk [vmem:[#allocation0] sm:$0x1] %vm3_vm0, %v2_v4   ;;  %v57_v5 = vld [vmem:[%s111_s0 + $0x3] sm:$0x1]   ;;  %v58_v6 = vld [vmem:[%s111_s0 + $0x2] sm:$0x1]  }
   0x4   :  { %s71_s24 = smov 24   ;;  %s72_s25 = smov 16   ;;  %v59_v7 = vld [vmem:[%s111_s0 + $0x1] sm:$0x1]   ;;  %vm27_vm4 = vcmask 326912   ;;  %vm33_vm5 = vcmask 261312  }
   0x5   :  { %s73_s0 = smov 8   ;;  %vm39_vm6 = vcmask 195712   ;;  %vm45_vm7 = vcmask 130112  }
   0x6   :  { %13 = vrot.lane.b32.xlu0 %v54_v2, %s69_s18  ;;  %25 = vrot.lane.b32.xlu1 %v56_v3, %s70_s19 }
   0xa   :  { %31 = vrot.lane.b32.xlu0 %v57_v5, %s71_s24  ;;  %37 = vrot.lane.b32.xlu1 %v58_v6, %s72_s25 }
   0xe   :  { %43 = vrot.lane.b32.xlu0 %v59_v7, %s73_s0 }
  0x74   :  { %v8_v8 = vpop.permute.xlu0 %7   ;;  %v20_v9 = vpop.permute.xlu1 %19  }
  0x75   :  { %10 = vst.msk [vmem:[#allocation0] sm:$0x1] %vm9_vm1, %v8_v8  }
  0x78   :  { %v14_v10 = vpop.permute.xlu0 %13   ;;  %v26_v11 = vpop.permute.xlu1 %25  }
  0x79   :  { %16 = vst.msk [vmem:[#allocation0] sm:$0x1] %vm15_vm2, %v14_v10  }
  0x7a   :  { %22 = vst.msk [vmem:[#allocation0] sm:$0x1] %vm21_vm3, %v20_v9  }
  0x7b   :  { %28 = vst.msk [vmem:[#allocation0] sm:$0x1] %vm27_vm4, %v26_v11  }
  0x7c   :  { %v32_v12 = vpop.permute.xlu0 %31   ;;  %v38_v13 = vpop.permute.xlu1 %37  }
  0x7d   :  { %34 = vst.msk [vmem:[#allocation0] sm:$0x1] %vm33_vm5, %v32_v12  }
  0x7e   :  { %40 = vst.msk [vmem:[#allocation0] sm:$0x1] %vm39_vm6, %v38_v13  }
  0x80   :  { %v44_v14 = vpop.permute.xlu0 %43  }
  0x81   :  { %46 = vst.msk [vmem:[#allocation0] sm:$0x1] %vm45_vm7, %v44_v14  }
  0x88   :  { %v50_v15 = vld [vmem:[#allocation0] sm:$0x1] }
  0x89   :  { %52 = vst [vmem:[%s112_s1] sm:$0x1] %v50_v15 }

// kernel: _lambda_.1
= control target key start
LH: loop header
LB: loop body
LE: loop exit
PB: predicated region body
PF: predicated region fallthrough
CT: control target
= control target key end

     0   :  { %s7626_s30 = smov 0   ;;  %s10719_s0 = inlined_call_operand.vmem [shape: f32[2,8,128], index: 0, kind: input, shape index: {}]   ;;  %s10720_s1 = inlined_call_operand.vmem [shape: f32[3,128,256], index: 1, kind: input, shape index: {}]   ;;  %s10721_s2 = inlined_call_operand.vmem [shape: f32[1,256], index: 2, kind: input, shape index: {}]   ;;  %s10722_s3 = inlined_call_operand.vmem [shape: f32[1,256], index: 3, kind: input, shape index: {}]   ;;  %s10723_s4 = inlined_call_operand.vmem [shape: f32[2,256,64], index: 4, kind: input, shape index: {}]   ;;  %s10724_s5 = inlined_call_operand.vmem [shape: f32[1,64], index: 5, kind: input, shape index: {}]   ;;  %s10725_s6 = inlined_call_operand.vmem [shape: f32[1,64], index: 6, kind: input, shape index: {}]   ;;  %s10726_s7 = inlined_call_operand.vmem [shape: f32[128,64], index: 7, kind: input, shape index: {}]   ;;  %s10727_s8 = inlined_call_operand.vmem [shape: f32[1,64], index: 8, kind: input, shape index: {}]   ;;  %s10728_s9 = inlined_call_operand.vmem [shape: f32[2,8,64], index: 9, kind: output, shape index: {}]  }
   0x1 LB: > { %s5576_s10 = sadd.s32 4294967295, %s7571_s30   ;;  %p5580_p0 = scmp.ge.s32.totalorder %s7571_s30, 1  ;;  %s7571_s30 = sphi %s7626_s30, %s19_s30  }
   0x2   : > { %p286_p1 = scmp.lt.s32.totalorder %s7571_s30, 3 }
   0x4   : > { %p287_p2 = pnand %p5580_p0, %p286_p1 }
   0x6   : > { %290 = sbr.rel (%p287_p2) target bundleno = 1584 (0x630), region = 56 }
   0xd   : > { %v5584_v0 = vld [vmem:[%s10720_s1 + $0x108] sm:$0xff]  ;;  %v5586_v1 = vld [vmem:[%s10720_s1 + $0x118] sm:$0xff]  ;;  %v5583_v2 = vld [vmem:[%s10720_s1 + $0x100] sm:$0xff]  ;;  %p7643_p3 = scmp.lt.s32.totalorder %s5576_s10, 1  ;;  %v10731_v9 = vmov 0.0   ;;  %vm7575_vm3 = vmmov 0  }
   0xe   : > { %v398_v3 = vand.u32 4294901760, %v5584_v0  ;;  %v402_v4 = vand.u32 4294901760, %v5586_v1  ;;  %v5585_v5 = vld [vmem:[%s10720_s1 + $0x110] sm:$0xff]  ;;  %v400_v6 = vand.u32 4294901760, %v5583_v2  ;;  %v5588_v7 = vld [vmem:[%s10720_s1 + $0x128] sm:$0xff]  ;;  %v5590_v8 = vld [vmem:[%s10720_s1 + $0x138] sm:$0xff]  ;;  %494 = vmatprep.mubr.f32.mxu0 %v10731_v9 }
   0xf   : > { %329 = vst [vmem:[#allocation2] sm:$0x1] %v10731_v9  ;;  %330 = vst [vmem:[#allocation2 + $0x9] sm:$0x1] %v10731_v9  ;;  %v404_v10 = vand.u32 4294901760, %v5585_v5  ;;  %v406_v11 = vand.u32 4294901760, %v5588_v7 }
  0x10   : > { %v410_v12 = vand.u32 4294901760, %v5590_v8  ;;  %v5587_v13 = vld [vmem:[%s10720_s1 + $0x120] sm:$0xff]  ;;  %v5589_v14 = vld [vmem:[%s10720_s1 + $0x130] sm:$0xff]  ;;  %v5592_v15 = vld [vmem:[%s10720_s1 + $0x148] sm:$0xff]  ;;  %v7668_v16 = vpack.c.bf16 %v402_v4, %v398_v3  ;;  %s11438_s10 = smov (!%p7643_p3, %s5576_s10), 1  ;;  %v7711_v36 = vsub.f32 %v5584_v0, %v398_v3  ;;  %v7713_v37 = vsub.f32 %v5586_v1, %v402_v4 }
  0x11   : > { %v5594_v17 = vld [vmem:[%s10720_s1 + $0x158] sm:$0xff]  ;;  %v5591_v18 = vld [vmem:[%s10720_s1 + $0x140] sm:$0xff]  ;;  %v5593_v19 = vld [vmem:[%s10720_s1 + $0x150] sm:$0xff]  ;;  %v7683_v20 = vpack.c.bf16 %v404_v10, %v400_v6  ;;  %v408_v23 = vand.u32 4294901760, %v5587_v13  ;;  %v412_v24 = vand.u32 4294901760, %v5589_v14  ;;  %v414_v25 = vand.u32 4294901760, %v5592_v15 }
  0x12   : > { %10991 = vst [vmem:[#allocation4_spill] sm:$0xff] %v7668_v16  ;;  %v7685_v21 = vpack.c.bf16 %v410_v12, %v406_v11  ;;  %v5596_v22 = vld [vmem:[%s10720_s1 + $0x168] sm:$0xff]  ;;  %6417 = vmatprep.subr.bf16.mxu0 %v7668_v16  ;;  %v418_v26 = vand.u32 4294901760, %v5594_v17  ;;  %v416_v27 = vand.u32 4294901760, %v5591_v18  ;;  %v420_v28 = vand.u32 4294901760, %v5593_v19  ;;  %v5598_v29 = vld [vmem:[%s10720_s1 + $0x178] sm:$0xff] }
  0x13   : > { %10992 = vst [vmem:[#allocation5_spill] sm:$0xff] %v7683_v20  ;;  %6419 = vmatpush1.bf16.msra.mxu0 %v7683_v20  ;;  %v5595_v30 = vld [vmem:[%s10720_s1 + $0x160] sm:$0xff]  ;;  %v7699_v31 = vpack.c.bf16 %v412_v24, %v408_v23  ;;  %v422_v32 = vand.u32 4294901760, %v5596_v22  ;;  %v5597_v33 = vld [vmem:[%s10720_s1 + $0x170] sm:$0xff]  ;;  %v5600_v34 = vld [vmem:[%s10720_s1 + $0x188] sm:$0xff]  ;;  %s5581_s29 = sshll.u32 %s11438_s10, 3  ;;  %v7715_v38 = vsub.f32 %v5583_v2, %v400_v6  ;;  %v7724_v40 = vsub.f32 %v5585_v5, %v404_v10 }
  0x14   : > { %10993 = vst [vmem:[#allocation6_spill] sm:$0xff] %v7685_v21  ;;  %6421 = vmatprep.subr.bf16.mxu0 %v7685_v21  ;;  %v5602_v35 = vld [vmem:[%s10720_s1 + $0x198] sm:$0xff]  ;;  %v7717_v39 = vpack.c.bf16 %v418_v26, %v414_v25  ;;  %s323_s13 = scalar_lea.vmem %s10719_s0, %s5581_s29  ;;  %v7726_v41 = vsub.f32 %v5588_v7, %v406_v11  ;;  %v7728_v42 = vpack.c.bf16 %v420_v28, %v416_v27  ;;  %v426_v43 = vand.u32 4294901760, %v5598_v29  ;;  %v5599_v44 = vld [vmem:[%s10720_s1 + $0x180] sm:$0xff]  ;;  %v5601_v49 = vld [vmem:[%s10720_s1 + $0x190] sm:$0xff]  ;;  %s327_s19 = scalar_lea.vmem %s10728_s9, %s5581_s29 }
  0x15   : > { %10994 = vst [vmem:[#allocation7_spill] sm:$0xff] %v7699_v31  ;;  %v424_v45 = vand.u32 4294901760, %v5595_v30  ;;  %v428_v46 = vand.u32 4294901760, %v5597_v33  ;;  %v430_v47 = vand.u32 4294901760, %v5600_v34  ;;  %v434_v48 = vand.u32 4294901760, %v5602_v35  ;;  %v5604_v50 = vld [vmem:[%s10720_s1 + $0x1a8] sm:$0xff] }
  0x16   : > { %10995 = vst [vmem:[#allocation8_spill] sm:$0xff] %v7717_v39  ;;  %10996 = vst [vmem:[#allocation9_spill] sm:$0xff] %v7728_v42  ;;  %v7740_v51 = vsub.f32 %v5590_v8, %v410_v12  ;;  %v7742_v52 = vsub.f32 %v5587_v13, %v408_v23  ;;  %v7744_v53 = vsub.f32 %v5589_v14, %v412_v24  ;;  %v5606_v55 = vld [vmem:[%s10720_s1 + $0x1b8] sm:$0xff]  ;;  %v5603_v56 = vld [vmem:[%s10720_s1 + $0x1a0] sm:$0xff]  ;;  %v432_v3 = vand.u32 4294901760, %v5599_v44 }
  0x17   : > { %6423 = vmatpush1.bf16.msra.mxu0 %v7699_v31  ;;  %v7747_v54 = vpack.c.bf16 %v426_v43, %v422_v32  ;;  %v328_v57 = vld [vmem:[%s323_s13] sm:$0xff]  ;;  %v7755_v58 = vsub.f32 %v5592_v15, %v414_v25  ;;  %v7757_v59 = vsub.f32 %v5594_v17, %v418_v26  ;;  %v7759_v60 = vsub.f32 %v5591_v18, %v416_v27  ;;  %v5605_v62 = vld [vmem:[%s10720_s1 + $0x1b0] sm:$0xff]  ;;  %v5608_v63 = vld [vmem:[%s10720_s1 + $0x1c8] sm:$0xff] }
  0x18   : > { %6425 = vmatprep.subr.bf16.mxu0 %v7717_v39  ;;  %v7761_v61 = vsub.f32 %v5593_v19, %v420_v28  ;;  %v5610_v0 = vld [vmem:[%s10720_s1 + $0x1d8] sm:$0xff]  ;;  %331 = vst [vmem:[#allocation2 + $0x1] sm:$0xff] %v328_v57  ;;  %v7772_v1 = vsub.f32 %v5596_v22, %v422_v32  ;;  %v7774_v2 = vsub.f32 %v5598_v29, %v426_v43  ;;  %v436_v4 = vand.u32 4294901760, %v5601_v49  ;;  %v5607_v10 = vld [vmem:[%s10720_s1 + $0x1c0] sm:$0xff]  ;;  %v5609_v11 = vld [vmem:[%s10720_s1 + $0x1d0] sm:$0xff] }
  0x19   : > { %10997 = vst [vmem:[#allocation10_spill] sm:$0xff] %v7747_v54  ;;  %v7777_v5 = vpack.c.bf16 %v428_v46, %v424_v45  ;;  %v7779_v6 = vpack.c.bf16 %v434_v48, %v430_v47  ;;  %v438_v7 = vand.u32 4294901760, %v5604_v50  ;;  %v442_v8 = vand.u32 4294901760, %v5606_v55  ;;  %v5612_v43 = vld [vmem:[%s10720_s1 + $0x1e8] sm:$0xff] }
  0x1a   : > { %v440_v12 = vand.u32 4294901760, %v5603_v56  ;;  %v444_v13 = vand.u32 4294901760, %v5605_v62  ;;  %v446_v14 = vand.u32 4294901760, %v5608_v63  ;;  %v450_v15 = vand.u32 4294901760, %v5610_v0 }
  0x1b   : > { %6427 = vmatpush1.bf16.msra.mxu0 %v7728_v42  ;;  %10998 = vst [vmem:[#allocation11_spill] sm:$0xff] %v7777_v5  ;;  %10999 = vst [vmem:[#allocation12_spill] sm:$0xff] %v7779_v6  ;;  %v7788_v17 = vsub.f32 %v5595_v30, %v424_v45  ;;  %v7790_v18 = vsub.f32 %v5597_v33, %v428_v46  ;;  %v7792_v19 = vsub.f32 %v5600_v34, %v430_v47  ;;  %v5614_v45 = vld [vmem:[%s10720_s1 + $0x1f8] sm:$0xff]  ;;  %vm5521_vm5 = vcmask 523264  }
  0x1c   : > { %6429 = vmatprep.subr.bf16.mxu0 %v7747_v54  ;;  %v7794_v22 = vsub.f32 %v5602_v35, %v434_v48  ;;  %v7796_v23 = vpack.c.bf16 %v436_v4, %v432_v3  ;;  %v7798_v24 = vsub.f32 %v5599_v44, %v432_v3  ;;  %v448_v25 = vand.u32 4294901760, %v5607_v10 }
  0x1d   : > { %v452_v26 = vand.u32 4294901760, %v5609_v11  ;;  %v7801_v27 = vsub.f32 %v5601_v49, %v436_v4  ;;  %v7803_v28 = vpack.c.bf16 %v442_v8, %v438_v7  ;;  %v7805_v29 = vsub.f32 %v5604_v50, %v438_v7 }
  0x1e   : > { %11000 = vst [vmem:[#allocation13_spill] sm:$0xff] %v7796_v23  ;;  %v7807_v30 = vsub.f32 %v5606_v55, %v442_v8  ;;  %v7810_v32 = vpack.c.bf16 %v444_v13, %v440_v12  ;;  %v7812_v33 = vsub.f32 %v5603_v56, %v440_v12  ;;  %v7814_v34 = vsub.f32 %v5605_v62, %v444_v13  ;;  %v5611_v56 = vld [vmem:[%s10720_s1 + $0x1e0] sm:$0xff]  ;;  %v7842_v62 = vld [vmem:[%s10720_s1 + $0x1f0] sm:$0xff] }
  0x1f   : > { %6431 = vmatpush1.bf16.msra.mxu0 %v7777_v5  ;;  %11001 = vst [vmem:[#allocation14_spill] sm:$0xff] %v7803_v28  ;;  %v7816_v35 = vpack.c.bf16 %v450_v15, %v446_v14  ;;  %v7821_v44 = vsub.f32 %v5608_v63, %v446_v14  ;;  %v10729_v46 = vand.u32 4294901760, %v7711_v36  ;;  %v10730_v47 = vand.u32 4294901760, %v7713_v37 }
  0x20   : > { %6433 = vmatprep.subr.bf16.mxu0 %v7779_v6  ;;  %11002 = vst [vmem:[#allocation15_spill] sm:$0xff] %v7810_v32  ;;  %v7828_v48 = vand.u32 4294901760, %v328_v57  ;;  %v7830_v49 = vsub.f32 %v5610_v0, %v450_v15  ;;  %v7832_v50 = vpack.c.bf16 %v452_v26, %v448_v25  ;;  %v7834_v55 = vsub.f32 %v5607_v10, %v448_v25 }
  0x21   : > { %11003 = vst [vmem:[#allocation16_spill] sm:$0xff] %v7816_v35  ;;  %v10733_v63 = vand.u32 4294901760, %v7715_v38  ;;  %v7846_v3 = vsub.f32 %v5609_v11, %v452_v26  ;;  %v454_v0 = vand.u32 4294901760, %v5612_v43  ;;  %v509_v4 = vsub.f32 %v7711_v36, %v10729_v46 }
  0x22   : > { %11004 = vst [vmem:[#allocation17_spill] sm:$0xff] %v7828_v48  ;;  %11005 = vst [vmem:[#allocation18_spill] sm:$0xff] %v7830_v49  ;;  %v521_v7 = vsub.f32 %v7713_v37, %v10730_v47  ;;  %v458_v8 = vand.u32 4294901760, %v5614_v45  ;;  %v7856_v10 = vsub.f32 %v328_v57, %v7828_v48  ;;  %v10736_v12 = vand.u32 4294901760, %v7724_v40 }
  0x23   : > { %11006 = vst [vmem:[#allocation19_spill] sm:$0xff] %v7832_v50  ;;  %11007 = vst [vmem:[#allocation20_spill] sm:$0xff] %v7834_v55  ;;  %6435 = vmatpush1.bf16.msra.mxu0 %v7796_v23  ;;  %v10741_v11 = vand.u32 4294901760, %v7726_v41  ;;  %v456_v13 = vand.u32 4294901760, %v5611_v56  ;;  %v10742_v15 = vand.u32 4294901760, %v7740_v51  ;;  %v510_v26 = vand.u32 4294901760, %v509_v4 }
  0x24   : > { %11008 = vst [vmem:[#allocation21_spill] sm:$0xff] %v7846_v3  ;;  %6437 = vmatprep.subr.bf16.mxu0 %v7803_v28  ;;  %11009 = vst [vmem:[#allocation22_spill] sm:$0xff] %v7856_v10  ;;  %v522_v46 = vand.u32 4294901760, %v521_v7  ;;  %v7864_v47 = vand.u32 4294901760, %v7856_v10  ;;  %v515_v57 = vsub.f32 %v7715_v38, %v10733_v63  ;;  %v527_v9 = vsub.f32 %v7724_v40, %v10736_v12 }
  0x25   : > { %v533_v14 = vsub.f32 %v7726_v41, %v10741_v11  ;;  %v545_v4 = vsub.f32 %v7740_v51, %v10742_v15  ;;  %v10749_v7 = vand.u32 4294901760, %v7744_v53  ;;  %v7881_v25 = vpack.c.bf16 %v458_v8, %v454_v0 }
  0x26   : > { %11010 = vst [vmem:[#allocation23_spill] sm:$0xff] %v7864_v47  ;;  %v7883_v63 = vsub.f32 %v5612_v43, %v454_v0  ;;  %v11012_v28 = vand.u32 4294901760, %v7842_v62  ;;  %v11014_v11 = vand.u32 4294901760, %v7742_v52  ;;  %v6448_v43 = vpack.c.bf16 %v522_v46, %v510_v26 }
  0x27   : > { %6439 = vmatpush1.bf16.msra.mxu0 %v7810_v32  ;;  %11011 = vst [vmem:[#allocation24_spill] sm:$0xff] %v7881_v25  ;;  %v7885_v32 = vsub.f32 %v5614_v45, %v458_v8  ;;  %v498_v45 = vsub.f32 %v7856_v10, %v7864_v47  ;;  %v516_v0 = vand.u32 4294901760, %v515_v57  ;;  %v534_v12 = vand.u32 4294901760, %v533_v14 }
  0x28   : > { %6441 = vmatprep.subr.bf16.mxu0 %v7816_v35  ;;  %v7890_v23 = vpack.c.bf16 %v11012_v28, %v456_v13  ;;  %v539_v15 = vsub.f32 %v7742_v52, %v11014_v11  ;;  %v551_v35 = vsub.f32 %v7744_v53, %v10749_v7  ;;  %v528_v28 = vand.u32 4294901760, %v527_v9 }
  0x29   : > { %v546_v5 = vand.u32 4294901760, %v545_v4  ;;  %v10758_v11 = vand.u32 4294901760, %v7761_v61  ;;  %v11015_v7 = vand.u32 4294901760, %v7755_v58  ;;  %v11016_v46 = vand.u32 4294901760, %v7757_v59 }
  0x2a   : > { %11013 = vst [vmem:[#allocation25_spill] sm:$0xff] %v7890_v23  ;;  %v10763_v57 = vand.u32 4294901760, %v7772_v1  ;;  %v10768_v8 = vand.u32 4294901760, %v7774_v2  ;;  %v540_v47 = vand.u32 4294901760, %v539_v15  ;;  %v552_v9 = vand.u32 4294901760, %v551_v35 }
  0x2b   : > { %6443 = vmatpush1.bf16.msra.mxu0 %v7832_v50  ;;  %v557_v6 = vsub.f32 %v7755_v58, %v11015_v7  ;;  %v569_v26 = vsub.f32 %v7757_v59, %v11016_v46  ;;  %v11017_v14 = vand.u32 4294901760, %v7759_v60  ;;  %v7919_v50 = vand.u32 4294901760, %v498_v45 }
  0x2c   : > { %6445 = vmatprep.subr.bf16.mxu0 %v7881_v25  ;;  %v575_v25 = vsub.f32 %v7761_v61, %v10758_v11  ;;  %v581_v7 = vsub.f32 %v7772_v1, %v10763_v57  ;;  %v593_v46 = vsub.f32 %v7774_v2, %v10768_v8  ;;  %v7929_v15 = vsub.f32 %v5611_v56, %v456_v13 }
  0x2d   : > { %v563_v4 = vsub.f32 %v7759_v60, %v11017_v14  ;;  %11018 = vst [vmem:[#allocation26_spill] sm:$0xff] %v7919_v50  ;;  %v6450_v14 = vpack.c.bf16 %v528_v28, %v516_v0  ;;  %v10772_v54 = vand.u32 4294901760, %v7790_v18  ;;  %v10771_v45 = vand.u32 4294901760, %v7792_v19 }
  0x2e   : > { %v6452_v11 = vpack.c.bf16 %v546_v5, %v534_v12  ;;  %v558_v42 = vand.u32 4294901760, %v557_v6  ;;  %v570_v39 = vand.u32 4294901760, %v569_v26  ;;  %v10770_v57 = vand.u32 4294901760, %v7794_v22 }
  0x2f   : > { %6447 = vmatpush1.bf16.msra.mxu0 %v7890_v23  ;;  %v6454_v31 = vpack.c.bf16 %v552_v9, %v540_v47  ;;  %v564_v21 = vand.u32 4294901760, %v563_v4  ;;  %v576_v8 = vand.u32 4294901760, %v575_v25  ;;  %v10769_v35 = vand.u32 4294901760, %v7798_v24 }
  0x30   : > { %6449 = vmatprep.subr.bf16.mxu0 %v6448_v43  ;;  %v582_v56 = vand.u32 4294901760, %v581_v7  ;;  %v594_v13 = vand.u32 4294901760, %v593_v46  ;;  %v11019_v0 = vand.u32 4294901760, %v7788_v17  ;;  %v10773_v43 = vand.u32 4294901760, %v7801_v27 }
  0x31   : > { %v599_v5 = vsub.f32 %v7790_v18, %v10772_v54  ;;  %v605_v6 = vsub.f32 %v7792_v19, %v10771_v45  ;;  %v617_v47 = vsub.f32 %v7794_v22, %v10770_v57  ;;  %v11020_v12 = vmov 0.0  }
  0x32   : > { %500 = vmatmul.mubr.f32.vlgmr.msra.gmra.mrb[0].mxu0 %v7919_v50  ;;  %v587_v28 = vsub.f32 %v7788_v17, %v11019_v0  ;;  %v6456_v25 = vpack.c.bf16 %v570_v39, %v558_v42  ;;  %v611_v26 = vsub.f32 %v7798_v24, %v10769_v35  ;;  %v10775_v9 = vand.u32 4294901760, %v7805_v29 }
  0x33   : > { %6451 = vmatpush1.bf16.msra.mxu0 %v6450_v14  ;;  %730 = vmatprep.mubr.f32.mxu0 %v11020_v12  ;;  %v11021_v7 = vand.u32 4294901760, %v7842_v62  ;;  %v623_v14 = vsub.f32 %v7801_v27, %v10773_v43  ;;  %v10774_v39 = vand.u32 4294901760, %v7814_v34  ;;  %v6458_v42 = vpack.c.bf16 %v576_v8, %v564_v21 }
  0x34   : > { %6453 = vmatprep.subr.bf16.mxu0 %v6452_v11  ;;  %v6460_v0 = vpack.c.bf16 %v594_v13, %v582_v56  ;;  %v588_v35 = vand.u32 4294901760, %v587_v28  ;;  %v10781_v57 = vand.u32 4294901760, %v7821_v44  ;;  %v600_v45 = vand.u32 4294901760, %v599_v5 }
  0x35   : > { %v7958_v46 = vsub.f32 %v7842_v62, %v11021_v7  ;;  %v606_v54 = vand.u32 4294901760, %v605_v6  ;;  %v618_v4 = vand.u32 4294901760, %v617_v47  ;;  %v664_v62 = vand.u32 4294901760, %v7830_v49 }
  0x36   : > { %v612_v7 = vand.u32 4294901760, %v611_v26  ;;  %v629_v43 = vsub.f32 %v7805_v29, %v10775_v9  ;;  %v11022_v11 = vand.u32 4294901760, %v7807_v30  ;;  %v658_v8 = vand.u32 4294901760, %v7834_v55 }
  0x37   : > { %6455 = vmatpush1.bf16.msra.mxu0 %v6454_v31  ;;  %v624_v56 = vand.u32 4294901760, %v623_v14  ;;  %v11023_v31 = vand.u32 4294901760, %v7812_v33  ;;  %v647_v28 = vsub.f32 %v7814_v34, %v10774_v39  ;;  %v670_v5 = vand.u32 4294901760, %v7846_v3 }
  0x38   : > { %6457 = vmatprep.subr.bf16.mxu0 %v6456_v25  ;;  %v641_v21 = vsub.f32 %v7807_v30, %v11022_v11  ;;  %v653_v6 = vsub.f32 %v7821_v44, %v10781_v57  ;;  %v665_v47 = vsub.f32 %v7830_v49, %v664_v62  ;;  %v676_v25 = vand.u32 4294901760, %v7883_v63 }
  0x39   : > { %v635_v13 = vsub.f32 %v7812_v33, %v11023_v31  ;;  %v688_v26 = vand.u32 4294901760, %v7885_v32  ;;  %v6462_v14 = vpack.c.bf16 %v600_v45, %v588_v35  ;;  %v659_v11 = vsub.f32 %v7834_v55, %v658_v8 }
  0x3a   : > { %v671_v31 = vsub.f32 %v7846_v3, %v670_v5  ;;  %v682_v39 = vand.u32 4294901760, %v7929_v15  ;;  %v6464_v9 = vpack.c.bf16 %v618_v4, %v606_v54  ;;  %v630_v50 = vand.u32 4294901760, %v629_v43 }
  0x3b   : > { %6459 = vmatpush1.bf16.msra.mxu0 %v6458_v42  ;;  %v642_v23 = vand.u32 4294901760, %v641_v21  ;;  %v6466_v20 = vpack.c.bf16 %v624_v56, %v612_v7  ;;  %v636_v57 = vand.u32 4294901760, %v635_v13  ;;  %v648_v10 = vand.u32 4294901760, %v647_v28 }
  0x3c   : > { %6461 = vmatprep.subr.bf16.mxu0 %v6460_v0  ;;  %v654_v16 = vand.u32 4294901760, %v653_v6  ;;  %v666_v49 = vand.u32 4294901760, %v665_v47  ;;  %v677_v12 = vsub.f32 %v7883_v63, %v676_v25  ;;  %v689_v42 = vsub.f32 %v7885_v32, %v688_v26 }
  0x3d   : > { %v660_v35 = vand.u32 4294901760, %v659_v11  ;;  %v672_v45 = vand.u32 4294901760, %v671_v31  ;;  %v683_v3 = vsub.f32 %v7929_v15, %v682_v39  ;;  %v694_v55 = vand.u32 4294901760, %v7958_v46 }
  0x3e   : > { %v6468_v54 = vpack.c.bf16 %v642_v23, %v630_v50  ;;  %v6470_v43 = vpack.c.bf16 %v648_v10, %v636_v57  ;;  %v6472_v4 = vpack.c.bf16 %v666_v49, %v654_v16  ;;  %v678_v0 = vand.u32 4294901760, %v677_v12 }
  0x3f   : > { %6463 = vmatpush1.bf16.msra.mxu0 %v6462_v14  ;;  %v690_v7 = vand.u32 4294901760, %v689_v42  ;;  %v6474_v21 = vpack.c.bf16 %v672_v45, %v660_v35  ;;  %v684_v56 = vand.u32 4294901760, %v683_v3  ;;  %v695_v13 = vsub.f32 %v7958_v46, %v694_v55 }
  0x40   : > { %6465 = vmatprep.subr.bf16.mxu0 %v6464_v9  ;;  %v11024_v28 = vand.u32 4294901760, %v7711_v36  ;;  %v11025_v6 = vand.u32 4294901760, %v7713_v37  ;;  %v11026_v14 = vand.u32 4294901760, %v7715_v38  ;;  %v11027_v23 = vand.u32 4294901760, %v7724_v40 }
  0x41   : > { %v11028_v16 = vand.u32 4294901760, %v7726_v41  ;;  %v11030_v3 = vand.u32 4294901760, %v7742_v52  ;;  %v11031_v10 = vand.u32 4294901760, %v7744_v53  ;;  %v11032_v12 = vand.u32 4294901760, %v7755_v58 }
  0x42   : > { %v7999_v47 = vpack.c.bf16 %v11025_v6, %v11024_v28  ;;  %v8005_v50 = vpack.c.bf16 %v11027_v23, %v11026_v14  ;;  %v11033_v9 = vand.u32 4294901760, %v7757_v59  ;;  %v11034_v31 = vand.u32 4294901760, %v7759_v60 }
  0x43   : > { %6467 = vmatpush1.bf16.msra.mxu0 %v6466_v20  ;;  %v11029_v20 = vand.u32 4294901760, %v7740_v51  ;;  %v8017_v57 = vpack.c.bf16 %v11031_v10, %v11030_v3  ;;  %v11035_v42 = vand.u32 4294901760, %v7761_v61  ;;  %v11036_v45 = vand.u32 4294901760, %v7772_v1 }
  0x44   : > { %6469 = vmatprep.subr.bf16.mxu0 %v6468_v54  ;;  %v8023_v11 = vpack.c.bf16 %v11033_v9, %v11032_v12  ;;  %v11037_v54 = vand.u32 4294901760, %v7774_v2  ;;  %v11038_v6 = vand.u32 4294901760, %v7788_v17  ;;  %v11039_v14 = vand.u32 4294901760, %v7790_v18 }
  0x45   : > { %v8011_v49 = vpack.c.bf16 %v11029_v20, %v11028_v16  ;;  %v8029_v35 = vpack.c.bf16 %v11035_v42, %v11034_v31  ;;  %v11040_v16 = vand.u32 4294901760, %v7792_v19  ;;  %v11041_v20 = vand.u32 4294901760, %v7794_v22 }
  0x46   : > { %v8035_v28 = vpack.c.bf16 %v11037_v54, %v11036_v45  ;;  %v8041_v23 = vpack.c.bf16 %v11039_v14, %v11038_v6  ;;  %v11043_v10 = vand.u32 4294901760, %v7798_v24  ;;  %v11044_v12 = vand.u32 4294901760, %v7801_v27 }
  0x47   : > { %v8047_v3 = vpack.c.bf16 %v11041_v20, %v11040_v16  ;;  %v11046_v31 = vand.u32 4294901760, %v7805_v29  ;;  %v11047_v42 = vand.u32 4294901760, %v7807_v30  ;;  %v11048_v54 = vand.u32 4294901760, %v7812_v33  ;;  %6471 = vmatpush1.bf16.msra.mxu0 %v6470_v43  ;;  %v11072_v43 = vld [vmem:[#allocation23_spill] sm:$0xff] }
  0x48   : > { %v8053_v9 = vpack.c.bf16 %v11044_v12, %v11043_v10  ;;  %v11049_v6 = vand.u32 4294901760, %v7814_v34  ;;  %v11050_v16 = vand.u32 4294901760, %v7821_v44  ;;  %v8071_v10 = vpack.c.bf16 %v670_v5, %v658_v8  ;;  %6473 = vmatprep.subr.bf16.mxu0 %v6472_v4  ;;  %v11069_v5 = vld [vmem:[#allocation19_spill] sm:$0xff] }
  0x49   : > { %11042 = vst [vmem:[#allocation27_spill] sm:$0xff] %v8047_v3  ;;  %v8059_v45 = vpack.c.bf16 %v11047_v42, %v11046_v31  ;;  %v696_v3 = vand.u32 4294901760, %v695_v13  ;;  %v8073_v12 = vpack.c.bf16 %v688_v26, %v676_v25  ;;  %v6476_v31 = vpack.c.bf16 %v690_v7, %v678_v0  ;;  %v11070_v25 = vld [vmem:[#allocation24_spill] sm:$0xff]  ;;  %v11071_v26 = vld [vmem:[#allocation25_spill] sm:$0xff]  ;;  %v334_v7 = vld [vmem:[%s10720_s1 + $0x8] sm:$0xff] }
  0x4a   : > { %11045 = vst [vmem:[#allocation28_spill] sm:$0xff] %v8053_v9  ;;  %v8065_v14 = vpack.c.bf16 %v11049_v6, %v11048_v54  ;;  %v8069_v20 = vpack.c.bf16 %v664_v62, %v11050_v16  ;;  %v8075_v9 = vpack.c.bf16 %v694_v55, %v682_v39  ;;  %v6480_v54 = vpack.c.bf16 %v7713_v37, %v7711_v36  ;;  %v342_v6 = vld [vmem:[%s10720_s1 + $0x48] sm:$0xff] }
  0x4b   : > { %6475 = vmatpush1.bf16.msra.mxu0 %v6474_v21  ;;  %v6478_v42 = vpack.c.bf16 %v696_v3, %v684_v56  ;;  %v6482_v62 = vpack.c.bf16 %v7724_v40, %v7715_v38  ;;  %v6484_v8 = vpack.c.bf16 %v7740_v51, %v7726_v41  ;;  %v6486_v55 = vpack.c.bf16 %v7744_v53, %v7742_v52  ;;  %v336_v21 = vld [vmem:[%s10720_s1 + $0x18] sm:$0xff] }
  0x4c   : > { %6477 = vmatprep.subr.bf16.mxu0 %v6476_v31  ;;  %v11051_v39 = vmov 0.0   ;;  %v6488_v36 = vpack.c.bf16 %v7757_v59, %v7755_v58  ;;  %v6490_v37 = vpack.c.bf16 %v7761_v61, %v7759_v60  ;;  %v6492_v38 = vpack.c.bf16 %v7774_v2, %v7772_v1  ;;  %v11052_v58 = vld [vmem:[#allocation18_spill] sm:$0xff]  ;;  %v11053_v60 = vld [vmem:[#allocation20_spill] sm:$0xff]  ;;  %v11054_v61 = vld [vmem:[#allocation21_spill] sm:$0xff] }
  0x4d   : > { %v6494_v40 = vpack.c.bf16 %v7790_v18, %v7788_v17  ;;  %v6496_v41 = vpack.c.bf16 %v7794_v22, %v7792_v19  ;;  %v6498_v51 = vpack.c.bf16 %v7801_v27, %v7798_v24  ;;  %v6500_v52 = vpack.c.bf16 %v7807_v30, %v7805_v29  ;;  %v11055_v18 = vld [vmem:[#allocation4_spill] sm:$0xff]  ;;  %v11056_v19 = vld [vmem:[#allocation22_spill] sm:$0xff]  ;;  %v11057_v22 = vld [vmem:[#allocation5_spill] sm:$0xff] }
  0x4e   : > { %v6502_v53 = vpack.c.bf16 %v7814_v34, %v7812_v33  ;;  %v6504_v59 = vpack.c.bf16 %v11052_v58, %v7821_v44  ;;  %v6506_v1 = vpack.c.bf16 %v11054_v61, %v11053_v60  ;;  %v6508_v2 = vpack.c.bf16 %v7885_v32, %v7883_v63  ;;  %v11058_v24 = vld [vmem:[#allocation6_spill] sm:$0xff]  ;;  %v11059_v27 = vld [vmem:[#allocation7_spill] sm:$0xff]  ;;  %v11060_v29 = vld [vmem:[#allocation8_spill] sm:$0xff] }
  0x4f   : > { %6479 = vmatpush1.bf16.msra.mxu0 %v6478_v42  ;;  %v6510_v17 = vpack.c.bf16 %v7958_v46, %v7929_v15  ;;  %v11061_v30 = vld [vmem:[#allocation9_spill] sm:$0xff]  ;;  %v11062_v32 = vld [vmem:[#allocation10_spill] sm:$0xff]  ;;  %v11063_v33 = vld [vmem:[#allocation11_spill] sm:$0xff]  ;;  %v1253_v56 = vand.u32 4294901760, %v334_v7  ;;  %v1257_v13 = vand.u32 4294901760, %v336_v21  ;;  %v1269_v31 = vand.u32 4294901760, %v342_v6 }
  0x50   : > { %6481 = vmatprep.subr.bf16.mxu0 %v6480_v54  ;;  %v11064_v34 = vld [vmem:[#allocation12_spill] sm:$0xff]  ;;  %v11065_v44 = vld [vmem:[#allocation13_spill] sm:$0xff]  ;;  %v11066_v63 = vld [vmem:[#allocation14_spill] sm:$0xff] }
  0x51   : > { %v11067_v15 = vld [vmem:[#allocation15_spill] sm:$0xff]  ;;  %v11068_v46 = vld [vmem:[#allocation16_spill] sm:$0xff]  ;;  %v341_v54 = vld [vmem:[%s10720_s1 + $0x40] sm:$0xff]  ;;  %v8234_v60 = vsub.f32 %v334_v7, %v1253_v56  ;;  %v8236_v61 = vsub.f32 %v336_v21, %v1257_v13 }
  0x52   : > { %732 = vmatmul.mubr.f32.vlgmr.msra.gmra.mrb[0].mxu0 %v7828_v48  ;;  %v11073_v4 = vld [vmem:[#allocation27_spill] sm:$0xff]  ;;  %v11074_v0 = vld [vmem:[#allocation28_spill] sm:$0xff] }
  0x53   : > { %6483 = vmatpush1.bf16.msra.mxu0 %v6482_v62  ;;  %866 = vmatprep.mubr.f32.mxu0 %v11051_v39  ;;  %v343_v62 = vld [vmem:[%s10720_s1 + $0x50] sm:$0xff]  ;;  %v350_v58 = vld [vmem:[%s10720_s1 + $0x88] sm:$0xff] }
  0x54   : > { %6485 = vmatprep.subr.bf16.mxu0 %v6484_v8  ;;  %v346_v8 = vld [vmem:[%s10720_s1 + $0x68] sm:$0xff] }
  0x57   : > { %6487 = vmatpush1.bf16.msra.mxu0 %v6486_v55  ;;  %v348_v55 = vld [vmem:[%s10720_s1 + $0x78] sm:$0xff] }
  0x58   : > { %6489 = vmatprep.subr.bf16.mxu0 %v6488_v36 }
  0x5b   : > { %6491 = vmatpush1.bf16.msra.mxu0 %v6490_v37  ;;  %v1271_v37 = vand.u32 4294901760, %v341_v54 }
  0x5c   : > { %6493 = vmatprep.subr.bf16.mxu0 %v6492_v38  ;;  %v1275_v38 = vand.u32 4294901760, %v343_v62 }
  0x5d   : > { %v8273_v7 = vsub.f32 %v341_v54, %v1271_v37  ;;  %v8313_v54 = vld [vmem:[%s10720_s1 + $0xc0] sm:$0xff] }
  0x5e   : > { %v8275_v21 = vsub.f32 %v343_v62, %v1275_v38  ;;  %v8318_v62 = vld [vmem:[%s10720_s1 + $0xd0] sm:$0xff] }
  0x5f   : > { %6495 = vmatpush1.bf16.msra.mxu0 %v6494_v40 }
  0x60   : > { %6497 = vmatprep.subr.bf16.mxu0 %v6496_v41  ;;  %v1277_v41 = vand.u32 4294901760, %v346_v8 }
  0x63   : > { %6499 = vmatpush1.bf16.msra.mxu0 %v6498_v51  ;;  %v1281_v51 = vand.u32 4294901760, %v348_v55 }
  0x64   : > { %6501 = vmatprep.subr.bf16.mxu0 %v6500_v52  ;;  %v345_v52 = vld [vmem:[%s10720_s1 + $0x60] sm:$0xff] }
  0x67   : > { %6503 = vmatpush1.bf16.msra.mxu0 %v6502_v53  ;;  %v347_v53 = vld [vmem:[%s10720_s1 + $0x70] sm:$0xff] }
  0x68   : > { %6505 = vmatprep.subr.bf16.mxu0 %v6504_v59  ;;  %v352_v59 = vld [vmem:[%s10720_s1 + $0x98] sm:$0xff] }
  0x6b   : > { %6507 = vmatpush1.bf16.msra.mxu0 %v6506_v1 }
  0x6c   : > { %6509 = vmatprep.subr.bf16.mxu0 %v6508_v2  ;;  %v8241_v2 = vpack.c.bf16 %v1275_v38, %v1271_v37  ;;  %v10789_v37 = vand.u32 4294901760, %v8234_v60  ;;  %v10790_v38 = vand.u32 4294901760, %v8236_v61 }
  0x6e   : > { %11076 = vst [vmem:[#allocation20_spill] sm:$0xff] %v8241_v2 }
  0x6f   : > { %6511 = vmatpush1.bf16.msra.mxu0 %v6510_v17  ;;  %v1279_v17 = vand.u32 4294901760, %v345_v52 }
  0x70   : > { %6513 = vmatprep.subr.bf16.mxu0 %v11055_v18 }
  0x72   : > { %869 = vmatmul.mubr.f32.vlgmr.msra.gmra.mrb[0].mxu0 %v11056_v19 }
  0x73   : > { %6515 = vmatpush1.bf16.msra.mxu0 %v11057_v22  ;;  %971 = vmatprep.mubr.f32.mxu0 %v11051_v39 }
  0x74   : > { %6517 = vmatprep.subr.bf16.mxu0 %v11058_v24 }
  0x77   : > { %6519 = vmatpush1.bf16.msra.mxu0 %v11059_v27 }
  0x78   : > { %6521 = vmatprep.subr.bf16.mxu0 %v11060_v29 }
  0x7b   : > { %6523 = vmatpush1.bf16.msra.mxu0 %v11061_v30 }
  0x7c   : > { %6525 = vmatprep.subr.bf16.mxu0 %v11062_v32 }
  0x7f   : > { %6527 = vmatpush1.bf16.msra.mxu0 %v11063_v33 }
  0x80   : > { %6529 = vmatprep.subr.bf16.mxu0 %v11064_v34 }
  0x83   : > { %6531 = vmatpush1.bf16.msra.mxu0 %v11065_v44 }
  0x84   : > { %6533 = vmatprep.subr.bf16.mxu0 %v11066_v63 }
  0x87   : > { %6535 = vmatpush1.bf16.msra.mxu0 %v11067_v15 }
  0x88   : > { %6537 = vmatprep.subr.bf16.mxu0 %v11068_v46 }
  0x8b   : > { %6539 = vmatpush1.bf16.msra.mxu0 %v11069_v5 }
  0x8c   : > { %6541 = vmatprep.subr.bf16.mxu0 %v11070_v25 }
  0x8f   : > { %6543 = vmatpush1.bf16.msra.mxu0 %v11071_v26 }
  0x90   : > { %6545 = vmatprep.subr.bf16.mxu0 %v7999_v47  ;;  %v333_v47 = vld [vmem:[%s10720_s1] sm:$0xff] }
  0x92   : > { %975 = vmatmul.mubr.f32.vlgmr.msra.gmra.mrb[0].mxu0 %v11072_v43 }
  0x93   : > { %6547 = vmatpush1.bf16.msra.mxu0 %v8005_v50  ;;  %1141 = vmatprep.mubr.f32.mxu0 %v11051_v39  ;;  %v335_v50 = vld [vmem:[%s10720_s1 + $0x10] sm:$0xff] }
  0x94   : > { %6549 = vmatprep.subr.bf16.mxu0 %v8011_v49  ;;  %v338_v49 = vld [vmem:[%s10720_s1 + $0x28] sm:$0xff] }
  0x97   : > { %6551 = vmatpush1.bf16.msra.mxu0 %v8017_v57  ;;  %v340_v57 = vld [vmem:[%s10720_s1 + $0x38] sm:$0xff] }
  0x98   : > { %6553 = vmatprep.subr.bf16.mxu0 %v8023_v11  ;;  %v1255_v11 = vand.u32 4294901760, %v333_v47  ;;  %v1265_v3 = vand.u32 4294901760, %v340_v57 }
  0x9a   : > { %v8238_v1 = vsub.f32 %v333_v47, %v1255_v11  ;;  %v353_v47 = vld [vmem:[%s10720_s1 + $0xa0] sm:$0xff] }
  0x9b   : > { %6555 = vmatpush1.bf16.msra.mxu0 %v8029_v35  ;;  %v1259_v35 = vand.u32 4294901760, %v335_v50 }
  0x9c   : > { %6557 = vmatprep.subr.bf16.mxu0 %v8035_v28  ;;  %v8182_v28 = vpack.c.bf16 %v1257_v13, %v1253_v56  ;;  %v8277_v56 = vsub.f32 %v346_v8, %v1277_v41  ;;  %v11086_v19 = vand.u32 4294901760, %v8238_v1 }
  0x9d   : > { %v8197_v16 = vpack.c.bf16 %v1259_v35, %v1255_v11 }
  0x9f   : > { %6559 = vmatpush1.bf16.msra.mxu0 %v8041_v23  ;;  %v1261_v23 = vand.u32 4294901760, %v338_v49 }
  0xa0   : > { %6561 = vmatprep.subr.bf16.mxu0 %v11073_v4 }
  0xa3   : > { %6563 = vmatpush1.bf16.msra.mxu0 %v11074_v0  ;;  %v332_v0 = vld [vmem:[#allocation2] sm:$0xff] }
  0xa4   : > { %6565 = vmatprep.subr.bf16.mxu0 %v8059_v45  ;;  %v339_v45 = vld [vmem:[%s10720_s1 + $0x30] sm:$0xff] }
  0xa7   : > { %6567 = vmatpush1.bf16.msra.mxu0 %v8065_v14  ;;  %v344_v14 = vld [vmem:[%s10720_s1 + $0x58] sm:$0xff] }
  0xa8   : > { %6569 = vmatprep.subr.bf16.mxu0 %v8069_v20  ;;  %v1273_v42 = vand.u32 4294901760, %v344_v14 }
  0xaa   : > { %v8220_v40 = vpack.c.bf16 %v1273_v42, %v1269_v31 }
  0xab   : > { %6571 = vmatpush1.bf16.msra.mxu0 %v8071_v10  ;;  %v1267_v10 = vand.u32 4294901760, %v339_v45 }
  0xac   : > { %6573 = vmatprep.subr.bf16.mxu0 %v8073_v12  ;;  %v8200_v12 = vpack.c.bf16 %v1265_v3, %v1261_v23  ;;  %11075 = vst [vmem:[#allocation18_spill] sm:$0xff] %v8220_v40 }
  0xaf   : > { %6575 = vmatpush1.bf16.msra.mxu0 %v8075_v9  ;;  %v337_v9 = vld [vmem:[%s10720_s1 + $0x20] sm:$0xff] }
  0xb0   : > { %6577 = vmatprep.subr.bf16.mxu0 %v11055_v18  ;;  %v1263_v20 = vand.u32 4294901760, %v337_v9  ;;  %v1283_v18 = vand.u32 4294901760, %v347_v53 }
  0xb2   : > { %1143 = vmatmul.mubr.f32.vlgmr.msra.gmra.mrb[0].mxu0 %v7828_v48  ;;  %v8216_v36 = vpack.c.bf16 %v1267_v10, %v1263_v20  ;;  %v8279_v13 = vpack.c.bf16 %v1283_v18, %v1279_v17 }
  0xb3   : > { %6579 = vmatpush1.bf16.msra.mxu0 %v11057_v22  ;;  %1245 = vmatprep.mubr.f32.mxu0 %v11051_v39  ;;  %v349_v22 = vld [vmem:[%s10720_s1 + $0x80] sm:$0xff] }
  0xb4   : > { %6581 = vmatprep.subr.bf16.mxu0 %v11058_v24  ;;  %v351_v24 = vld [vmem:[%s10720_s1 + $0x90] sm:$0xff]  ;;  %11078 = vst [vmem:[#allocation4_spill] sm:$0xff] %v8279_v13 }
  0xb5   : > { %v1291_v4 = vand.u32 4294901760, %v351_v24 }
  0xb7   : > { %6583 = vmatpush1.bf16.msra.mxu0 %v11059_v27  ;;  %v8249_v27 = vsub.f32 %v335_v50, %v1259_v35  ;;  %v355_v50 = vld [vmem:[%s10720_s1 + $0xb0] sm:$0xff] }
  0xb8   : > { %6585 = vmatprep.subr.bf16.mxu0 %v11060_v29  ;;  %v8252_v29 = vpack.c.bf16 %v1281_v51, %v1277_v41 }
  0xba   : > { %11077 = vst [vmem:[#allocation21_spill] sm:$0xff] %v8252_v29 }
  0xbb   : > { %6587 = vmatpush1.bf16.msra.mxu0 %v11061_v30  ;;  %v1285_v30 = vand.u32 4294901760, %v350_v58 }
  0xbc   : > { %6589 = vmatprep.subr.bf16.mxu0 %v11062_v32  ;;  %v1289_v32 = vand.u32 4294901760, %v352_v59 }
  0xbf   : > { %6591 = vmatpush1.bf16.msra.mxu0 %v11063_v33  ;;  %v8254_v33 = vsub.f32 %v338_v49, %v1261_v23  ;;  %v8288_v49 = vsub.f32 %v348_v55, %v1281_v51  ;;  %v8292_v23 = vsub.f32 %v345_v52, %v1279_v17  ;;  %v8323_v55 = vsub.f32 %v351_v24, %v1291_v4 }
  0xc0   : > { %6593 = vmatprep.subr.bf16.mxu0 %v11064_v34  ;;  %v8256_v34 = vsub.f32 %v340_v57, %v1265_v3  ;;  %v8290_v57 = vpack.c.bf16 %v1289_v32, %v1285_v30  ;;  %v8294_v3 = vsub.f32 %v347_v53, %v1283_v18  ;;  %v8339_v18 = vld [vmem:[%s10720_s1 + $0xe8] sm:$0xff] }
  0xc2   : > { %11079 = vst [vmem:[#allocation5_spill] sm:$0xff] %v8290_v57 }
  0xc3   : > { %6595 = vmatpush1.bf16.msra.mxu0 %v11065_v44  ;;  %v8258_v44 = vsub.f32 %v337_v9, %v1263_v20  ;;  %v8296_v9 = vsub.f32 %v350_v58, %v1285_v30  ;;  %v8306_v20 = vsub.f32 %v352_v59, %v1289_v32  ;;  %v1303_v59 = vand.u32 4294901760, %v8313_v54 }
  0xc4   : > { %6597 = vmatprep.subr.bf16.mxu0 %v11066_v63  ;;  %v8260_v63 = vsub.f32 %v339_v45, %v1267_v10  ;;  %v358_v45 = vld [vmem:[%s10720_s1 + $0xc8] sm:$0xff] }
  0xc5   : > { %v1301_v52 = vand.u32 4294901760, %v358_v45 }
  0xc7   : > { %6599 = vmatpush1.bf16.msra.mxu0 %v11067_v15  ;;  %v354_v15 = vld [vmem:[%s10720_s1 + $0xa8] sm:$0xff] }
  0xc8   : > { %6601 = vmatprep.subr.bf16.mxu0 %v11068_v46  ;;  %v356_v46 = vld [vmem:[%s10720_s1 + $0xb8] sm:$0xff]  ;;  %v1293_v11 = vand.u32 4294901760, %v354_v15 }
  0xc9   : > { %v1297_v35 = vand.u32 4294901760, %v356_v46 }
  0xca   : > { %v8330_v51 = vsub.f32 %v354_v15, %v1293_v11  ;;  %v8356_v15 = vld [vmem:[%s10720_s1 + $0xe0] sm:$0xff] }
  0xcb   : > { %6603 = vmatpush1.bf16.msra.mxu0 %v11069_v5  ;;  %v8268_v5 = vsub.f32 %v342_v6, %v1269_v31  ;;  %v360_v6 = vld [vmem:[%s10720_s1 + $0xd8] sm:$0xff]  ;;  %v1295_v31 = vand.u32 4294901760, %v353_v47  ;;  %v8328_v41 = vpack.c.bf16 %v1297_v35, %v1293_v11  ;;  %v8332_v58 = vsub.f32 %v356_v46, %v1297_v35  ;;  %v8361_v46 = vld [vmem:[%s10720_s1 + $0xf0] sm:$0xff] }
  0xcc   : > { %6605 = vmatprep.subr.bf16.mxu0 %v11070_v25  ;;  %v8270_v25 = vsub.f32 %v344_v14, %v1273_v42  ;;  %v8304_v14 = vand.u32 4294901760, %v332_v0  ;;  %v1299_v42 = vand.u32 4294901760, %v355_v50  ;;  %v1305_v53 = vand.u32 4294901760, %v360_v6 }
  0xcd   : > { %11081 = vst [vmem:[#allocation7_spill] sm:$0xff] %v8328_v41  ;;  %v8351_v32 = vsub.f32 %v353_v47, %v1295_v31  ;;  %v1376_v47 = vsub.f32 %v8236_v61, %v10790_v38  ;;  %v11088_v11 = vand.u32 4294901760, %v8254_v33 }
  0xce   : > { %v8347_v24 = vsub.f32 %v332_v0, %v8304_v14  ;;  %v8349_v30 = vpack.c.bf16 %v1299_v42, %v1295_v31  ;;  %v1364_v0 = vsub.f32 %v8234_v60, %v10789_v37  ;;  %v8375_v31 = vsub.f32 %v355_v50, %v1299_v42 }
  0xcf   : > { %6607 = vmatpush1.bf16.msra.mxu0 %v11071_v26  ;;  %v1287_v26 = vand.u32 4294901760, %v349_v22  ;;  %v11084_v37 = vand.u32 4294901760, %v8318_v62  ;;  %v1370_v50 = vsub.f32 %v8238_v1, %v11086_v19  ;;  %v11087_v42 = vand.u32 4294901760, %v8249_v27 }
  0xd0   : > { %6609 = vmatprep.subr.bf16.mxu0 %v8182_v28  ;;  %11082 = vst [vmem:[#allocation8_spill] sm:$0xff] %v8349_v30  ;;  %v1377_v38 = vand.u32 4294901760, %v1376_v47  ;;  %v1388_v35 = vsub.f32 %v8254_v33, %v11088_v11  ;;  %v11093_v11 = vand.u32 4294901760, %v8347_v24 }
  0xd1   : > { %v8308_v10 = vpack.c.bf16 %v1291_v4, %v1287_v26  ;;  %v8321_v8 = vsub.f32 %v349_v22, %v1287_v26  ;;  %v8344_v22 = vld [vmem:[%s10720_s1 + $0xf8] sm:$0xff]  ;;  %v8377_v26 = vpack.c.bf16 %v1305_v53, %v1301_v52  ;;  %v8383_v43 = vpack.c.bf16 %v11084_v37, %v1303_v59 }
  0xd2   : > { %1247 = vmatmul.mubr.f32.vlgmr.msra.gmra.mrb[0].mxu0 %v7828_v48  ;;  %v1382_v4 = vsub.f32 %v8249_v27, %v11087_v42  ;;  %v1365_v37 = vand.u32 4294901760, %v1364_v0  ;;  %v11090_v42 = vand.u32 4294901760, %v8339_v18  ;;  %v11091_v48 = vand.u32 4294901760, %v8344_v22 }
  0xd3   : > { %6611 = vmatpush1.bf16.msra.mxu0 %v8197_v16  ;;  %1349 = vmatprep.mubr.f32.mxu0 %v11051_v39  ;;  %11080 = vst [vmem:[#allocation6_spill] sm:$0xff] %v8308_v10  ;;  %11083 = vst [vmem:[#allocation9_spill] sm:$0xff] %v8377_v26  ;;  %v10809_v0 = vand.u32 4294901760, %v8268_v5 }
  0xd4   : > { %6613 = vmatprep.subr.bf16.mxu0 %v8200_v12  ;;  %11085 = vst [vmem:[#allocation10_spill] sm:$0xff] %v8383_v43  ;;  %v8410_v17 = vpack.c.bf16 %v11091_v48, %v11090_v42  ;;  %v11095_v42 = vand.u32 4294901760, %v8260_v63 }
  0xd6   : > { %11092 = vst [vmem:[#allocation11_spill] sm:$0xff] %v8410_v17  ;;  %v1406_v47 = vsub.f32 %v8260_v63, %v11095_v42 }
  0xd7   : > { %6615 = vmatpush1.bf16.msra.mxu0 %v8216_v36 }
  0xd8   : > { %6617 = vmatprep.subr.bf16.mxu0 %v8220_v40  ;;  %v11101_v40 = vand.u32 4294901760, %v8277_v56 }
  0xdb   : > { %6619 = vmatpush1.bf16.msra.mxu0 %v8241_v2  ;;  %v1407_v2 = vand.u32 4294901760, %v1406_v47  ;;  %v11102_v47 = vand.u32 4294901760, %v8288_v49 }
  0xdc   : > { %6621 = vmatprep.subr.bf16.mxu0 %v8252_v29 }
  0xdf   : > { %6623 = vmatpush1.bf16.msra.mxu0 %v8279_v13  ;;  %v11094_v13 = vand.u32 4294901760, %v8258_v44 }
  0xe0   : > { %6625 = vmatprep.subr.bf16.mxu0 %v8290_v57  ;;  %v1383_v57 = vand.u32 4294901760, %v1382_v4  ;;  %v11098_v4 = vand.u32 4294901760, %v8270_v25 }
  0xe1   : > { %v1394_v48 = vsub.f32 %v8258_v44, %v11094_v13  ;;  %v1412_v13 = vsub.f32 %v8268_v5, %v10809_v0 }
  0xe2   : > { %v1424_v42 = vsub.f32 %v8270_v25, %v11098_v4  ;;  %v10816_v4 = vand.u32 4294901760, %v8292_v23 }
  0xe3   : > { %6627 = vmatpush1.bf16.msra.mxu0 %v8308_v10  ;;  %v8404_v10 = vsub.f32 %v358_v45, %v1301_v52  ;;  %v1371_v52 = vand.u32 4294901760, %v1370_v50  ;;  %v1389_v45 = vand.u32 4294901760, %v1388_v35  ;;  %v11099_v35 = vand.u32 4294901760, %v8273_v7 }
  0xe4   : > { %6629 = vmatprep.subr.bf16.mxu0 %v8328_v41  ;;  %v11089_v41 = vand.u32 4294901760, %v8256_v34 }
  0xe5   : > { %v6642_v0 = vpack.c.bf16 %v1383_v57, %v1371_v52  ;;  %v1436_v57 = vsub.f32 %v8277_v56, %v11101_v40  ;;  %v1448_v52 = vsub.f32 %v8288_v49, %v11102_v47 }
  0xe6   : > { %v1400_v19 = vsub.f32 %v8256_v34, %v11089_v41  ;;  %v1353_v41 = vsub.f32 %v8347_v24, %v11093_v11 }
  0xe7   : > { %6631 = vmatpush1.bf16.msra.mxu0 %v8349_v30  ;;  %v8414_v30 = vsub.f32 %v360_v6, %v1305_v53  ;;  %v11096_v6 = vand.u32 4294901760, %v8356_v15  ;;  %v11097_v53 = vand.u32 4294901760, %v8361_v46  ;;  %v1437_v47 = vand.u32 4294901760, %v1436_v57 }
  0xe8   : > { %6633 = vmatprep.subr.bf16.mxu0 %v8377_v26  ;;  %v6640_v26 = vpack.c.bf16 %v1377_v38, %v1365_v37  ;;  %v1401_v50 = vand.u32 4294901760, %v1400_v19  ;;  %v1354_v38 = vand.u32 4294901760, %v1353_v41  ;;  %v1418_v37 = vsub.f32 %v8273_v7, %v11099_v35 }
  0xe9   : > { %v8432_v11 = vpack.c.bf16 %v11097_v53, %v11096_v6  ;;  %v8444_v6 = vsub.f32 %v8313_v54, %v1303_v59  ;;  %v11100_v19 = vand.u32 4294901760, %v8275_v21  ;;  %v10817_v54 = vand.u32 4294901760, %v8294_v3 }
  0xea   : > { %v6644_v29 = vpack.c.bf16 %v1401_v50, %v1389_v45  ;;  %v10818_v41 = vand.u32 4294901760, %v8306_v20  ;;  %v1413_v35 = vand.u32 4294901760, %v1412_v13  ;;  %v10820_v45 = vand.u32 4294901760, %v8321_v8 }
  0xeb   : > { %6635 = vmatpush1.bf16.msra.mxu0 %v8383_v43  ;;  %v1430_v53 = vsub.f32 %v8275_v21, %v11100_v19  ;;  %v1425_v43 = vand.u32 4294901760, %v1424_v42  ;;  %v10819_v50 = vand.u32 4294901760, %v8323_v55  ;;  %v1454_v42 = vsub.f32 %v8294_v3, %v10817_v54 }
  0xec   : > { %6637 = vmatprep.subr.bf16.mxu0 %v8410_v17  ;;  %v1395_v17 = vand.u32 4294901760, %v1394_v48  ;;  %v1419_v48 = vand.u32 4294901760, %v1418_v37  ;;  %v11103_v37 = vand.u32 4294901760, %v8296_v9  ;;  %v11105_v54 = vand.u32 4294901760, %v8339_v18 }
  0xed   : > { %v1431_v19 = vand.u32 4294901760, %v1430_v53  ;;  %v1478_v13 = vsub.f32 %v8323_v55, %v10819_v50 }
  0xee   : > { %v6646_v59 = vpack.c.bf16 %v1407_v2, %v1395_v17  ;;  %v1460_v53 = vsub.f32 %v8296_v9, %v11103_v37  ;;  %v1472_v2 = vsub.f32 %v8306_v20, %v10818_v41  ;;  %v11104_v17 = vand.u32 4294901760, %v8318_v62 }
  0xef   : > { %6639 = vmatpush1.bf16.msra.mxu0 %v8432_v11  ;;  %v8488_v40 = vsub.f32 %v8339_v18, %v11105_v54  ;;  %v6650_v37 = vpack.c.bf16 %v1431_v19, %v1419_v48  ;;  %v1466_v41 = vsub.f32 %v8321_v8, %v10820_v45  ;;  %v10821_v45 = vand.u32 4294901760, %v8404_v10 }
  0xf0   : > { %6641 = vmatprep.subr.bf16.mxu0 %v6640_v26  ;;  %v1442_v26 = vsub.f32 %v8292_v23, %v10816_v4  ;;  %v1449_v4 = vand.u32 4294901760, %v1448_v52  ;;  %v1455_v52 = vand.u32 4294901760, %v1454_v42  ;;  %v1461_v48 = vand.u32 4294901760, %v1460_v53 }
  0xf1   : > { %v1473_v19 = vand.u32 4294901760, %v1472_v2  ;;  %v11109_v18 = vand.u32 4294901760, %v8356_v15  ;;  %v1467_v42 = vand.u32 4294901760, %v1466_v41  ;;  %v1479_v53 = vand.u32 4294901760, %v1478_v13 }
  0xf2   : > { %1355 = vmatmul.mubr.f32.vlgmr.msra.gmra.mrb[0].mxu0 %v1354_v38  ;;  %v8483_v38 = vsub.f32 %v8318_v62, %v11104_v17  ;;  %v11106_v62 = vand.u32 4294901760, %v8330_v51  ;;  %v1443_v57 = vand.u32 4294901760, %v1442_v26  ;;  %v11108_v17 = vand.u32 4294901760, %v8344_v22 }
  0xf3   : > { %6643 = vmatpush1.bf16.msra.mxu0 %v6642_v0  ;;  %1585 = vmatprep.mubr.f32.mxu0 %v11051_v39  ;;  %v6648_v0 = vpack.c.bf16 %v1425_v43, %v1413_v35  ;;  %v8514_v54 = vsub.f32 %v8356_v15, %v11109_v18  ;;  %v6656_v18 = vpack.c.bf16 %v1473_v19, %v1461_v48  ;;  %v11113_v13 = vand.u32 4294901760, %v8414_v30 }
  0xf4   : > { %6645 = vmatprep.subr.bf16.mxu0 %v6644_v29  ;;  %v1484_v43 = vsub.f32 %v8330_v51, %v11106_v62  ;;  %v11107_v29 = vand.u32 4294901760, %v8332_v58  ;;  %v8507_v50 = vsub.f32 %v8344_v22, %v11108_v17  ;;  %v6652_v62 = vpack.c.bf16 %v1449_v4, %v1437_v47 }
  0xf5   : > { %v11111_v4 = vand.u32 4294901760, %v8351_v32  ;;  %v11112_v47 = vand.u32 4294901760, %v8375_v31  ;;  %v6654_v15 = vpack.c.bf16 %v1455_v52, %v1443_v57  ;;  %v1508_v41 = vsub.f32 %v8404_v10, %v10821_v45 }
  0xf6   : > { %v1496_v35 = vsub.f32 %v8332_v58, %v11107_v29  ;;  %v1485_v22 = vand.u32 4294901760, %v1484_v43  ;;  %v1513_v29 = vand.u32 4294901760, %v8444_v6  ;;  %v1520_v43 = vsub.f32 %v8414_v30, %v11113_v13 }
  0xf7   : > { %6647 = vmatpush1.bf16.msra.mxu0 %v6646_v59  ;;  %v11110_v59 = vand.u32 4294901760, %v8361_v46  ;;  %v1502_v17 = vsub.f32 %v8375_v31, %v11112_v47  ;;  %v1509_v13 = vand.u32 4294901760, %v1508_v41 }
  0xf8   : > { %6649 = vmatprep.subr.bf16.mxu0 %v6648_v0  ;;  %v1497_v2 = vand.u32 4294901760, %v1496_v35  ;;  %v1490_v0 = vsub.f32 %v8351_v32, %v11111_v4  ;;  %v10822_v35 = vand.u32 4294901760, %v8488_v40  ;;  %v1514_v19 = vsub.f32 %v8444_v6, %v1513_v29 }
  0xf9   : > { %v8519_v26 = vsub.f32 %v8361_v46, %v11110_v59  ;;  %v10823_v46 = vand.u32 4294901760, %v8483_v38  ;;  %v10824_v59 = vand.u32 4294901760, %v8507_v50  ;;  %v1503_v48 = vand.u32 4294901760, %v1502_v17 }
  0xfa   : > { %v6660_v57 = vpack.c.bf16 %v1497_v2, %v1485_v22  ;;  %v1491_v52 = vand.u32 4294901760, %v1490_v0  ;;  %v1537_v4 = vand.u32 4294901760, %v8514_v54  ;;  %v1521_v45 = vand.u32 4294901760, %v1520_v43 }
  0xfb   : > { %6651 = vmatpush1.bf16.msra.mxu0 %v6650_v37  ;;  %v6658_v37 = vpack.c.bf16 %v1479_v53, %v1467_v42  ;;  %v1549_v47 = vand.u32 4294901760, %v8519_v26  ;;  %v1532_v42 = vsub.f32 %v8488_v40, %v10822_v35  ;;  %v1544_v53 = vsub.f32 %v8507_v50, %v10824_v59 }
  0xfc   : > { %6653 = vmatprep.subr.bf16.mxu0 %v6652_v62  ;;  %v1526_v62 = vsub.f32 %v8483_v38, %v10823_v46  ;;  %v6662_v22 = vpack.c.bf16 %v1503_v48, %v1491_v52  ;;  %v1515_v2 = vand.u32 4294901760, %v1514_v19  ;;  %v1538_v17 = vsub.f32 %v8514_v54, %v1537_v4 }
  0xfd   : > { %v1533_v41 = vand.u32 4294901760, %v1532_v42  ;;  %v1545_v43 = vand.u32 4294901760, %v1544_v53  ;;  %v6672_v48 = vpack.c.bf16 %v8236_v61, %v8234_v60  ;;  %v6674_v19 = vpack.c.bf16 %v8249_v27, %v8238_v1 }
  0xfe   : > { %v1527_v0 = vand.u32 4294901760, %v1526_v62  ;;  %v1539_v46 = vand.u32 4294901760, %v1538_v17  ;;  %v6686_v62 = vpack.c.bf16 %v8294_v3, %v8292_v23  ;;  %v6690_v42 = vpack.c.bf16 %v8323_v55, %v8321_v8 }
  0xff   : > { %6655 = vmatpush1.bf16.msra.mxu0 %v6654_v15  ;;  %v1550_v15 = vsub.f32 %v8519_v26, %v1549_v47  ;;  %v6692_v53 = vpack.c.bf16 %v8332_v58, %v8330_v51  ;;  %v6700_v17 = vpack.c.bf16 %v8507_v50, %v8488_v40 }
 0x100   : > { %6657 = vmatprep.subr.bf16.mxu0 %v6656_v18  ;;  %v6664_v18 = vpack.c.bf16 %v1521_v45, %v1509_v13  ;;  %v6666_v35 = vpack.c.bf16 %v1527_v0, %v1515_v2  ;;  %v6676_v45 = vpack.c.bf16 %v8256_v34, %v8254_v33  ;;  %v6688_v13 = vpack.c.bf16 %v8306_v20, %v8296_v9 }
 0x101   : > { %v1551_v59 = vand.u32 4294901760, %v1550_v15  ;;  %v6696_v2 = vpack.c.bf16 %v8414_v30, %v8404_v10  ;;  %v6698_v0 = vpack.c.bf16 %v8483_v38, %v8444_v6  ;;  %v6702_v15 = vpack.c.bf16 %v8519_v26, %v8514_v54  ;;  %v5620_v6 = vld [vmem:[%s10720_s1 + $0x228] sm:$0xff] }
 0x103   : > { %6659 = vmatpush1.bf16.msra.mxu0 %v6658_v37  ;;  %v6668_v37 = vpack.c.bf16 %v1545_v43, %v1533_v41  ;;  %v6670_v52 = vpack.c.bf16 %v1551_v59, %v1539_v46  ;;  %v6680_v46 = vpack.c.bf16 %v8270_v25, %v8268_v5  ;;  %v6684_v59 = vpack.c.bf16 %v8288_v49, %v8277_v56  ;;  %v11115_v41 = vld [vmem:[#allocation20_spill] sm:$0xff]  ;;  %v11116_v43 = vld [vmem:[#allocation21_spill] sm:$0xff] }
 0x104   : > { %6661 = vmatprep.subr.bf16.mxu0 %v6660_v57  ;;  %v6678_v57 = vpack.c.bf16 %v8260_v63, %v8258_v44 }
 0x107   : > { %6663 = vmatpush1.bf16.msra.mxu0 %v6662_v22  ;;  %v6694_v22 = vpack.c.bf16 %v8375_v31, %v8351_v32 }
 0x108   : > { %6665 = vmatprep.subr.bf16.mxu0 %v6664_v18  ;;  %v11114_v18 = vld [vmem:[#allocation18_spill] sm:$0xff] }
 0x10b   : > { %6667 = vmatpush1.bf16.msra.mxu0 %v6666_v35  ;;  %v6682_v35 = vpack.c.bf16 %v8275_v21, %v8273_v7 }
 0x10c   : > { %6669 = vmatprep.subr.bf16.mxu0 %v6668_v37  ;;  %v11117_v37 = vld [vmem:[#allocation4_spill] sm:$0xff] }
 0x10f   : > { %6671 = vmatpush1.bf16.msra.mxu0 %v6670_v52  ;;  %v11118_v52 = vld [vmem:[#allocation5_spill] sm:$0xff] }
 0x110   : > { %6673 = vmatprep.subr.bf16.mxu0 %v6672_v48  ;;  %v11119_v48 = vld [vmem:[#allocation6_spill] sm:$0xff] }
 0x112   : > { %1587 = vmatmul.mubr.f32.vlgmr.msra.gmra.mrb[0].mxu0 %v8304_v14 }
 0x113   : > { %6675 = vmatpush1.bf16.msra.mxu0 %v6674_v19  ;;  %1721 = vmatprep.mubr.f32.mxu0 %v11051_v39  ;;  %v11120_v19 = vld [vmem:[#allocation7_spill] sm:$0xff] }
 0x114   : > { %6677 = vmatprep.subr.bf16.mxu0 %v6676_v45  ;;  %v11121_v45 = vld [vmem:[#allocation8_spill] sm:$0xff] }
 0x117   : > { %6679 = vmatpush1.bf16.msra.mxu0 %v6678_v57  ;;  %v11122_v57 = vld [vmem:[#allocation9_spill] sm:$0xff] }
 0x118   : > { %6681 = vmatprep.subr.bf16.mxu0 %v6680_v46  ;;  %v11123_v46 = vld [vmem:[#allocation10_spill] sm:$0xff] }
 0x11b   : > { %6683 = vmatpush1.bf16.msra.mxu0 %v6682_v35  ;;  %v11124_v35 = vld [vmem:[#allocation11_spill] sm:$0xff] }
 0x11c   : > { %6685 = vmatprep.subr.bf16.mxu0 %v6684_v59  ;;  %v11125_v59 = vand.u32 4294901760, %v8234_v60  ;;  %v11132_v60 = vand.u32 4294901760, %v8258_v44  ;;  %v11138_v44 = vand.u32 4294901760, %v8277_v56  ;;  %v11145_v56 = vand.u32 4294901760, %v8323_v55 }
 0x11d   : > { %v11152_v55 = vand.u32 4294901760, %v8483_v38 }
 0x11f   : > { %6687 = vmatpush1.bf16.msra.mxu0 %v6686_v62  ;;  %v11126_v62 = vand.u32 4294901760, %v8236_v61  ;;  %v11133_v61 = vand.u32 4294901760, %v8260_v63  ;;  %v11139_v63 = vand.u32 4294901760, %v8288_v49  ;;  %v11146_v49 = vand.u32 4294901760, %v8330_v51 }
 0x120   : > { %6689 = vmatprep.subr.bf16.mxu0 %v6688_v13  ;;  %v6762_v51 = vpack.c.bf16 %v11152_v55, %v1513_v29  ;;  %v2150_v29 = vand.u32 4294901760, %v5620_v6 }
 0x121   : > { %v6736_v13 = vpack.c.bf16 %v11126_v62, %v11125_v59  ;;  %v6742_v59 = vpack.c.bf16 %v11133_v61, %v11132_v60 }
 0x123   : > { %6691 = vmatpush1.bf16.msra.mxu0 %v6690_v42  ;;  %v11127_v42 = vand.u32 4294901760, %v8238_v1  ;;  %v11134_v1 = vand.u32 4294901760, %v8268_v5  ;;  %v11141_v5 = vand.u32 4294901760, %v8294_v3  ;;  %v11148_v3 = vand.u32 4294901760, %v8351_v32 }
 0x124   : > { %6693 = vmatprep.subr.bf16.mxu0 %v6692_v53  ;;  %v11128_v53 = vand.u32 4294901760, %v8249_v27  ;;  %v11135_v27 = vand.u32 4294901760, %v8270_v25  ;;  %v11142_v25 = vand.u32 4294901760, %v8296_v9  ;;  %v11149_v9 = vand.u32 4294901760, %v8375_v31  ;;  %v5617_v31 = vld [vmem:[%s10720_s1 + $0x210] sm:$0xff] }
 0x125   : > { %v11154_v32 = vand.u32 4294901760, %v8507_v50  ;;  %v5622_v50 = vld [vmem:[%s10720_s1 + $0x238] sm:$0xff]  ;;  %v2148_v38 = vand.u32 4294901760, %v5617_v31 }
 0x126   : > { %v2154_v26 = vand.u32 4294901760, %v5622_v50 }
 0x127   : > { %6695 = vmatpush1.bf16.msra.mxu0 %v6694_v22  ;;  %v6738_v22 = vpack.c.bf16 %v11128_v53, %v11127_v42  ;;  %v11140_v42 = vand.u32 4294901760, %v8292_v23  ;;  %v11147_v23 = vand.u32 4294901760, %v8332_v58  ;;  %v11153_v58 = vand.u32 4294901760, %v8488_v40 }
 0x128   : > { %6697 = vmatprep.subr.bf16.mxu0 %v6696_v2  ;;  %v11129_v2 = vand.u32 4294901760, %v8254_v33  ;;  %v6744_v33 = vpack.c.bf16 %v11135_v27, %v11134_v1 }
 0x129   : > { %v6750_v53 = vpack.c.bf16 %v11141_v5, %v11140_v42  ;;  %v6764_v60 = vpack.c.bf16 %v11154_v32, %v11153_v58  ;;  %v2108_v58 = vld [vmem:[#allocation2 + $0x2] sm:$0xff] }
 0x12b   : > { %6699 = vmatpush1.bf16.msra.mxu0 %v6698_v0  ;;  %v11130_v0 = vand.u32 4294901760, %v8256_v34  ;;  %v11136_v34 = vand.u32 4294901760, %v8273_v7  ;;  %v11143_v7 = vand.u32 4294901760, %v8306_v20  ;;  %v11150_v20 = vand.u32 4294901760, %v8404_v10 }
 0x12c   : > { %6701 = vmatprep.subr.bf16.mxu0 %v6700_v17  ;;  %v6766_v10 = vpack.c.bf16 %v1549_v47, %v1537_v4  ;;  %v5619_v4 = vld [vmem:[%s10720_s1 + $0x220] sm:$0xff]  ;;  %v5621_v47 = vld [vmem:[%s10720_s1 + $0x230] sm:$0xff] }
 0x12d   : > { %v6740_v17 = vpack.c.bf16 %v11130_v0, %v11129_v2  ;;  %v6756_v0 = vpack.c.bf16 %v11147_v23, %v11146_v49  ;;  %v8783_v23 = vsub.f32 %v5620_v6, %v2150_v29 }
 0x12f   : > { %6703 = vmatpush1.bf16.msra.mxu0 %v6702_v15  ;;  %v11131_v15 = vand.u32 4294901760, %v8347_v24 }
 0x130   : > { %6705 = vmatprep.subr.bf16.mxu0 %v8182_v28 }
 0x132   : > { %1724 = vmatmul.mubr.f32.vlgmr.msra.gmra.mrb[0].mxu0 %v8347_v24  ;;  %v11137_v24 = vand.u32 4294901760, %v8275_v21  ;;  %v11144_v21 = vand.u32 4294901760, %v8321_v8  ;;  %v11151_v8 = vand.u32 4294901760, %v8414_v30  ;;  %v5615_v30 = vld [vmem:[%s10720_s1 + $0x200] sm:$0xff] }
 0x133   : > { %6707 = vmatpush1.bf16.msra.mxu0 %v8197_v16  ;;  %1826 = vmatprep.mubr.f32.mxu0 %v11051_v39  ;;  %v2144_v40 = vand.u32 4294901760, %v5615_v30 }
 0x134   : > { %6709 = vmatprep.subr.bf16.mxu0 %v8200_v12  ;;  %v6746_v62 = vpack.c.bf16 %v11137_v24, %v11136_v34  ;;  %v6754_v2 = vpack.c.bf16 %v11145_v56, %v11144_v21  ;;  %v5627_v24 = vld [vmem:[%s10720_s1 + $0x260] sm:$0xff]  ;;  %v8778_v21 = vsub.f32 %v5617_v31, %v2148_v38 }
 0x135   : > { %v8767_v42 = vsub.f32 %v5615_v30, %v2144_v40 }
 0x137   : > { %6711 = vmatpush1.bf16.msra.mxu0 %v8216_v36 }
 0x138   : > { %6713 = vmatprep.subr.bf16.mxu0 %v11114_v18 }
 0x13b   : > { %6715 = vmatpush1.bf16.msra.mxu0 %v11115_v41 }
 0x13c   : > { %6717 = vmatprep.subr.bf16.mxu0 %v11116_v43 }
 0x13f   : > { %6719 = vmatpush1.bf16.msra.mxu0 %v11117_v37 }
 0x140   : > { %6721 = vmatprep.subr.bf16.mxu0 %v11118_v52 }
 0x143   : > { %6723 = vmatpush1.bf16.msra.mxu0 %v11119_v48 }
 0x144   : > { %6725 = vmatprep.subr.bf16.mxu0 %v11120_v19 }
 0x147   : > { %6727 = vmatpush1.bf16.msra.mxu0 %v11121_v45 }
 0x148   : > { %6729 = vmatprep.subr.bf16.mxu0 %v11122_v57 }
 0x14b   : > { %6731 = vmatpush1.bf16.msra.mxu0 %v11123_v46 }
 0x14c   : > { %6733 = vmatprep.subr.bf16.mxu0 %v11124_v35 }
 0x14f   : > { %6735 = vmatpush1.bf16.msra.mxu0 %v8432_v11 }
 0x150   : > { %6737 = vmatprep.subr.bf16.mxu0 %v6736_v13  ;;  %v6748_v13 = vpack.c.bf16 %v11139_v63, %v11138_v44  ;;  %v5634_v44 = vld [vmem:[%s10720_s1 + $0x298] sm:$0xff] }
 0x151   : > { %v2178_v49 = vand.u32 4294901760, %v5634_v44 }
 0x152   : > { %1830 = vmatmul.mubr.f32.vlgmr.msra.gmra.mrb[0].mxu0 %v11131_v15  ;;  %v6760_v15 = vpack.c.bf16 %v11151_v8, %v11150_v20  ;;  %v5638_v20 = vld [vmem:[%s10720_s1 + $0x2b8] sm:$0xff] }
 0x153   : > { %6739 = vmatpush1.bf16.msra.mxu0 %v6738_v22  ;;  %1996 = vmatprep.mubr.f32.mxu0 %v11051_v39  ;;  %v6752_v22 = vpack.c.bf16 %v11143_v7, %v11142_v25  ;;  %v5631_v7 = vld [vmem:[%s10720_s1 + $0x280] sm:$0xff]  ;;  %v2186_v6 = vand.u32 4294901760, %v5638_v20 }
 0x154   : > { %6741 = vmatprep.subr.bf16.mxu0 %v6740_v17  ;;  %v6758_v17 = vpack.c.bf16 %v11149_v9, %v11148_v3  ;;  %v2176_v55 = vand.u32 4294901760, %v5631_v7 }
 0x157   : > { %6743 = vmatpush1.bf16.msra.mxu0 %v6742_v59 }
 0x158   : > { %6745 = vmatprep.subr.bf16.mxu0 %v6744_v33 }
 0x15b   : > { %6747 = vmatpush1.bf16.msra.mxu0 %v6746_v62  ;;  %v5632_v62 = vld [vmem:[%s10720_s1 + $0x288] sm:$0xff] }
 0x15c   : > { %6749 = vmatprep.subr.bf16.mxu0 %v6748_v13 }
 0x15f   : > { %6751 = vmatpush1.bf16.msra.mxu0 %v6750_v53  ;;  %v2168_v53 = vand.u32 4294901760, %v5627_v24 }
 0x160   : > { %6753 = vmatprep.subr.bf16.mxu0 %v6752_v22  ;;  %v5633_v22 = vld [vmem:[%s10720_s1 + $0x290] sm:$0xff] }
 0x163   : > { %6755 = vmatpush1.bf16.msra.mxu0 %v6754_v2  ;;  %v2174_v2 = vand.u32 4294901760, %v5632_v62 }
 0x164   : > { %6757 = vmatprep.subr.bf16.mxu0 %v6756_v0  ;;  %v8785_v0 = vsub.f32 %v5622_v50, %v2154_v26  ;;  %v8821_v50 = vsub.f32 %v5627_v24, %v2168_v53 }
 0x165   : > { %v8819_v30 = vpack.c.bf16 %v2178_v49, %v2174_v2 }
 0x167   : > { %6759 = vmatpush1.bf16.msra.mxu0 %v6758_v17  ;;  %v5636_v17 = vld [vmem:[%s10720_s1 + $0x2a8] sm:$0xff]  ;;  %11161 = vst [vmem:[#allocation24_spill] sm:$0xff] %v8819_v30 }
 0x168   : > { %6761 = vmatprep.subr.bf16.mxu0 %v6760_v15  ;;  %v2182_v31 = vand.u32 4294901760, %v5636_v17 }
 0x16b   : > { %6763 = vmatpush1.bf16.msra.mxu0 %v6762_v51  ;;  %v2180_v51 = vand.u32 4294901760, %v5633_v22 }
 0x16c   : > { %6765 = vmatprep.subr.bf16.mxu0 %v6764_v60 }
 0x16f   : > { %6767 = vmatpush1.bf16.msra.mxu0 %v6766_v10 }
 0x170   : > { %6769 = vmatprep.subr.bf16.mxu0 %v8182_v28  ;;  %v5616_v28 = vld [vmem:[%s10720_s1 + $0x208] sm:$0xff] }
 0x172   : > { %1998 = vmatmul.mubr.f32.vlgmr.msra.gmra.mrb[0].mxu0 %v8304_v14 }
 0x173   : > { %6771 = vmatpush1.bf16.msra.mxu0 %v8197_v16  ;;  %2100 = vmatprep.mubr.f32.mxu0 %v11051_v39  ;;  %v5618_v16 = vld [vmem:[%s10720_s1 + $0x218] sm:$0xff] }
 0x174   : > { %6773 = vmatprep.subr.bf16.mxu0 %v8200_v12  ;;  %v2142_v12 = vand.u32 4294901760, %v5616_v28 }
 0x176   : > { %v8763_v63 = vsub.f32 %v5616_v28, %v2142_v12 }
 0x177   : > { %6775 = vmatpush1.bf16.msra.mxu0 %v8216_v36  ;;  %v2146_v36 = vand.u32 4294901760, %v5618_v16 }
 0x178   : > { %6777 = vmatprep.subr.bf16.mxu0 %v11114_v18  ;;  %v5624_v18 = vld [vmem:[%s10720_s1 + $0x248] sm:$0xff] }
 0x179   : > { %v8711_v54 = vpack.c.bf16 %v2146_v36, %v2142_v12  ;;  %v8765_v13 = vsub.f32 %v5618_v16, %v2146_v36  ;;  %v5635_v16 = vld [vmem:[%s10720_s1 + $0x2a0] sm:$0xff]  ;;  %v5637_v12 = vld [vmem:[%s10720_s1 + $0x2b0] sm:$0xff] }
 0x17b   : > { %6779 = vmatpush1.bf16.msra.mxu0 %v11115_v41  ;;  %v5626_v41 = vld [vmem:[%s10720_s1 + $0x258] sm:$0xff] }
 0x17c   : > { %6781 = vmatprep.subr.bf16.mxu0 %v11116_v43  ;;  %v8726_v43 = vpack.c.bf16 %v2148_v38, %v2144_v40  ;;  %v8825_v38 = vsub.f32 %v5632_v62, %v2174_v2  ;;  %v8868_v62 = vld [vmem:[%s10720_s1 + $0x2e8] sm:$0xff]  ;;  %v8890_v2 = vld [vmem:[%s10720_s1 + $0x2f0] sm:$0xff] }
 0x17f   : > { %6783 = vmatpush1.bf16.msra.mxu0 %v11117_v37  ;;  %v2152_v37 = vand.u32 4294901760, %v5619_v4 }
 0x180   : > { %6785 = vmatprep.subr.bf16.mxu0 %v11118_v52  ;;  %v2156_v52 = vand.u32 4294901760, %v5621_v47 }
 0x181   : > { %v8787_v3 = vsub.f32 %v5619_v4, %v2152_v37  ;;  %v8833_v4 = vand.u32 4294901760, %v2108_v58 }
 0x182   : > { %v8745_v61 = vpack.c.bf16 %v2156_v52, %v2152_v37  ;;  %v8789_v9 = vsub.f32 %v5621_v47, %v2156_v52  ;;  %v8835_v47 = vsub.f32 %v5634_v44, %v2178_v49  ;;  %v2188_v37 = vand.u32 4294901760, %v5637_v12  ;;  %v8842_v52 = vld [vmem:[%s10720_s1 + $0x2c0] sm:$0xff]  ;;  %v8873_v44 = vld [vmem:[%s10720_s1 + $0x2f8] sm:$0xff] }
 0x183   : > { %6787 = vmatpush1.bf16.msra.mxu0 %v11119_v48  ;;  %v8729_v48 = vpack.c.bf16 %v2154_v26, %v2150_v29  ;;  %v5640_v29 = vld [vmem:[%s10720_s1 + $0x2c8] sm:$0xff]  ;;  %v5642_v26 = vld [vmem:[%s10720_s1 + $0x2d8] sm:$0xff]  ;;  %11162 = vst [vmem:[#allocation25_spill] sm:$0xff] %v8833_v4  ;;  %v2192_v24 = vand.u32 4294901760, %v8842_v52  ;;  %v10830_v49 = vand.u32 4294901760, %v8767_v42 }
 0x184   : > { %6789 = vmatprep.subr.bf16.mxu0 %v11120_v19  ;;  %v2158_v19 = vand.u32 4294901760, %v5624_v18 }
 0x186   : > { %v8797_v8 = vsub.f32 %v5624_v18, %v2158_v19  ;;  %v8837_v18 = vpack.c.bf16 %v2180_v51, %v2176_v55 }
 0x187   : > { %6791 = vmatpush1.bf16.msra.mxu0 %v11121_v45  ;;  %v2162_v45 = vand.u32 4294901760, %v5626_v41 }
 0x188   : > { %6793 = vmatprep.subr.bf16.mxu0 %v11122_v57  ;;  %v5623_v57 = vld [vmem:[%s10720_s1 + $0x240] sm:$0xff]  ;;  %11163 = vst [vmem:[#allocation27_spill] sm:$0xff] %v8837_v18 }
 0x189   : > { %v2160_v59 = vand.u32 4294901760, %v5623_v57  ;;  %v8749_v27 = vpack.c.bf16 %v2162_v45, %v2158_v19  ;;  %v8799_v15 = vsub.f32 %v5626_v41, %v2162_v45  ;;  %v2184_v41 = vand.u32 4294901760, %v5635_v16  ;;  %v8847_v19 = vld [vmem:[%s10720_s1 + $0x2d0] sm:$0xff] }
 0x18a   : > { %v8850_v45 = vsub.f32 %v5631_v7, %v2176_v55 }
 0x18b   : > { %6795 = vmatpush1.bf16.msra.mxu0 %v11123_v46  ;;  %v5625_v46 = vld [vmem:[%s10720_s1 + $0x250] sm:$0xff]  ;;  %11155 = vst [vmem:[#allocation12_spill] sm:$0xff] %v8749_v27  ;;  %v8802_v32 = vsub.f32 %v5623_v57, %v2160_v59  ;;  %v8852_v57 = vsub.f32 %v5633_v22, %v2180_v51  ;;  %v8880_v7 = vsub.f32 %v5635_v16, %v2184_v41  ;;  %v8885_v22 = vld [vmem:[%s10720_s1 + $0x2e0] sm:$0xff]  ;;  %v11168_v51 = vand.u32 4294901760, %v8783_v23 }
 0x18c   : > { %6797 = vmatprep.subr.bf16.mxu0 %v11124_v35  ;;  %v5630_v35 = vld [vmem:[%s10720_s1 + $0x278] sm:$0xff]  ;;  %v2164_v1 = vand.u32 4294901760, %v5625_v46  ;;  %v8904_v16 = vsub.f32 %v5637_v12, %v2188_v37  ;;  %v2259_v12 = vsub.f32 %v8767_v42, %v10830_v49 }
 0x18d   : > { %v2170_v34 = vand.u32 4294901760, %v5630_v35 }
 0x18e   : > { %v8770_v5 = vpack.c.bf16 %v2164_v1, %v2160_v59  ;;  %v8804_v60 = vsub.f32 %v5625_v46, %v2164_v1  ;;  %v10825_v46 = vand.u32 4294901760, %v8763_v63  ;;  %v8859_v59 = vsub.f32 %v5636_v17, %v2182_v31 }
 0x18f   : > { %6799 = vmatpush1.bf16.msra.mxu0 %v8432_v11  ;;  %v5628_v11 = vld [vmem:[%s10720_s1 + $0x268] sm:$0xff]  ;;  %v8817_v36 = vsub.f32 %v5630_v35, %v2170_v34  ;;  %v8857_v35 = vpack.c.bf16 %v2186_v6, %v2182_v31  ;;  %v2190_v1 = vand.u32 4294901760, %v5640_v29  ;;  %v10833_v17 = vand.u32 4294901760, %v8778_v21 }
 0x190   : > { %6801 = vmatprep.subr.bf16.mxu0 %v8711_v54  ;;  %v2166_v33 = vand.u32 4294901760, %v5628_v11  ;;  %11156 = vst [vmem:[#allocation13_spill] sm:$0xff] %v8770_v5 }
 0x191   : > { %11160 = vst [vmem:[#allocation19_spill] sm:$0xff] %v8817_v36  ;;  %11164 = vst [vmem:[#allocation28_spill] sm:$0xff] %v8857_v35 }
 0x192   : > { %2102 = vmatmul.mubr.f32.vlgmr.msra.gmra.mrb[0].mxu0 %v8304_v14  ;;  %v5629_v14 = vld [vmem:[%s10720_s1 + $0x270] sm:$0xff]  ;;  %v8781_v56 = vpack.c.bf16 %v2170_v34, %v2166_v33  ;;  %v8806_v10 = vsub.f32 %v5628_v11, %v2166_v33  ;;  %v10826_v11 = vand.u32 4294901760, %v8765_v13  ;;  %v2194_v33 = vand.u32 4294901760, %v5642_v26 }
 0x193   : > { %6803 = vmatpush1.bf16.msra.mxu0 %v8726_v43  ;;  %2238 = vmatprep.mubr.f32.mxu0 %v11051_v39  ;;  %v2172_v25 = vand.u32 4294901760, %v5629_v14  ;;  %v8861_v34 = vsub.f32 %v5638_v20, %v2186_v6  ;;  %v2253_v20 = vsub.f32 %v8763_v63, %v10825_v46  ;;  %v11171_v6 = vand.u32 4294901760, %v8873_v44 }
 0x194   : > { %6805 = vmatprep.subr.bf16.mxu0 %v8729_v48  ;;  %11157 = vst [vmem:[#allocation14_spill] sm:$0xff] %v8781_v56  ;;  %11158 = vst [vmem:[#allocation15_spill] sm:$0xff] %v8806_v10  ;;  %v2265_v55 = vsub.f32 %v8765_v13, %v10826_v11  ;;  %v8906_v31 = vpack.c.bf16 %v2194_v33, %v2190_v1 }
 0x195   : > { %v8808_v28 = vpack.c.bf16 %v2172_v25, %v2168_v53  ;;  %v8823_v40 = vsub.f32 %v5629_v14, %v2172_v25  ;;  %v10827_v14 = vand.u32 4294901760, %v8847_v19  ;;  %v8876_v53 = vsub.f32 %v2108_v58, %v8833_v4 }
 0x196   : > { %v8878_v25 = vpack.c.bf16 %v2188_v37, %v2184_v41  ;;  %11166 = vst [vmem:[#allocation20_spill] sm:$0xff] %v8906_v31  ;;  %v2271_v37 = vsub.f32 %v8778_v21, %v10833_v17  ;;  %v2266_v11 = vand.u32 4294901760, %v2265_v55  ;;  %v2277_v58 = vsub.f32 %v8783_v23, %v11168_v51 }
 0x197   : > { %6807 = vmatpush1.bf16.msra.mxu0 %v8745_v61  ;;  %11159 = vst [vmem:[#allocation16_spill] sm:$0xff] %v8808_v28  ;;  %v8912_v46 = vpack.c.bf16 %v10827_v14, %v2192_v24  ;;  %v2254_v14 = vand.u32 4294901760, %v2253_v20  ;;  %v11170_v17 = vand.u32 4294901760, %v8868_v62  ;;  %v10846_v20 = vand.u32 4294901760, %v8797_v8 }
 0x198   : > { %6809 = vmatprep.subr.bf16.mxu0 %v8749_v27  ;;  %11165 = vst [vmem:[#allocation18_spill] sm:$0xff] %v8878_v25  ;;  %v11173_v51 = vand.u32 4294901760, %v8876_v53  ;;  %v11181_v27 = vand.u32 4294901760, %v8806_v10 }
 0x199   : > { %11167 = vst [vmem:[#allocation21_spill] sm:$0xff] %v8912_v46  ;;  %v8939_v41 = vpack.c.bf16 %v11171_v6, %v11170_v17  ;;  %v11175_v6 = vand.u32 4294901760, %v8789_v9 }
 0x19b   : > { %6811 = vmatpush1.bf16.msra.mxu0 %v8770_v5  ;;  %11172 = vst [vmem:[#allocation4_spill] sm:$0xff] %v8939_v41  ;;  %v2295_v55 = vsub.f32 %v8789_v9, %v11175_v6 }
 0x19c   : > { %6813 = vmatprep.subr.bf16.mxu0 %v8781_v56 }
 0x19d   : > { %v2296_v5 = vand.u32 4294901760, %v2295_v55  ;;  %v11182_v55 = vand.u32 4294901760, %v8817_v36 }
 0x19f   : > { %6815 = vmatpush1.bf16.msra.mxu0 %v8808_v28  ;;  %v11174_v28 = vand.u32 4294901760, %v8787_v3 }
 0x1a0   : > { %6817 = vmatprep.subr.bf16.mxu0 %v8819_v30  ;;  %v2272_v30 = vand.u32 4294901760, %v2271_v37  ;;  %v11178_v37 = vand.u32 4294901760, %v8799_v15 }
 0x1a1   : > { %v2283_v17 = vsub.f32 %v8787_v3, %v11174_v28  ;;  %v2301_v28 = vsub.f32 %v8797_v8, %v10846_v20 }
 0x1a2   : > { %v2313_v6 = vsub.f32 %v8799_v15, %v11178_v37  ;;  %v10853_v37 = vand.u32 4294901760, %v8821_v50 }
 0x1a3   : > { %6819 = vmatpush1.bf16.msra.mxu0 %v8837_v18  ;;  %v8933_v18 = vsub.f32 %v5640_v29, %v2190_v1  ;;  %v2260_v1 = vand.u32 4294901760, %v2259_v12  ;;  %v2278_v29 = vand.u32 4294901760, %v2277_v58  ;;  %v11180_v58 = vand.u32 4294901760, %v8804_v60 }
 0x1a4   : > { %6821 = vmatprep.subr.bf16.mxu0 %v8857_v35  ;;  %v11169_v35 = vand.u32 4294901760, %v8785_v0 }
 0x1a5   : > { %v6834_v20 = vpack.c.bf16 %v2272_v30, %v2260_v1  ;;  %v2325_v30 = vsub.f32 %v8806_v10, %v11181_v27  ;;  %v2337_v1 = vsub.f32 %v8817_v36, %v11182_v55 }
 0x1a6   : > { %v2289_v49 = vsub.f32 %v8785_v0, %v11169_v35  ;;  %v2242_v35 = vsub.f32 %v8876_v53, %v11173_v51 }
 0x1a7   : > { %6823 = vmatpush1.bf16.msra.mxu0 %v8878_v25  ;;  %v8943_v25 = vsub.f32 %v5642_v26, %v2194_v33  ;;  %v11176_v26 = vand.u32 4294901760, %v8885_v22  ;;  %v11177_v33 = vand.u32 4294901760, %v8890_v2  ;;  %v2326_v55 = vand.u32 4294901760, %v2325_v30 }
 0x1a8   : > { %6825 = vmatprep.subr.bf16.mxu0 %v8906_v31  ;;  %v6832_v31 = vpack.c.bf16 %v2266_v11, %v2254_v14  ;;  %v2290_v12 = vand.u32 4294901760, %v2289_v49  ;;  %v2243_v11 = vand.u32 4294901760, %v2242_v35  ;;  %v11179_v14 = vand.u32 4294901760, %v8802_v32 }
 0x1a9   : > { %v8961_v51 = vpack.c.bf16 %v11177_v33, %v11176_v26  ;;  %v8973_v26 = vsub.f32 %v8842_v52, %v2192_v24  ;;  %v2319_v33 = vsub.f32 %v8804_v60, %v11180_v58  ;;  %v10854_v52 = vand.u32 4294901760, %v8823_v40 }
 0x1aa   : > { %v2307_v49 = vsub.f32 %v8802_v32, %v11179_v14  ;;  %v6836_v56 = vpack.c.bf16 %v2290_v12, %v2278_v29  ;;  %v10855_v35 = vand.u32 4294901760, %v8835_v47  ;;  %v2302_v14 = vand.u32 4294901760, %v2301_v28 }
 0x1ab   : > { %6827 = vmatpush1.bf16.msra.mxu0 %v8912_v46  ;;  %v2314_v46 = vand.u32 4294901760, %v2313_v6  ;;  %v2320_v58 = vand.u32 4294901760, %v2319_v33  ;;  %v10857_v29 = vand.u32 4294901760, %v8850_v45  ;;  %v10856_v12 = vand.u32 4294901760, %v8852_v57 }
 0x1ac   : > { %6829 = vmatprep.subr.bf16.mxu0 %v8939_v41  ;;  %v2284_v41 = vand.u32 4294901760, %v2283_v17  ;;  %v2308_v17 = vand.u32 4294901760, %v2307_v49  ;;  %v2343_v6 = vsub.f32 %v8823_v40, %v10854_v52  ;;  %v11183_v49 = vand.u32 4294901760, %v8825_v38 }
 0x1ad   : > { %v11185_v52 = vand.u32 4294901760, %v8868_v62  ;;  %v2367_v28 = vsub.f32 %v8852_v57, %v10856_v12 }
 0x1ae   : > { %v6838_v24 = vpack.c.bf16 %v2296_v5, %v2284_v41  ;;  %v2349_v33 = vsub.f32 %v8825_v38, %v11183_v49  ;;  %v2361_v5 = vsub.f32 %v8835_v47, %v10855_v35  ;;  %v11184_v41 = vand.u32 4294901760, %v8847_v19 }
 0x1af   : > { %6831 = vmatpush1.bf16.msra.mxu0 %v8961_v51  ;;  %v9017_v27 = vsub.f32 %v8868_v62, %v11185_v52  ;;  %v6842_v49 = vpack.c.bf16 %v2320_v58, %v2308_v17  ;;  %v2355_v35 = vsub.f32 %v8850_v45, %v10857_v29  ;;  %v10858_v29 = vand.u32 4294901760, %v8933_v18 }
 0x1b0   : > { %6833 = vmatprep.subr.bf16.mxu0 %v6832_v31  ;;  %v2331_v31 = vsub.f32 %v8821_v50, %v10853_v37  ;;  %v2338_v37 = vand.u32 4294901760, %v2337_v1  ;;  %v2344_v1 = vand.u32 4294901760, %v2343_v6  ;;  %v2350_v17 = vand.u32 4294901760, %v2349_v33 }
 0x1b1   : > { %v2362_v58 = vand.u32 4294901760, %v2361_v5  ;;  %v11189_v62 = vand.u32 4294901760, %v8885_v22  ;;  %v2356_v6 = vand.u32 4294901760, %v2355_v35  ;;  %v2368_v33 = vand.u32 4294901760, %v2367_v28 }
 0x1b2   : > { %2244 = vmatmul.mubr.f32.vlgmr.msra.gmra.mrb[0].mxu0 %v2243_v11  ;;  %v9012_v11 = vsub.f32 %v8847_v19, %v11184_v41  ;;  %v11186_v19 = vand.u32 4294901760, %v8859_v59  ;;  %v2332_v30 = vand.u32 4294901760, %v2331_v31  ;;  %v11188_v41 = vand.u32 4294901760, %v8873_v44 }
 0x1b3   : > { %6835 = vmatpush1.bf16.msra.mxu0 %v6834_v20  ;;  %2474 = vmatprep.mubr.f32.mxu0 %v11051_v39  ;;  %v6840_v20 = vpack.c.bf16 %v2314_v46, %v2302_v14  ;;  %v11187_v46 = vand.u32 4294901760, %v8861_v34  ;;  %v9043_v52 = vsub.f32 %v8885_v22, %v11189_v62  ;;  %v6848_v62 = vpack.c.bf16 %v2362_v58, %v2350_v17 }
 0x1b4   : > { %6837 = vmatprep.subr.bf16.mxu0 %v6836_v56  ;;  %v2373_v56 = vsub.f32 %v8859_v59, %v11186_v19  ;;  %v9036_v12 = vsub.f32 %v8873_v44, %v11188_v41  ;;  %v6844_v19 = vpack.c.bf16 %v2338_v37, %v2326_v55  ;;  %v11191_v37 = vand.u32 4294901760, %v8880_v7 }
 0x1b5   : > { %v2385_v14 = vsub.f32 %v8861_v34, %v11187_v46  ;;  %v11192_v55 = vand.u32 4294901760, %v8904_v16  ;;  %v6846_v22 = vpack.c.bf16 %v2344_v1, %v2332_v30  ;;  %v10864_v46 = vand.u32 4294901760, %v8973_v26 }
 0x1b6   : > { %v2374_v44 = vand.u32 4294901760, %v2373_v56  ;;  %v2397_v35 = vsub.f32 %v8933_v18, %v10858_v29  ;;  %v11193_v28 = vand.u32 4294901760, %v8943_v25 }
 0x1b7   : > { %6839 = vmatpush1.bf16.msra.mxu0 %v6838_v24  ;;  %v11190_v24 = vand.u32 4294901760, %v8890_v2  ;;  %v2386_v5 = vand.u32 4294901760, %v2385_v14  ;;  %v2391_v41 = vsub.f32 %v8904_v16, %v11192_v55  ;;  %v10859_v14 = vand.u32 4294901760, %v9017_v27 }
 0x1b8   : > { %6841 = vmatprep.subr.bf16.mxu0 %v6840_v20  ;;  %v2379_v20 = vsub.f32 %v8880_v7, %v11191_v37  ;;  %v2409_v56 = vsub.f32 %v8943_v25, %v11193_v28  ;;  %v2403_v58 = vsub.f32 %v8973_v26, %v10864_v46  ;;  %v10863_v37 = vand.u32 4294901760, %v9043_v52  ;;  %v5668_v46 = vld [vmem:[%s10723_s4 + $0x1a8] sm:$0xff] }
 0x1b9   : > { %v9048_v31 = vsub.f32 %v8890_v2, %v11190_v24  ;;  %v10860_v2 = vand.u32 4294901760, %v9012_v11  ;;  %v10861_v24 = vand.u32 4294901760, %v9036_v12  ;;  %v6852_v30 = vpack.c.bf16 %v2386_v5, %v2374_v44 }
 0x1ba   : > { %v2380_v1 = vand.u32 4294901760, %v2379_v20  ;;  %v2392_v17 = vand.u32 4294901760, %v2391_v41  ;;  %v2398_v28 = vand.u32 4294901760, %v2397_v35  ;;  %v2410_v29 = vand.u32 4294901760, %v2409_v56 }
 0x1bb   : > { %6843 = vmatpush1.bf16.msra.mxu0 %v6842_v49  ;;  %v6850_v49 = vpack.c.bf16 %v2368_v33, %v2356_v6  ;;  %v10862_v55 = vand.u32 4294901760, %v9048_v31  ;;  %v2421_v6 = vsub.f32 %v9017_v27, %v10859_v14  ;;  %v2433_v33 = vsub.f32 %v9036_v12, %v10861_v24 }
 0x1bc   : > { %6845 = vmatprep.subr.bf16.mxu0 %v6844_v19  ;;  %v2415_v19 = vsub.f32 %v9012_v11, %v10860_v2  ;;  %v6854_v44 = vpack.c.bf16 %v2392_v17, %v2380_v1  ;;  %v2404_v5 = vand.u32 4294901760, %v2403_v58  ;;  %v2427_v41 = vsub.f32 %v9043_v52, %v10863_v37 }
 0x1bd   : > { %v2422_v35 = vand.u32 4294901760, %v2421_v6  ;;  %v2434_v56 = vand.u32 4294901760, %v2433_v33  ;;  %v6864_v17 = vpack.c.bf16 %v8765_v13, %v8763_v63  ;;  %v6866_v58 = vpack.c.bf16 %v8778_v21, %v8767_v42 }
 0x1be   : > { %v2416_v20 = vand.u32 4294901760, %v2415_v19  ;;  %v2428_v2 = vand.u32 4294901760, %v2427_v41  ;;  %v5647_v19 = vld [vmem:[%s10723_s4 + $0x100] sm:$0xff]  ;;  %v5666_v41 = vld [vmem:[%s10723_s4 + $0x198] sm:$0xff] }
 0x1bf   : > { %6847 = vmatpush1.bf16.msra.mxu0 %v6846_v22  ;;  %v2439_v22 = vsub.f32 %v9048_v31, %v10862_v55 }
 0x1c0   : > { %6849 = vmatprep.subr.bf16.mxu0 %v6848_v62  ;;  %v6856_v62 = vpack.c.bf16 %v2410_v29, %v2398_v28  ;;  %v6858_v14 = vpack.c.bf16 %v2416_v20, %v2404_v5  ;;  %v6868_v29 = vpack.c.bf16 %v8785_v0, %v8783_v23  ;;  %v6874_v28 = vpack.c.bf16 %v8804_v60, %v8802_v32  ;;  %v5665_v20 = vld [vmem:[%s10723_s4 + $0x190] sm:$0xff] }
 0x1c1   : > { %v2440_v24 = vand.u32 4294901760, %v2439_v22  ;;  %v3115_v5 = vand.u32 4294901760, %v5647_v19  ;;  %v6876_v22 = vpack.c.bf16 %v8817_v36, %v8806_v10  ;;  %v5652_v36 = vld [vmem:[%s10723_s4 + $0x128] sm:$0xff] }
 0x1c3   : > { %6851 = vmatpush1.bf16.msra.mxu0 %v6850_v49  ;;  %v6860_v49 = vpack.c.bf16 %v2434_v56, %v2422_v35  ;;  %v6862_v1 = vpack.c.bf16 %v2440_v24, %v2428_v2  ;;  %v6872_v2 = vpack.c.bf16 %v8799_v15, %v8797_v8  ;;  %v5664_v24 = vld [vmem:[%s10723_s4 + $0x188] sm:$0xff]  ;;  %v3169_v35 = vand.u32 4294901760, %v5665_v20 }
 0x1c4   : > { %6853 = vmatprep.subr.bf16.mxu0 %v6852_v30  ;;  %v6870_v30 = vpack.c.bf16 %v8789_v9, %v8787_v3  ;;  %v3166_v33 = vand.u32 4294901760, %v5664_v24  ;;  %v3172_v56 = vand.u32 4294901760, %v5666_v41  ;;  %v9135_v37 = vsub.f32 %v5647_v19, %v3115_v5 }
 0x1c5   : > { %v9152_v19 = vsub.f32 %v5665_v20, %v3169_v35  ;;  %v5670_v20 = vld [vmem:[%s10723_s4 + $0x1b8] sm:$0xff] }
 0x1c6   : > { %v9133_v55 = vsub.f32 %v5664_v24, %v3166_v33  ;;  %11197 = vst [vmem:[#allocation8_spill] sm:$0xff] %v9135_v37  ;;  %v9150_v24 = vpack.c.bf16 %v3172_v56, %v3169_v35 }
 0x1c7   : > { %6855 = vmatpush1.bf16.msra.mxu0 %v6854_v44  ;;  %v5648_v44 = vld [vmem:[%s10723_s4 + $0x108] sm:$0xff]  ;;  %11201 = vst [vmem:[#allocation29_spill] sm:$0xff] %v9152_v19 }
 0x1c8   : > { %6857 = vmatprep.subr.bf16.mxu0 %v6856_v62  ;;  %v3118_v62 = vand.u32 4294901760, %v5648_v44  ;;  %11196 = vst [vmem:[#allocation7_spill] sm:$0xff] %v9133_v55  ;;  %11200 = vst [vmem:[#allocation11_spill] sm:$0xff] %v9150_v24 }
 0x1ca   : > { %v9146_v10 = vpack.c.bf16 %v3118_v62, %v3115_v5 }
 0x1cb   : > { %6859 = vmatpush1.bf16.msra.mxu0 %v6858_v14  ;;  %v5663_v14 = vld [vmem:[%s10723_s4 + $0x180] sm:$0xff] }
 0x1cc   : > { %6861 = vmatprep.subr.bf16.mxu0 %v6860_v49  ;;  %v3163_v6 = vand.u32 4294901760, %v5663_v14  ;;  %v5649_v49 = vld [vmem:[%s10723_s4 + $0x110] sm:$0xff]  ;;  %11198 = vst [vmem:[#allocation9_spill] sm:$0xff] %v9146_v10 }
 0x1cd   : > { %v3121_v37 = vand.u32 4294901760, %v5649_v49 }
 0x1cf   : > { %6863 = vmatpush1.bf16.msra.mxu0 %v6862_v1  ;;  %v5650_v1 = vld [vmem:[%s10723_s4 + $0x118] sm:$0xff] }
 0x1d0   : > { %6865 = vmatprep.subr.bf16.mxu0 %v6864_v17  ;;  %v5667_v17 = vld [vmem:[%s10723_s4 + $0x1a0] sm:$0xff]  ;;  %v3124_v55 = vand.u32 4294901760, %v5650_v1 }
 0x1d2   : > { %2476 = vmatmul.mubr.f32.vlgmr.msra.gmra.mrb[0].mxu0 %v8833_v4  ;;  %v5651_v4 = vld [vmem:[%s10723_s4 + $0x120] sm:$0xff] }
 0x1d3   : > { %6867 = vmatpush1.bf16.msra.mxu0 %v6866_v58  ;;  %2610 = vmatprep.mubr.f32.mxu0 %v11051_v39  ;;  %v9129_v58 = vpack.c.bf16 %v3166_v33, %v3163_v6  ;;  %v9158_v33 = vsub.f32 %v5666_v41, %v3172_v56  ;;  %v3127_v5 = vand.u32 4294901760, %v5651_v4  ;;  %v9168_v41 = vpack.c.bf16 %v3124_v55, %v3121_v37 }
 0x1d4   : > { %6869 = vmatprep.subr.bf16.mxu0 %v6868_v29  ;;  %v9131_v29 = vsub.f32 %v5663_v14, %v3163_v6  ;;  %v9148_v14 = vsub.f32 %v5648_v44, %v3118_v62  ;;  %v5669_v6 = vld [vmem:[%s10723_s4 + $0x1b0] sm:$0xff]  ;;  %v3178_v44 = vand.u32 4294901760, %v5668_v46  ;;  %v3130_v62 = vand.u32 4294901760, %v5652_v36 }
 0x1d5   : > { %11194 = vst [vmem:[#allocation5_spill] sm:$0xff] %v9129_v58  ;;  %6993 = vmatprep.subr.bf16.mxu1 %v9129_v58  ;;  %11202 = vst [vmem:[#allocation30_spill] sm:$0xff] %v9158_v33  ;;  %v3181_v35 = vand.u32 4294901760, %v5669_v6  ;;  %v9170_v56 = vsub.f32 %v5649_v49, %v3121_v37  ;;  %v5654_v58 = vld [vmem:[%s10723_s4 + $0x138] sm:$0xff]  ;;  %v6878_v33 = vpack.c.bf16 %v8823_v40, %v8821_v50 }
 0x1d6   : > { %11195 = vst [vmem:[#allocation6_spill] sm:$0xff] %v9131_v29  ;;  %11199 = vst [vmem:[#allocation10_spill] sm:$0xff] %v9148_v14  ;;  %v3175_v29 = vand.u32 4294901760, %v5667_v17  ;;  %6995 = vmatpush3.bf16.msra.mxu1 %v9146_v10  ;;  %v9183_v14 = vsub.f32 %v5668_v46, %v3178_v44  ;;  %v9187_v37 = vsub.f32 %v5652_v36, %v3130_v62 }
 0x1d7   : > { %6871 = vmatpush1.bf16.msra.mxu0 %v6870_v30  ;;  %v5653_v30 = vld [vmem:[%s10723_s4 + $0x130] sm:$0xff]  ;;  %6997 = vmatprep.subr.bf16.mxu1 %v9150_v24  ;;  %11203 = vst [vmem:[#allocation31_spill] sm:$0xff] %v9168_v41  ;;  %v9185_v24 = vsub.f32 %v5651_v4, %v3127_v5  ;;  %v9189_v49 = vsub.f32 %v5669_v6, %v3181_v35 }
 0x1d8   : > { %6873 = vmatprep.subr.bf16.mxu0 %v6872_v2  ;;  %v9172_v2 = vsub.f32 %v5650_v1, %v3124_v55  ;;  %v9174_v10 = vsub.f32 %v5667_v17, %v3175_v29  ;;  %v9181_v19 = vpack.c.bf16 %v3178_v44, %v3175_v29  ;;  %v3184_v55 = vand.u32 4294901760, %v5670_v20 }
 0x1d9   : > { %v3133_v1 = vand.u32 4294901760, %v5653_v30  ;;  %v6880_v17 = vpack.c.bf16 %v8835_v47, %v8825_v38  ;;  %v3136_v29 = vand.u32 4294901760, %v5654_v58  ;;  %v6884_v6 = vpack.c.bf16 %v8861_v34, %v8859_v59 }
 0x1da   : > { %11204 = vst [vmem:[#allocation32_spill] sm:$0xff] %v9174_v10  ;;  %11205 = vst [vmem:[#allocation33_spill] sm:$0xff] %v9181_v19  ;;  %6999 = vmatpush3.bf16.msra.mxu1 %v9168_v41  ;;  %v9194_v10 = vpack.c.bf16 %v3130_v62, %v3127_v5  ;;  %v9197_v4 = vpack.c.bf16 %v3184_v55, %v3181_v35  ;;  %v9199_v46 = vsub.f32 %v5670_v20, %v3184_v55  ;;  %v11212_v35 = vld [vmem:[#allocation12_spill] sm:$0xff]  ;;  %v11214_v55 = vld [vmem:[#allocation14_spill] sm:$0xff] }
 0x1db   : > { %6875 = vmatpush1.bf16.msra.mxu0 %v6874_v28  ;;  %7001 = vmatprep.subr.bf16.mxu1 %v9181_v19  ;;  %v9201_v36 = vsub.f32 %v5653_v30, %v3133_v1  ;;  %v9203_v28 = vsub.f32 %v5654_v58, %v3136_v29  ;;  %v9210_v44 = vpack.c.bf16 %v3136_v29, %v3133_v1  ;;  %v11213_v30 = vld [vmem:[#allocation13_spill] sm:$0xff]  ;;  %v11215_v1 = vld [vmem:[#allocation16_spill] sm:$0xff]  ;;  %v11217_v29 = vld [vmem:[#allocation27_spill] sm:$0xff]  ;;  %v11227_v41 = vand.u32 4294901760, %v8783_v23 }
 0x1dc   : > { %6877 = vmatprep.subr.bf16.mxu0 %v6876_v22  ;;  %11206 = vst [vmem:[#allocation34_spill] sm:$0xff] %v9194_v10  ;;  %11207 = vst [vmem:[#allocation35_spill] sm:$0xff] %v9197_v4  ;;  %v6882_v22 = vpack.c.bf16 %v8852_v57, %v8850_v45  ;;  %v6886_v5 = vpack.c.bf16 %v8904_v16, %v8880_v7  ;;  %v6888_v58 = vpack.c.bf16 %v8943_v25, %v8933_v18 }
 0x1dd   : > { %11208 = vst [vmem:[#allocation36_spill] sm:$0xff] %v9199_v46  ;;  %11209 = vst [vmem:[#allocation37_spill] sm:$0xff] %v9201_v36  ;;  %v6892_v62 = vpack.c.bf16 %v9036_v12, %v9017_v27  ;;  %v6894_v20 = vpack.c.bf16 %v9048_v31, %v9043_v52  ;;  %v11229_v46 = vand.u32 4294901760, %v8876_v53 }
 0x1de   : > { %11210 = vst [vmem:[#allocation38_spill] sm:$0xff] %v9203_v28  ;;  %7003 = vmatpush3.bf16.msra.mxu1 %v9194_v10  ;;  %11211 = vst [vmem:[#allocation39_spill] sm:$0xff] %v9210_v44  ;;  %v11226_v10 = vand.u32 4294901760, %v8778_v21  ;;  %v11228_v28 = vand.u32 4294901760, %v8785_v0  ;;  %v11233_v21 = vand.u32 4294901760, %v8799_v15  ;;  %v11234_v0 = vand.u32 4294901760, %v8802_v32 }
 0x1df   : > { %6879 = vmatpush1.bf16.msra.mxu0 %v6878_v33  ;;  %7005 = vmatprep.subr.bf16.mxu1 %v9197_v4  ;;  %v6890_v33 = vpack.c.bf16 %v9012_v11, %v8973_v26  ;;  %v11225_v4 = vand.u32 4294901760, %v8767_v42  ;;  %v11232_v42 = vand.u32 4294901760, %v8797_v8  ;;  %v11241_v8 = vand.u32 4294901760, %v8823_v40 }
 0x1e0   : > { %6881 = vmatprep.subr.bf16.mxu0 %v6880_v17  ;;  %v11216_v17 = vld [vmem:[#allocation24_spill] sm:$0xff]  ;;  %v6932_v36 = vpack.c.bf16 %v11228_v28, %v11227_v41  ;;  %v11238_v41 = vld [vmem:[#allocation19_spill] sm:$0xff]  ;;  %v11242_v15 = vand.u32 4294901760, %v8825_v38  ;;  %v11243_v32 = vand.u32 4294901760, %v8835_v47  ;;  %v11248_v40 = vand.u32 4294901760, %v8880_v7 }
 0x1e1   : > { %v6930_v19 = vpack.c.bf16 %v11226_v10, %v11225_v4  ;;  %v6936_v23 = vpack.c.bf16 %v11233_v21, %v11232_v42  ;;  %v11235_v10 = vand.u32 4294901760, %v8804_v60  ;;  %v11244_v60 = vand.u32 4294901760, %v8850_v45 }
 0x1e2   : > { %7007 = vmatpush3.bf16.msra.mxu1 %v9210_v44  ;;  %v6944_v28 = vpack.c.bf16 %v11243_v32, %v11242_v15  ;;  %v11249_v38 = vand.u32 4294901760, %v8904_v16  ;;  %v11250_v47 = vand.u32 4294901760, %v8933_v18  ;;  %v11251_v45 = vand.u32 4294901760, %v8943_v25  ;;  %v11258_v25 = vld [vmem:[#allocation25_spill] sm:$0xff] }
 0x1e3   : > { %6883 = vmatpush1.bf16.msra.mxu0 %v6882_v22  ;;  %v11218_v22 = vld [vmem:[#allocation28_spill] sm:$0xff]  ;;  %v11255_v7 = vand.u32 4294901760, %v9036_v12  ;;  %v11256_v16 = vand.u32 4294901760, %v9043_v52  ;;  %v11257_v18 = vand.u32 4294901760, %v9048_v31 }
 0x1e4   : > { %6885 = vmatprep.subr.bf16.mxu0 %v6884_v6  ;;  %v11219_v6 = vld [vmem:[#allocation18_spill] sm:$0xff]  ;;  %v6952_v42 = vpack.c.bf16 %v11251_v45, %v11250_v47  ;;  %v5673_v31 = vld [vmem:[%s10723_s4 + $0x1d0] sm:$0xff] }
 0x1e7   : > { %6887 = vmatpush1.bf16.msra.mxu0 %v6886_v5  ;;  %v11220_v5 = vld [vmem:[#allocation20_spill] sm:$0xff] }
 0x1e8   : > { %6889 = vmatprep.subr.bf16.mxu0 %v6888_v58  ;;  %v11221_v58 = vld [vmem:[#allocation21_spill] sm:$0xff] }
 0x1eb   : > { %6891 = vmatpush1.bf16.msra.mxu0 %v6890_v33  ;;  %v11222_v33 = vld [vmem:[#allocation4_spill] sm:$0xff] }
 0x1ec   : > { %6893 = vmatprep.subr.bf16.mxu0 %v6892_v62  ;;  %v11223_v62 = vand.u32 4294901760, %v8763_v63  ;;  %v11230_v63 = vand.u32 4294901760, %v8787_v3 }
 0x1ef   : > { %6895 = vmatpush1.bf16.msra.mxu0 %v6894_v20  ;;  %v11224_v20 = vand.u32 4294901760, %v8765_v13  ;;  %v11231_v13 = vand.u32 4294901760, %v8789_v9  ;;  %v11239_v9 = vand.u32 4294901760, %v11238_v41  ;;  %v5660_v41 = vld [vmem:[%s10723_s4 + $0x168] sm:$0xff] }
 0x1f0   : > { %6897 = vmatprep.subr.bf16.mxu0 %v8711_v54 }
 0x1f1   : > { %v6928_v44 = vpack.c.bf16 %v11224_v20, %v11223_v62  ;;  %v6934_v62 = vpack.c.bf16 %v11231_v13, %v11230_v63  ;;  %v11246_v63 = vand.u32 4294901760, %v8859_v59  ;;  %v11253_v59 = vand.u32 4294901760, %v9012_v11 }
 0x1f2   : > { %2613 = vmatmul.mubr.f32.vlgmr.msra.gmra.mrb[0].mxu0 %v8876_v53  ;;  %v6938_v53 = vpack.c.bf16 %v11235_v10, %v11234_v0  ;;  %v6958_v0 = vpack.c.bf16 %v11257_v18, %v11256_v16  ;;  %v5676_v10 = vld [vmem:[%s10723_s4 + $0x1e8] sm:$0xff] }
 0x1f3   : > { %6899 = vmatpush1.bf16.msra.mxu0 %v8726_v43  ;;  %2715 = vmatprep.mubr.f32.mxu0 %v11051_v39  ;;  %v11266_v16 = vld [vmem:[#allocation7_spill] sm:$0xff] }
 0x1f4   : > { %6901 = vmatprep.subr.bf16.mxu0 %v8729_v48  ;;  %v10907_v18 = vand.u32 4294901760, %v11266_v16 }
 0x1f7   : > { %6903 = vmatpush1.bf16.msra.mxu0 %v8745_v61 }
 0x1f8   : > { %6905 = vmatprep.subr.bf16.mxu0 %v11212_v35 }
 0x1fb   : > { %6907 = vmatpush1.bf16.msra.mxu0 %v11213_v30 }
 0x1fc   : > { %6909 = vmatprep.subr.bf16.mxu0 %v11214_v55 }
 0x1ff   : > { %6911 = vmatpush1.bf16.msra.mxu0 %v11215_v1 }
 0x200   : > { %6913 = vmatprep.subr.bf16.mxu0 %v11216_v17 }
 0x203   : > { %6915 = vmatpush1.bf16.msra.mxu0 %v11217_v29 }
 0x204   : > { %6917 = vmatprep.subr.bf16.mxu0 %v11218_v22 }
 0x207   : > { %6919 = vmatpush1.bf16.msra.mxu0 %v11219_v6 }
 0x208   : > { %6921 = vmatprep.subr.bf16.mxu0 %v11220_v5 }
 0x20b   : > { %6923 = vmatpush1.bf16.msra.mxu0 %v11221_v58 }
 0x20c   : > { %6925 = vmatprep.subr.bf16.mxu0 %v11222_v33 }
 0x20f   : > { %6927 = vmatpush1.bf16.msra.mxu0 %v8961_v51 }
 0x210   : > { %6929 = vmatprep.subr.bf16.mxu0 %v6928_v44  ;;  %v11245_v44 = vand.u32 4294901760, %v8852_v57  ;;  %v11252_v57 = vand.u32 4294901760, %v8973_v26  ;;  %v5655_v26 = vld [vmem:[%s10723_s4 + $0x140] sm:$0xff] }
 0x211   : > { %v3139_v12 = vand.u32 4294901760, %v5655_v26 }
 0x212   : > { %2719 = vmatmul.mubr.f32.vlgmr.msra.gmra.mrb[0].mxu0 %v11229_v46  ;;  %v11240_v46 = vand.u32 4294901760, %v8821_v50  ;;  %v6946_v20 = vpack.c.bf16 %v11245_v44, %v11244_v60  ;;  %v11247_v50 = vand.u32 4294901760, %v8861_v34  ;;  %v6954_v21 = vpack.c.bf16 %v11253_v59, %v11252_v57  ;;  %v5678_v44 = vld [vmem:[%s10723_s4 + $0x1f8] sm:$0xff] }
 0x213   : > { %6931 = vmatpush1.bf16.msra.mxu0 %v6930_v19  ;;  %2885 = vmatprep.mubr.f32.mxu0 %v11051_v39  ;;  %v11236_v19 = vld [vmem:[#allocation15_spill] sm:$0xff]  ;;  %v11254_v34 = vand.u32 4294901760, %v9017_v27  ;;  %v3208_v59 = vand.u32 4294901760, %v5678_v44 }
 0x214   : > { %6933 = vmatprep.subr.bf16.mxu0 %v6932_v36  ;;  %v11237_v3 = vand.u32 4294901760, %v11236_v19  ;;  %v6942_v36 = vpack.c.bf16 %v11241_v8, %v11240_v46  ;;  %v6948_v13 = vpack.c.bf16 %v11247_v50, %v11246_v63  ;;  %v3202_v19 = vand.u32 4294901760, %v5676_v10  ;;  %v5662_v63 = vld [vmem:[%s10723_s4 + $0x178] sm:$0xff] }
 0x216   : > { %v6940_v4 = vpack.c.bf16 %v11239_v9, %v11237_v3  ;;  %v5659_v3 = vld [vmem:[%s10723_s4 + $0x160] sm:$0xff]  ;;  %v9414_v47 = vsub.f32 %v5676_v10, %v3202_v19 }
 0x217   : > { %6935 = vmatpush1.bf16.msra.mxu0 %v6934_v62  ;;  %v6950_v62 = vpack.c.bf16 %v11249_v38, %v11248_v40  ;;  %v3151_v9 = vand.u32 4294901760, %v5659_v3 }
 0x218   : > { %6937 = vmatprep.subr.bf16.mxu0 %v6936_v23  ;;  %v6956_v23 = vpack.c.bf16 %v11255_v7, %v11254_v34  ;;  %v3160_v34 = vand.u32 4294901760, %v5662_v63  ;;  %v11265_v7 = vld [vmem:[#allocation6_spill] sm:$0xff] }
 0x219   : > { %v9416_v45 = vsub.f32 %v5659_v3, %v3151_v9 }
 0x21b   : > { %6939 = vmatpush1.bf16.msra.mxu0 %v6938_v53 }
 0x21c   : > { %6941 = vmatprep.subr.bf16.mxu0 %v6940_v4  ;;  %v3154_v4 = vand.u32 4294901760, %v5660_v41 }
 0x21e   : > { %v9380_v8 = vpack.c.bf16 %v3154_v4, %v3151_v9 }
 0x21f   : > { %6943 = vmatpush1.bf16.msra.mxu0 %v6942_v36  ;;  %v5677_v36 = vld [vmem:[%s10723_s4 + $0x1f0] sm:$0xff] }
 0x220   : > { %6945 = vmatprep.subr.bf16.mxu0 %v6944_v28  ;;  %11264 = vst [vmem:[#allocation27_spill] sm:$0xff] %v9380_v8  ;;  %v9389_v28 = vsub.f32 %v5655_v26, %v3139_v12  ;;  %v3205_v57 = vand.u32 4294901760, %v5677_v36  ;;  %v9428_v26 = vsub.f32 %v5678_v44, %v3208_v59 }
 0x223   : > { %6947 = vmatpush1.bf16.msra.mxu0 %v6946_v20  ;;  %v5661_v20 = vld [vmem:[%s10723_s4 + $0x170] sm:$0xff] }
 0x224   : > { %6949 = vmatprep.subr.bf16.mxu0 %v6948_v13 }
 0x227   : > { %6951 = vmatpush1.bf16.msra.mxu0 %v6950_v62 }
 0x228   : > { %6953 = vmatprep.subr.bf16.mxu0 %v6952_v42  ;;  %v9418_v42 = vsub.f32 %v5660_v41, %v3154_v4 }
 0x22b   : > { %6955 = vmatpush1.bf16.msra.mxu0 %v6954_v21  ;;  %v3157_v21 = vand.u32 4294901760, %v5661_v20 }
 0x22c   : > { %6957 = vmatprep.subr.bf16.mxu0 %v6956_v23  ;;  %v10911_v23 = vand.u32 4294901760, %v11265_v7 }
 0x22f   : > { %6959 = vmatpush1.bf16.msra.mxu0 %v6958_v0  ;;  %v11267_v0 = vld [vmem:[#allocation8_spill] sm:$0xff] }
 0x230   : > { %6961 = vmatprep.subr.bf16.mxu0 %v8711_v54  ;;  %v5671_v54 = vld [vmem:[%s10723_s4 + $0x1c0] sm:$0xff] }
 0x232   : > { %2887 = vmatmul.mubr.f32.vlgmr.msra.gmra.mrb[0].mxu0 %v11258_v25 }
 0x233   : > { %6963 = vmatpush1.bf16.msra.mxu0 %v8726_v43  ;;  %2989 = vmatprep.mubr.f32.mxu0 %v11051_v39  ;;  %v5672_v43 = vld [vmem:[%s10723_s4 + $0x1c8] sm:$0xff] }
 0x234   : > { %6965 = vmatprep.subr.bf16.mxu0 %v8729_v48  ;;  %v3187_v48 = vand.u32 4294901760, %v5671_v54 }
 0x236   : > { %v9385_v15 = vsub.f32 %v5671_v54, %v3187_v48  ;;  %v11268_v54 = vld [vmem:[#allocation10_spill] sm:$0xff] }
 0x237   : > { %6967 = vmatpush1.bf16.msra.mxu0 %v8745_v61  ;;  %v3190_v61 = vand.u32 4294901760, %v5672_v43 }
 0x238   : > { %6969 = vmatprep.subr.bf16.mxu0 %v11212_v35  ;;  %v5674_v35 = vld [vmem:[%s10723_s4 + $0x1d8] sm:$0xff] }
 0x239   : > { %v9340_v11 = vpack.c.bf16 %v3190_v61, %v3187_v48  ;;  %v9387_v32 = vsub.f32 %v5672_v43, %v3190_v61  ;;  %v10903_v43 = vand.u32 4294901760, %v11268_v54  ;;  %v9424_v48 = vpack.c.bf16 %v3208_v59, %v3205_v57 }
 0x23a   : > { %v9426_v61 = vsub.f32 %v5677_v36, %v3205_v57 }
 0x23b   : > { %6971 = vmatpush1.bf16.msra.mxu0 %v11213_v30  ;;  %11259 = vst [vmem:[#allocation12_spill] sm:$0xff] %v9340_v11  ;;  %7009 = vmatprep.subr.bf16.mxu1 %v9340_v11  ;;  %v3193_v30 = vand.u32 4294901760, %v5673_v31  ;;  %11269 = vst [vmem:[#allocation28_spill] sm:$0xff] %v9424_v48 }
 0x23c   : > { %6973 = vmatprep.subr.bf16.mxu0 %v11214_v55  ;;  %v3196_v55 = vand.u32 4294901760, %v5674_v35  ;;  %11270 = vst [vmem:[#allocation18_spill] sm:$0xff] %v9426_v61 }
 0x23d   : > { %v9403_v50 = vsub.f32 %v5673_v31, %v3193_v30  ;;  %v3342_v31 = vsub.f32 %v11265_v7, %v10911_v23 }
 0x23e   : > { %v9405_v13 = vsub.f32 %v5674_v35, %v3196_v55  ;;  %v3349_v35 = vsub.f32 %v11266_v16, %v10907_v18 }
 0x23f   : > { %6975 = vmatpush1.bf16.msra.mxu0 %v11215_v1  ;;  %v5657_v1 = vld [vmem:[%s10723_s4 + $0x150] sm:$0xff] }
 0x240   : > { %6977 = vmatprep.subr.bf16.mxu0 %v11216_v17  ;;  %v5658_v17 = vld [vmem:[%s10723_s4 + $0x158] sm:$0xff]  ;;  %v3350_v10 = vand.u32 4294901760, %v3349_v35 }
 0x243   : > { %6979 = vmatpush1.bf16.msra.mxu0 %v11217_v29  ;;  %v3145_v29 = vand.u32 4294901760, %v5657_v1 }
 0x244   : > { %6981 = vmatprep.subr.bf16.mxu0 %v11218_v22  ;;  %v3148_v22 = vand.u32 4294901760, %v5658_v17 }
 0x245   : > { %v9407_v40 = vsub.f32 %v5657_v1, %v3145_v29  ;;  %v11274_v1 = vld [vmem:[#allocation29_spill] sm:$0xff] }
 0x246   : > { %v9409_v38 = vsub.f32 %v5658_v17, %v3148_v22  ;;  %v10901_v17 = vand.u32 4294901760, %v11274_v1 }
 0x247   : > { %6983 = vmatpush1.bf16.msra.mxu0 %v11219_v6  ;;  %v10915_v6 = vlaneseq }
 0x248   : > { %6985 = vmatprep.subr.bf16.mxu0 %v11220_v5  ;;  %v9358_v5 = vpack.c.bf16 %v3196_v55, %v3193_v30  ;;  %v3237_v55 = vsub.f32 %v11268_v54, %v10903_v43  ;;  %v3356_v9 = vsub.f32 %v11274_v1, %v10901_v17 }
 0x249   : > { %vm3033_vm0 = vcmp.lt.s32.totalorder %v10915_v6, 256 }
 0x24a   : > { %11261 = vst [vmem:[#allocation14_spill] sm:$0xff] %v9358_v5  ;;  %3035 = vst.msk [vmem:[#allocation3] ss:$8 sm:$0x3] %vm3033_vm0, %v11051_v39  ;;  %v3238_v41 = vand.u32 4294901760, %v3237_v55 }
 0x24b   : > { %6987 = vmatpush1.bf16.msra.mxu0 %v11221_v58  ;;  %v9360_v58 = vpack.c.bf16 %v3148_v22, %v3145_v29  ;;  %v11275_v29 = vld [vmem:[#allocation30_spill] sm:$0xff] }
 0x24c   : > { %6989 = vmatprep.subr.bf16.mxu0 %v11222_v33  ;;  %v5675_v33 = vld [vmem:[%s10723_s4 + $0x1e0] sm:$0xff]  ;;  %v10900_v22 = vand.u32 4294901760, %v11275_v29 }
 0x24d   : > { %11262 = vst [vmem:[#allocation16_spill] sm:$0xff] %v9360_v58  ;;  %v3199_v53 = vand.u32 4294901760, %v5675_v33 }
 0x24e   : > { %v3363_v4 = vsub.f32 %v11275_v29, %v10900_v22 }
 0x24f   : > { %6991 = vmatpush1.bf16.msra.mxu0 %v8961_v51  ;;  %v5656_v51 = vld [vmem:[%s10723_s4 + $0x148] sm:$0xff]  ;;  %v9378_v46 = vpack.c.bf16 %v3202_v19, %v3199_v53  ;;  %v9412_v62 = vsub.f32 %v5675_v33, %v3199_v53  ;;  %v3343_v33 = vand.u32 4294901760, %v3342_v31  ;;  %v10898_v53 = vand.u32 4294901760, %v9170_v56 }
 0x250   : > { %v3142_v27 = vand.u32 4294901760, %v5656_v51  ;;  %v10896_v19 = vand.u32 4294901760, %v9172_v2  ;;  %v10897_v31 = vand.u32 4294901760, %v9183_v14 }
 0x251   : > { %11263 = vst [vmem:[#allocation24_spill] sm:$0xff] %v9378_v46  ;;  %v7024_v36 = vpack.c.bf16 %v3350_v10, %v3343_v33  ;;  %v3244_v44 = vsub.f32 %v9170_v56, %v10898_v53  ;;  %v10899_v33 = vand.u32 4294901760, %v9185_v24 }
 0x252   : > { %2991 = vmatmul.mubr.f32.vlgmr.msra.gmra.mrb[0].mxu0 %v11258_v25  ;;  %v9342_v52 = vpack.c.bf16 %v3142_v27, %v3139_v12  ;;  %v9391_v60 = vsub.f32 %v5656_v51, %v3142_v27  ;;  %v10905_v25 = vand.u32 4294901760, %v11267_v0  ;;  %v9430_v51 = vpack.c.bf16 %v3160_v34, %v3157_v21 }
 0x253   : > { %v9432_v12 = vsub.f32 %v5661_v20, %v3157_v21  ;;  %v9434_v27 = vsub.f32 %v5662_v63, %v3160_v34  ;;  %v3251_v20 = vsub.f32 %v9172_v2, %v10896_v19  ;;  %v11276_v63 = vld [vmem:[#allocation32_spill] sm:$0xff]  ;;  %v3357_v21 = vand.u32 4294901760, %v3356_v9 }
 0x254   : > { %11260 = vst [vmem:[#allocation13_spill] sm:$0xff] %v9342_v52  ;;  %7011 = vmatpush3.bf16.msra.mxu1 %v9342_v52  ;;  %11271 = vst [vmem:[#allocation20_spill] sm:$0xff] %v9430_v51  ;;  %v3230_v30 = vsub.f32 %v11267_v0, %v10905_v25  ;;  %v10895_v57 = vand.u32 4294901760, %v11276_v63  ;;  %v3364_v34 = vand.u32 4294901760, %v3363_v4  ;;  %v3245_v35 = vand.u32 4294901760, %v3244_v44 }
 0x255   : > { %7013 = vmatprep.subr.bf16.mxu1 %v9358_v5  ;;  %11272 = vst [vmem:[#allocation21_spill] sm:$0xff] %v9432_v12  ;;  %11273 = vst [vmem:[#allocation4_spill] sm:$0xff] %v9434_v27  ;;  %v10904_v9 = vand.u32 4294901760, %v9189_v49  ;;  %v3258_v44 = vsub.f32 %v9185_v24, %v10899_v33  ;;  %v10912_v25 = vand.u32 4294901760, %v9387_v32 }
 0x256   : > { %v3231_v3 = vand.u32 4294901760, %v3230_v30  ;;  %v3252_v30 = vand.u32 4294901760, %v3251_v20  ;;  %v3370_v55 = vsub.f32 %v11276_v63, %v10895_v57  ;;  %v9474_v10 = vpack.c.bf16 %v3364_v34, %v3357_v21  ;;  %v11277_v20 = vld [vmem:[#allocation36_spill] sm:$0xff] }
 0x257   : > { %v10906_v57 = vand.u32 4294901760, %v11277_v20  ;;  %v3384_v34 = vsub.f32 %v9189_v49, %v10904_v9 }
 0x258   : > { %7015 = vmatpush3.bf16.msra.mxu1 %v9360_v58  ;;  %v9467_v59 = vpack.c.bf16 %v3238_v41, %v3231_v3  ;;  %v3377_v3 = vsub.f32 %v9183_v14, %v10897_v31  ;;  %v10902_v41 = vand.u32 4294901760, %v9187_v37  ;;  %v9481_v4 = vpack.c.bf16 %v3252_v30, %v3245_v35  ;;  %v11278_v31 = vld [vmem:[#allocation37_spill] sm:$0xff] }
 0x259   : > { %7017 = vmatprep.subr.bf16.mxu1 %v9378_v46  ;;  %v10910_v53 = vand.u32 4294901760, %v11278_v31  ;;  %v3259_v35 = vand.u32 4294901760, %v3258_v44  ;;  %v3391_v30 = vsub.f32 %v11277_v20, %v10906_v57  ;;  %v3385_v17 = vand.u32 4294901760, %v3384_v34 }
 0x25a   : > { %v3378_v19 = vand.u32 4294901760, %v3377_v3  ;;  %v3265_v21 = vsub.f32 %v9187_v37, %v10902_v41  ;;  %v10909_v44 = vand.u32 4294901760, %v9385_v15 }
 0x25b   : > { %v3272_v41 = vsub.f32 %v11278_v31, %v10910_v53  ;;  %v3392_v43 = vand.u32 4294901760, %v3391_v30  ;;  %v10921_v53 = vand.u32 4294901760, %v9407_v40 }
 0x25c   : > { %7019 = vmatpush3.bf16.msra.mxu1 %v9380_v8  ;;  %v3266_v3 = vand.u32 4294901760, %v3265_v21  ;;  %v3398_v30 = vsub.f32 %v9385_v15, %v10909_v44 }
 0x25d   : > { %7021 = vmatprep.subr.bf16.mxu1 %v9424_v48  ;;  %v3273_v18 = vand.u32 4294901760, %v3272_v41  ;;  %v9512_v21 = vpack.c.bf16 %v3392_v43, %v3385_v17  ;;  %v10917_v43 = vand.u32 4294901760, %v9403_v50  ;;  %v10918_v17 = vand.u32 4294901760, %v9405_v13 }
 0x25e   : > { %v9508_v57 = vpack.c.bf16 %v3266_v3, %v3259_v35  ;;  %v3399_v3 = vand.u32 4294901760, %v3398_v30  ;;  %v10938_v48 = vand.u32 4294901760, %v9432_v12 }
 0x260   : > { %7023 = vmatpush3.bf16.msra.mxu1 %v9430_v51 }
 0x261   : > { %7025 = vmatprep.subr.bf16.mxu1 %v7024_v36  ;;  %v3371_v36 = vand.u32 4294901760, %v3370_v55  ;;  %v11279_v55 = vld [vmem:[#allocation38_spill] sm:$0xff] }
 0x262   : > { %v10908_v33 = vand.u32 4294901760, %v11279_v55 }
 0x263   : > { %v9498_v22 = vpack.c.bf16 %v3378_v19, %v3371_v36  ;;  %v10913_v19 = vand.u32 4294901760, %v9389_v28  ;;  %v10914_v36 = vand.u32 4294901760, %v9391_v60 }
 0x264   : > { %v3279_v9 = vsub.f32 %v11279_v55, %v10908_v33  ;;  %v3405_v33 = vsub.f32 %v9387_v32, %v10912_v25 }
 0x265   : > { %v3286_v35 = vsub.f32 %v9389_v28, %v10913_v19  ;;  %v3293_v41 = vsub.f32 %v9391_v60, %v10914_v36  ;;  %v3412_v19 = vsub.f32 %v9403_v50, %v10917_v43  ;;  %v3419_v36 = vsub.f32 %v9405_v13, %v10918_v17 }
 0x266   : > { %v3280_v34 = vand.u32 4294901760, %v3279_v9  ;;  %v3406_v44 = vand.u32 4294901760, %v3405_v33  ;;  %v10919_v33 = vand.u32 4294901760, %v9409_v38 }
 0x267   : > { %v3287_v23 = vand.u32 4294901760, %v3286_v35  ;;  %v3294_v25 = vand.u32 4294901760, %v3293_v41  ;;  %v3413_v30 = vand.u32 4294901760, %v3412_v19  ;;  %v3420_v35 = vand.u32 4294901760, %v3419_v36 }
 0x268   : > { %v9528_v9 = vpack.c.bf16 %v3280_v34, %v3273_v18  ;;  %v9537_v6 = vpack.c.bf16 %v3406_v44, %v3399_v3  ;;  %v3300_v18 = vsub.f32 %v9407_v40, %v10921_v53  ;;  %v10920_v41 = vand.u32 4294901760, %v9412_v62 }
 0x269   : > { %v9543_v34 = vpack.c.bf16 %v3294_v25, %v3287_v23  ;;  %v3307_v43 = vsub.f32 %v9409_v38, %v10919_v33  ;;  %v10926_v44 = vand.u32 4294901760, %v9414_v47  ;;  %v10927_v3 = vand.u32 4294901760, %v9416_v45 }
 0x26a   : > { %v3301_v39 = vand.u32 4294901760, %v3300_v18  ;;  %v9551_v17 = vpack.c.bf16 %v3420_v35, %v3413_v30  ;;  %v3426_v23 = vsub.f32 %v9412_v62, %v10920_v41  ;;  %v10928_v25 = vand.u32 4294901760, %v9418_v42 }
 0x26b   : > { %v3308_v19 = vand.u32 4294901760, %v3307_v43  ;;  %v3433_v36 = vsub.f32 %v9414_v47, %v10926_v44  ;;  %v3314_v18 = vsub.f32 %v9416_v45, %v10927_v3  ;;  %v10931_v35 = vand.u32 4294901760, %v9426_v61 }
 0x26c   : > { %v3427_v33 = vand.u32 4294901760, %v3426_v23  ;;  %v3321_v30 = vsub.f32 %v9418_v42, %v10928_v25  ;;  %v10934_v41 = vand.u32 4294901760, %v9428_v26  ;;  %v10937_v25 = vand.u32 4294901760, %v9434_v27 }
 0x26d   : > { %v9568_v53 = vpack.c.bf16 %v3308_v19, %v3301_v39  ;;  %v3434_v43 = vand.u32 4294901760, %v3433_v36  ;;  %v3315_v51 = vand.u32 4294901760, %v3314_v18  ;;  %v3440_v3 = vsub.f32 %v9426_v61, %v10931_v35 }
 0x26e   : > { %v3322_v44 = vand.u32 4294901760, %v3321_v30  ;;  %v3447_v23 = vsub.f32 %v9428_v26, %v10934_v41  ;;  %v3328_v39 = vsub.f32 %v9432_v12, %v10938_v48  ;;  %v3335_v30 = vsub.f32 %v9434_v27, %v10937_v25  ;;  %v3015_v25 = vld [vmem:[%s10722_s3] sm:$0x3] }
 0x26f   : > { %v9578_v8 = vpack.c.bf16 %v3434_v43, %v3427_v33  ;;  %v3441_v36 = vand.u32 4294901760, %v3440_v3 }
 0x270   : > { %v9583_v19 = vpack.c.bf16 %v3322_v44, %v3315_v51  ;;  %v3448_v18 = vand.u32 4294901760, %v3447_v23  ;;  %v3329_v35 = vand.u32 4294901760, %v3328_v39  ;;  %v3336_v41 = vand.u32 4294901760, %v3335_v30 }
 0x272   : > { %v9588_v46 = vpack.c.bf16 %v3448_v18, %v3441_v36  ;;  %v9590_v58 = vpack.c.bf16 %v3336_v41, %v3329_v35  ;;  %v11280_v41 = vlaneseq  ;;  %v2999_v18 = vld [vmem:[%s10721_s2] sm:$0x3] }
 0x274   : > { %v3002_v36 = vshrl.u32 %v11280_v41, 7 }
 0x276   : > { %v3003_v23 = vsub.s32 0, %v3002_v36  ;;  %v3007_v30 = vsub.s32 1, %v3002_v36 }
 0x278   : > { %v3004_v3 = vrot.slane %v2999_v18, %v3003_v23  ;;  %v3008_v48 = vrot.slane %v2999_v18, %v3007_v30  ;;  %v3020_v44 = vrot.slane %v3015_v25, %v3003_v23  ;;  %v3024_v35 = vrot.slane %v3015_v25, %v3007_v30  ;;  %v11302_v18 = vld [vmem:[#allocation11_spill] sm:$0xff] }
 0x279   : > { %v11303_v30 = vld [vmem:[#allocation31_spill] sm:$0xff] }
 0x325   : > { %v2992_v51 = vpop.f32.mrb[0].mxu0 }
 0x326   : > { %v3011_v43 = vadd.f32 %v3004_v3, %v2992_v51  ;;  %v2994_v33 = vpop.f32.mrb[1].mxu0 }
 0x327   : > { %v3012_v39 = vadd.f32 %v3008_v48, %v2994_v33 }
 0x328   : > { %vm3013_vm1 = vcmp.ge.f32.partialorder %v3011_v43, 0.0  ;;  %v3027_v41 = vmul.f32 %v3020_v44, %v3011_v43 }
 0x329   : > { %vm3014_vm2 = vcmp.ge.f32.partialorder %v3012_v39, 0.0  ;;  %v3028_v5 = vmul.f32 %v3024_v35, %v3012_v39  ;;  %v11300_v35 = vld [vmem:[#allocation5_spill] sm:$0xff] }
 0x32a   : > { %v3029_v52 = vsel %vm3013_vm1, %v3011_v43, %v3027_v41  ;;  %v11304_v41 = vld [vmem:[#allocation33_spill] sm:$0xff] }
 0x32b   : > { %v3039_v11 = vrot.slane %v3029_v52, 7  ;;  %v9631_v12 = vand.u32 4294901760, %v3029_v52  ;;  %v3030_v36 = vsel %vm3014_vm2, %v3012_v39, %v3028_v5  ;;  %v11301_v39 = vld [vmem:[#allocation9_spill] sm:$0xff] }
 0x32c   : > { %v3040_v27 = vrot.slane %v3030_v36, 7  ;;  %v9633_v61 = vand.u32 4294901760, %v3030_v36 }
 0x32d   : > { %3043 = vst [vmem:[#allocation3] sm:$0xfe] %v3039_v11  ;;  %v9636_v23 = vsub.f32 %v3029_v52, %v9631_v12  ;;  %v11281_v11 = vpack.c.bf16 %v11266_v16, %v11265_v7  ;;  %v11282_v52 = vpack.c.bf16 %v11268_v54, %v11267_v0 }
 0x32e   : > { %3044 = vst [vmem:[#allocation3 + $0x8] sm:$0xfe] %v3040_v27  ;;  %v3211_v25 = vsub.f32 %v3030_v36, %v9633_v61  ;;  %v11287_v27 = vpack.c.bf16 %v11277_v20, %v9189_v49  ;;  %v11305_v36 = vld [vmem:[#allocation34_spill] sm:$0xff] }
 0x32f   : > { %v3218_v48 = vand.u32 4294901760, %v9636_v23 }
 0x330   : > { %v3212_v33 = vand.u32 4294901760, %v3211_v25 }
 0x331   : > { %v3219_v43 = vsub.f32 %v9636_v23, %v3218_v48 }
 0x332   : > { %v3213_v51 = vsub.f32 %v3211_v25, %v3212_v33 }
 0x333   : > { %v3220_v5 = vand.u32 4294901760, %v3219_v43  ;;  %v11307_v43 = vld [vmem:[#allocation39_spill] sm:$0xff] }
 0x334   : > { %v3214_v44 = vand.u32 4294901760, %v3213_v51  ;;  %v11308_v51 = vld [vmem:[#allocation12_spill] sm:$0xff] }
 0x336   : > { %3215 = vmatprep.mubr.f32.mxu1 %v3214_v44  ;;  %v11309_v44 = vld [vmem:[#allocation13_spill] sm:$0xff] }
 0x337   : > { %3221 = vmatmul.mubr.f32.vlgmr.msra.gmra.mrb[0].mxu1 %v3220_v5  ;;  %v11310_v5 = vld [vmem:[#allocation14_spill] sm:$0xff] }
 0x338   : > { %7027 = vmatpush3.bf16.msra.mxu1 %v9467_v59  ;;  %3451 = vmatprep.mubr.f32.mxu1 %v9633_v61  ;;  %v11291_v59 = vpack.c.bf16 %v9405_v13, %v9403_v50 }
 0x339   : > { %7029 = vmatprep.subr.bf16.mxu1 %v9474_v10  ;;  %v11292_v10 = vpack.c.bf16 %v9409_v38, %v9407_v40 }
 0x33c   : > { %7031 = vmatpush3.bf16.msra.mxu1 %v9481_v4  ;;  %v11293_v4 = vpack.c.bf16 %v9414_v47, %v9412_v62 }
 0x33d   : > { %7033 = vmatprep.subr.bf16.mxu1 %v9498_v22  ;;  %v11288_v22 = vpack.c.bf16 %v11279_v55, %v11278_v31 }
 0x340   : > { %7035 = vmatpush3.bf16.msra.mxu1 %v9508_v57  ;;  %v11290_v57 = vpack.c.bf16 %v9391_v60, %v9389_v28 }
 0x341   : > { %7037 = vmatprep.subr.bf16.mxu1 %v9512_v21  ;;  %v11294_v21 = vpack.c.bf16 %v9418_v42, %v9416_v45 }
 0x344   : > { %7039 = vmatpush3.bf16.msra.mxu1 %v9528_v9 }
 0x345   : > { %7041 = vmatprep.subr.bf16.mxu1 %v9537_v6  ;;  %v11283_v6 = vpack.c.bf16 %v11275_v29, %v11274_v1 }
 0x348   : > { %7043 = vmatpush3.bf16.msra.mxu1 %v9543_v34  ;;  %v11297_v34 = vld [vmem:[#allocation4_spill] sm:$0xff] }
 0x349   : > { %7045 = vmatprep.subr.bf16.mxu1 %v9551_v17  ;;  %v11295_v17 = vld [vmem:[#allocation18_spill] sm:$0xff] }
 0x34a   : > { %v11296_v9 = vpack.c.bf16 %v9428_v26, %v11295_v17 }
 0x34c   : > { %7047 = vmatpush3.bf16.msra.mxu1 %v9568_v53  ;;  %v11289_v53 = vpack.c.bf16 %v9387_v32, %v9385_v15 }
 0x34d   : > { %7049 = vmatprep.subr.bf16.mxu1 %v9578_v8  ;;  %v11286_v8 = vpack.c.bf16 %v9187_v37, %v9185_v24 }
 0x350   : > { %7051 = vmatpush3.bf16.msra.mxu1 %v9583_v19  ;;  %v11298_v19 = vld [vmem:[#allocation21_spill] sm:$0xff] }
 0x351   : > { %7053 = vmatprep.subr.bf16.mxu1 %v9588_v46  ;;  %v11284_v46 = vpack.c.bf16 %v9172_v2, %v9170_v56  ;;  %v11299_v3 = vpack.c.bf16 %v11297_v34, %v11298_v19 }
 0x354   : > { %7055 = vmatpush3.bf16.msra.mxu1 %v9590_v58  ;;  %v11285_v58 = vpack.c.bf16 %v9183_v14, %v11276_v63 }
 0x355   : > { %7057 = vmatprep.subr.bf16.mxu1 %v11281_v11  ;;  %v11311_v11 = vld [vmem:[#allocation16_spill] sm:$0xff] }
 0x357   : > { %3453 = vmatmul.mubr.f32.vlgmr.msra.gmra.mrb[2].mxu1 %v9631_v12 }
 0x358   : > { %7059 = vmatpush3.bf16.msra.mxu1 %v11282_v52  ;;  %3588 = vmatprep.mubr.f32.mxu1 %v3211_v25  ;;  %v11306_v25 = vld [vmem:[#allocation35_spill] sm:$0xff] }
 0x359   : > { %7061 = vmatprep.subr.bf16.mxu1 %v11283_v6  ;;  %v11313_v52 = vld [vmem:[#allocation27_spill] sm:$0xff]  ;;  %v11314_v6 = vld [vmem:[#allocation28_spill] sm:$0xff] }
 0x35c   : > { %7063 = vmatpush3.bf16.msra.mxu1 %v11284_v46  ;;  %v11315_v46 = vand.u32 4294901760, %v11265_v7  ;;  %v11322_v7 = vand.u32 4294901760, %v9170_v56  ;;  %v11329_v56 = vand.u32 4294901760, %v11277_v20  ;;  %v11336_v20 = vand.u32 4294901760, %v9403_v50 }
 0x35d   : > { %7065 = vmatprep.subr.bf16.mxu1 %v11285_v58  ;;  %v11316_v58 = vand.u32 4294901760, %v11266_v16  ;;  %v11323_v16 = vand.u32 4294901760, %v9172_v2  ;;  %v11330_v2 = vand.u32 4294901760, %v11278_v31  ;;  %v11337_v31 = vand.u32 4294901760, %v9405_v13 }
 0x35e   : > { %v11343_v50 = vand.u32 4294901760, %v9418_v42  ;;  %v11344_v13 = vand.u32 4294901760, %v11295_v17  ;;  %v9810_v42 = vld [vmem:[%s10723_s4 + $0x80] sm:$0xff]  ;;  %v3047_v17 = vld [vmem:[#allocation3] sm:$0xff] }
 0x360   : > { %7067 = vmatpush3.bf16.msra.mxu1 %v11286_v8  ;;  %v7120_v8 = vpack.c.bf16 %v11316_v58, %v11315_v46 }
 0x361   : > { %7069 = vmatprep.subr.bf16.mxu1 %v11287_v27  ;;  %v11317_v27 = vld [vmem:[#allocation20_spill] sm:$0xff] }
 0x364   : > { %7071 = vmatpush3.bf16.msra.mxu1 %v11288_v22  ;;  %v11318_v22 = vand.u32 4294901760, %v11267_v0  ;;  %v7126_v0 = vpack.c.bf16 %v11323_v16, %v11322_v7  ;;  %v9861_v7 = vld [vmem:[%s10723_s4 + $0xa8] sm:$0xff] }
 0x365   : > { %7073 = vmatprep.subr.bf16.mxu1 %v11289_v53  ;;  %v11319_v53 = vand.u32 4294901760, %v11268_v54  ;;  %v11324_v54 = vand.u32 4294901760, %v11276_v63  ;;  %v11331_v63 = vand.u32 4294901760, %v11279_v55  ;;  %v11338_v55 = vand.u32 4294901760, %v9407_v40 }
 0x366   : > { %v11345_v40 = vand.u32 4294901760, %v9428_v26 }
 0x367   : > { %v7134_v46 = vpack.c.bf16 %v11331_v63, %v11330_v2 }
 0x368   : > { %7075 = vmatpush3.bf16.msra.mxu1 %v11290_v57  ;;  %v7122_v57 = vpack.c.bf16 %v11319_v53, %v11318_v22  ;;  %v7140_v22 = vpack.c.bf16 %v11337_v31, %v11336_v20  ;;  %v3074_v20 = vld [vmem:[%s10723_s4 + $0xc8] sm:$0xff] }
 0x369   : > { %7077 = vmatprep.subr.bf16.mxu1 %v11291_v59  ;;  %v11320_v59 = vand.u32 4294901760, %v11274_v1 }
 0x36c   : > { %7079 = vmatpush3.bf16.msra.mxu1 %v11292_v10  ;;  %v11321_v10 = vand.u32 4294901760, %v11275_v29  ;;  %v11326_v29 = vand.u32 4294901760, %v9185_v24  ;;  %v11333_v24 = vand.u32 4294901760, %v9387_v32  ;;  %v11340_v32 = vand.u32 4294901760, %v9412_v62 }
 0x36d   : > { %7081 = vmatprep.subr.bf16.mxu1 %v11293_v4  ;;  %v11347_v62 = vand.u32 4294901760, %v11297_v34  ;;  %v4025_v34 = vand.u32 4294901760, %v9810_v42 }
 0x36e   : > { %v7124_v4 = vpack.c.bf16 %v11321_v10, %v11320_v59  ;;  %v7148_v10 = vpack.c.bf16 %v11345_v40, %v11344_v13  ;;  %v3075_v40 = vld [vmem:[%s10723_s4 + $0xd0] sm:$0xff] }
 0x370   : > { %7083 = vmatpush3.bf16.msra.mxu1 %v11294_v21  ;;  %v11325_v21 = vand.u32 4294901760, %v9183_v14  ;;  %v11332_v14 = vand.u32 4294901760, %v9385_v15  ;;  %v11339_v15 = vand.u32 4294901760, %v9409_v38  ;;  %v11346_v38 = vand.u32 4294901760, %v11298_v19 }
 0x371   : > { %7085 = vmatprep.subr.bf16.mxu1 %v11296_v9  ;;  %v11328_v9 = vand.u32 4294901760, %v9189_v49  ;;  %v11335_v49 = vand.u32 4294901760, %v9391_v60  ;;  %v11342_v60 = vand.u32 4294901760, %v9416_v45 }
 0x372   : > { %v7128_v1 = vpack.c.bf16 %v11325_v21, %v11324_v54  ;;  %v7136_v58 = vpack.c.bf16 %v11333_v24, %v11332_v14  ;;  %v7142_v53 = vpack.c.bf16 %v11339_v15, %v11338_v55 }
 0x373   : > { %v7146_v59 = vpack.c.bf16 %v11343_v50, %v11342_v60  ;;  %v3058_v60 = vld [vmem:[%s10723_s4 + $0x48] sm:$0xff]  ;;  %v9923_v50 = vsub.f32 %v9810_v42, %v4025_v34 }
 0x374   : > { %7087 = vmatpush3.bf16.msra.mxu1 %v11299_v3  ;;  %v7132_v3 = vpack.c.bf16 %v11329_v56, %v11328_v9  ;;  %v3054_v9 = vld [vmem:[%s10723_s4 + $0x28] sm:$0xff]  ;;  %v3071_v56 = vld [vmem:[%s10723_s4 + $0xb0] sm:$0xff] }
 0x375   : > { %7089 = vmatprep.subr.bf16.mxu1 %v11300_v35  ;;  %v3992_v14 = vand.u32 4294901760, %v3054_v9 }
 0x377   : > { %3591 = vmatmul.mubr.f32.vlgmr.msra.gmra.mrb[4].mxu1 %v9636_v23  ;;  %v11327_v23 = vand.u32 4294901760, %v9187_v37  ;;  %v11334_v37 = vand.u32 4294901760, %v9389_v28  ;;  %v11341_v28 = vand.u32 4294901760, %v9414_v47  ;;  %v3048_v47 = vld [vmem:[#allocation3 + $0x8] sm:$0xff] }
 0x378   : > { %7091 = vmatpush3.bf16.msra.mxu1 %v11301_v39  ;;  %3695 = vmatprep.mubr.f32.mxu1 %v3212_v33  ;;  %v11312_v33 = vld [vmem:[#allocation24_spill] sm:$0xff]  ;;  %v9803_v45 = vand.u32 4294901760, %v3048_v47 }
 0x379   : > { %7093 = vmatprep.subr.bf16.mxu1 %v11302_v18 }
 0x37a   : > { %v9818_v26 = vsub.f32 %v3048_v47, %v9803_v45 }
 0x37c   : > { %7095 = vmatpush3.bf16.msra.mxu1 %v11303_v30 }
 0x37d   : > { %7097 = vmatprep.subr.bf16.mxu1 %v11304_v41 }
 0x380   : > { %7099 = vmatpush3.bf16.msra.mxu1 %v11305_v36 }
 0x381   : > { %7101 = vmatprep.subr.bf16.mxu1 %v11306_v25 }
 0x384   : > { %7103 = vmatpush3.bf16.msra.mxu1 %v11307_v43 }
 0x385   : > { %7105 = vmatprep.subr.bf16.mxu1 %v11308_v51 }
 0x388   : > { %7107 = vmatpush3.bf16.msra.mxu1 %v11309_v44 }
 0x389   : > { %7109 = vmatprep.subr.bf16.mxu1 %v11310_v5 }
 0x38c   : > { %7111 = vmatpush3.bf16.msra.mxu1 %v11311_v11 }
 0x38d   : > { %7113 = vmatprep.subr.bf16.mxu1 %v11312_v33 }
 0x390   : > { %7115 = vmatpush3.bf16.msra.mxu1 %v11313_v52 }
 0x391   : > { %7117 = vmatprep.subr.bf16.mxu1 %v11314_v6 }
 0x394   : > { %7119 = vmatpush3.bf16.msra.mxu1 %v11317_v27 }
 0x395   : > { %7121 = vmatprep.subr.bf16.mxu1 %v7120_v8  ;;  %v7138_v8 = vpack.c.bf16 %v11335_v49, %v11334_v37  ;;  %v3055_v49 = vld [vmem:[%s10723_s4 + $0x30] sm:$0xff] }
 0x396   : > { %v3995_v55 = vand.u32 4294901760, %v3055_v49 }
 0x397   : > { %3699 = vmatmul.mubr.f32.vlgmr.msra.gmra.mrb[6].mxu1 %v3218_v48  ;;  %v7130_v48 = vpack.c.bf16 %v11327_v23, %v11326_v29  ;;  %v4040_v23 = vand.u32 4294901760, %v9861_v7 }
 0x398   : > { %7123 = vmatpush3.bf16.msra.mxu1 %v7122_v57  ;;  %3865 = vmatprep.mubr.f32.mxu1 %v9633_v61  ;;  %v7144_v57 = vpack.c.bf16 %v11341_v28, %v11340_v32  ;;  %v4052_v28 = vand.u32 4294901760, %v3074_v20 }
 0x399   : > { %7125 = vmatprep.subr.bf16.mxu1 %v7124_v4  ;;  %v7150_v4 = vpack.c.bf16 %v11347_v62, %v11346_v38 }
 0x39c   : > { %7127 = vmatpush3.bf16.msra.mxu1 %v7126_v0 }
 0x39d   : > { %7129 = vmatprep.subr.bf16.mxu1 %v7128_v1 }
 0x3a0   : > { %7131 = vmatpush3.bf16.msra.mxu1 %v7130_v48  ;;  %v3053_v48 = vld [vmem:[%s10723_s4 + $0x20] sm:$0xff] }
 0x3a1   : > { %7133 = vmatprep.subr.bf16.mxu1 %v7132_v3  ;;  %v3072_v3 = vld [vmem:[%s10723_s4 + $0xb8] sm:$0xff] }
 0x3a2   : > { %v4046_v37 = vand.u32 4294901760, %v3072_v3 }
 0x3a4   : > { %7135 = vmatpush3.bf16.msra.mxu1 %v7134_v46  ;;  %v3989_v46 = vand.u32 4294901760, %v3053_v48 }
 0x3a5   : > { %7137 = vmatprep.subr.bf16.mxu1 %v7136_v58  ;;  %v4043_v58 = vand.u32 4294901760, %v3071_v56 }
 0x3a8   : > { %7139 = vmatpush3.bf16.msra.mxu1 %v7138_v8  ;;  %v3073_v8 = vld [vmem:[%s10723_s4 + $0xc0] sm:$0xff] }
 0x3a9   : > { %7141 = vmatprep.subr.bf16.mxu1 %v7140_v22  ;;  %v9911_v22 = vpack.c.bf16 %v3992_v14, %v3989_v46  ;;  %v4049_v32 = vand.u32 4294901760, %v3073_v8 }
 0x3ab   : > { %11350 = vst [vmem:[#allocation25_spill] sm:$0xff] %v9911_v22 }
 0x3ac   : > { %7143 = vmatpush3.bf16.msra.mxu1 %v7142_v53  ;;  %v9914_v53 = vpack.c.bf16 %v4046_v37, %v4043_v58 }
 0x3ad   : > { %7145 = vmatprep.subr.bf16.mxu1 %v7144_v57  ;;  %v3057_v57 = vld [vmem:[%s10723_s4 + $0x40] sm:$0xff] }
 0x3ae   : > { %11351 = vst [vmem:[#allocation6_spill] sm:$0xff] %v9914_v53 }
 0x3b0   : > { %7147 = vmatpush3.bf16.msra.mxu1 %v7146_v59 }
 0x3b1   : > { %7149 = vmatprep.subr.bf16.mxu1 %v7148_v10  ;;  %v3076_v10 = vld [vmem:[%s10723_s4 + $0xd8] sm:$0xff] }
 0x3b4   : > { %7151 = vmatpush3.bf16.msra.mxu1 %v7150_v4 }
 0x3b5   : > { %7153 = vmatprep.subr.bf16.mxu1 %v11300_v35  ;;  %v3049_v35 = vld [vmem:[%s10723_s4] sm:$0xff] }
 0x3b7   : > { %3867 = vmatmul.mubr.f32.vlgmr.msra.gmra.mrb[8].mxu1 %v9631_v12 }
 0x3b8   : > { %7155 = vmatpush3.bf16.msra.mxu1 %v11301_v39  ;;  %3969 = vmatprep.mubr.f32.mxu1 %v9633_v61  ;;  %v9815_v61 = vld [vmem:[%s10723_s4 + $0x88] sm:$0xff] }
 0x3b9   : > { %7157 = vmatprep.subr.bf16.mxu1 %v11302_v18  ;;  %v4028_v19 = vand.u32 4294901760, %v9815_v61  ;;  %v9830_v39 = vld [vmem:[%s10723_s4 + $0x8] sm:$0xff]  ;;  %v10952_v18 = vand.u32 4294901760, %v9818_v26 }
 0x3bb   : > { %v9926_v59 = vsub.f32 %v9815_v61, %v4028_v19 }
 0x3bc   : > { %7159 = vmatpush3.bf16.msra.mxu1 %v11303_v30  ;;  %v3067_v30 = vld [vmem:[%s10723_s4 + $0x90] sm:$0xff] }
 0x3bd   : > { %7161 = vmatprep.subr.bf16.mxu1 %v11304_v41  ;;  %v3068_v41 = vld [vmem:[%s10723_s4 + $0x98] sm:$0xff] }
 0x3c0   : > { %7163 = vmatpush3.bf16.msra.mxu1 %v11305_v36  ;;  %v9839_v36 = vand.u32 4294901760, %v3047_v17 }
 0x3c1   : > { %7165 = vmatprep.subr.bf16.mxu1 %v11306_v25  ;;  %v3977_v25 = vand.u32 4294901760, %v3049_v35 }
 0x3c2   : > { %v9864_v16 = vsub.f32 %v3047_v17, %v9839_v36 }
 0x3c3   : > { %v9928_v13 = vsub.f32 %v3049_v35, %v3977_v25  ;;  %v9954_v35 = vld [vmem:[%s10723_s4 + $0x50] sm:$0xff] }
 0x3c4   : > { %7167 = vmatpush3.bf16.msra.mxu1 %v11307_v43  ;;  %v3980_v43 = vand.u32 4294901760, %v9830_v39  ;;  %v10951_v2 = vand.u32 4294901760, %v9864_v16 }
 0x3c5   : > { %7169 = vmatprep.subr.bf16.mxu1 %v11308_v51  ;;  %v9844_v51 = vpack.c.bf16 %v4028_v19, %v4025_v34  ;;  %v4001_v34 = vand.u32 4294901760, %v3057_v57  ;;  %v4004_v19 = vand.u32 4294901760, %v3058_v60  ;;  %v11360_v38 = vand.u32 4294901760, %v9928_v13 }
 0x3c6   : > { %v9867_v0 = vpack.c.bf16 %v3980_v43, %v3977_v25  ;;  %v9908_v31 = vsub.f32 %v9864_v16, %v10951_v2  ;;  %v9938_v62 = vsub.f32 %v9830_v39, %v3980_v43  ;;  %v9959_v39 = vld [vmem:[%s10723_s4 + $0x58] sm:$0xff]  ;;  %v4055_v25 = vand.u32 4294901760, %v3075_v40  ;;  %v10021_v2 = vld [vmem:[%s10723_s4 + $0xf0] sm:$0xff] }
 0x3c7   : > { %v4058_v43 = vand.u32 4294901760, %v3076_v10 }
 0x3c8   : > { %7171 = vmatpush3.bf16.msra.mxu1 %v11309_v44  ;;  %v4031_v44 = vand.u32 4294901760, %v3067_v30 }
 0x3c9   : > { %7173 = vmatprep.subr.bf16.mxu1 %v11310_v5  ;;  %v4034_v5 = vand.u32 4294901760, %v3068_v41 }
 0x3ca   : > { %v9940_v4 = vsub.f32 %v3067_v30, %v4031_v44 }
 0x3cb   : > { %v9870_v1 = vpack.c.bf16 %v4034_v5, %v4031_v44  ;;  %v9942_v47 = vsub.f32 %v3068_v41, %v4034_v5  ;;  %v9964_v41 = vpack.c.bf16 %v4052_v28, %v4049_v32  ;;  %v9967_v44 = vsub.f32 %v9861_v7, %v4040_v23 }
 0x3cc   : > { %7175 = vmatpush3.bf16.msra.mxu1 %v11311_v11  ;;  %v3051_v11 = vld [vmem:[%s10723_s4 + $0x10] sm:$0xff]  ;;  %v9969_v5 = vsub.f32 %v3053_v48, %v3989_v46  ;;  %v4007_v7 = vand.u32 4294901760, %v9954_v35  ;;  %v9997_v48 = vld [vmem:[%s10723_s4 + $0x68] sm:$0xff]  ;;  %v10007_v46 = vsub.f32 %v3073_v8, %v4049_v32  ;;  %v10026_v8 = vld [vmem:[%s10723_s4 + $0xf8] sm:$0xff]  ;;  %v10028_v32 = vsub.f32 %v3058_v60, %v4004_v19 }
 0x3cd   : > { %7177 = vmatprep.subr.bf16.mxu1 %v11312_v33  ;;  %v3052_v33 = vld [vmem:[%s10723_s4 + $0x18] sm:$0xff]  ;;  %v3983_v54 = vand.u32 4294901760, %v3051_v11  ;;  %11353 = vst [vmem:[#allocation8_spill] sm:$0xff] %v9964_v41 }
 0x3ce   : > { %v3986_v21 = vand.u32 4294901760, %v3052_v33 }
 0x3cf   : > { %v9944_v42 = vsub.f32 %v3051_v11, %v3983_v54  ;;  %v9971_v11 = vsub.f32 %v3054_v9, %v3992_v14  ;;  %v10009_v14 = vpack.c.bf16 %v4058_v43, %v4055_v25 }
 0x3d0   : > { %7179 = vmatpush3.bf16.msra.mxu1 %v11313_v52  ;;  %v4075_v52 = vsub.f32 %v9818_v26, %v10952_v18  ;;  %v9888_v63 = vpack.c.bf16 %v3986_v21, %v3983_v54  ;;  %v9946_v61 = vsub.f32 %v3052_v33, %v3986_v21  ;;  %v9973_v33 = vsub.f32 %v3071_v56, %v4043_v58 }
 0x3d1   : > { %7181 = vmatprep.subr.bf16.mxu1 %v11314_v6  ;;  %v3069_v6 = vld [vmem:[%s10723_s4 + $0xa0] sm:$0xff]  ;;  %v9983_v54 = vsub.f32 %v3072_v3, %v4046_v37  ;;  %v9985_v21 = vsub.f32 %v3055_v49, %v3995_v55  ;;  %v10959_v56 = vand.u32 4294901760, %v9923_v50  ;;  %v10962_v3 = vand.u32 4294901760, %v9926_v59  ;;  %11355 = vst [vmem:[#allocation29_spill] sm:$0xff] %v10009_v14 }
 0x3d2   : > { %v4037_v29 = vand.u32 4294901760, %v3069_v6  ;;  %11348 = vst [vmem:[#allocation15_spill] sm:$0xff] %v9888_v63  ;;  %v10012_v49 = vsub.f32 %v3074_v20, %v4052_v28  ;;  %v10035_v28 = vld [vmem:[%s10723_s4 + $0x70] sm:$0xff] }
 0x3d3   : > { %v4204_v60 = vsub.f32 %v9923_v50, %v10959_v56  ;;  %v11358_v56 = vand.u32 4294901760, %v9997_v48 }
 0x3d4   : > { %7183 = vmatpush3.bf16.msra.mxu1 %v11317_v27  ;;  %v4076_v27 = vand.u32 4294901760, %v4075_v52  ;;  %v9891_v24 = vpack.c.bf16 %v4040_v23, %v4037_v29  ;;  %v9961_v30 = vsub.f32 %v3069_v6, %v4037_v29  ;;  %v3077_v52 = vld [vmem:[%s10723_s4 + $0xe0] sm:$0xff]  ;;  %v9981_v6 = vld [vmem:[%s10723_s4 + $0xe8] sm:$0xff]  ;;  %v4010_v29 = vand.u32 4294901760, %v9959_v39 }
 0x3d5   : > { %7185 = vmatprep.subr.bf16.mxu1 %v9844_v51  ;;  %v9992_v23 = vld [vmem:[%s10723_s4 + $0x60] sm:$0xff]  ;;  %v4061_v58 = vand.u32 4294901760, %v3077_v52  ;;  %v4064_v37 = vand.u32 4294901760, %v9981_v6 }
 0x3d6   : > { %11349 = vst [vmem:[#allocation19_spill] sm:$0xff] %v9891_v24  ;;  %v10030_v20 = vpack.c.bf16 %v4010_v29, %v4007_v7 }
 0x3d7   : > { %3971 = vmatmul.mubr.f32.vlgmr.msra.gmra.mrb[10].mxu1 %v9631_v12  ;;  %v3056_v12 = vld [vmem:[%s10723_s4 + $0x38] sm:$0xff] }
 0x3d8   : > { %7187 = vmatpush3.bf16.msra.mxu1 %v9867_v0  ;;  %4077 = vmatprep.mubr.f32.mxu1 %v4076_v27  ;;  %v3998_v15 = vand.u32 4294901760, %v3056_v12  ;;  %v10002_v27 = vpack.c.bf16 %v4004_v19, %v4001_v34  ;;  %11356 = vst [vmem:[#allocation30_spill] sm:$0xff] %v10030_v20  ;;  %v4211_v19 = vsub.f32 %v9926_v59, %v10962_v3  ;;  %v11362_v3 = vand.u32 4294901760, %v9940_v4 }
 0x3d9   : > { %7189 = vmatprep.subr.bf16.mxu1 %v9870_v1 }
 0x3da   : > { %v9949_v17 = vpack.c.bf16 %v3998_v15, %v3995_v55  ;;  %v10000_v9 = vsub.f32 %v3056_v12, %v3998_v15  ;;  %11354 = vst [vmem:[#allocation10_spill] sm:$0xff] %v10002_v27  ;;  %v10014_v55 = vsub.f32 %v3057_v57, %v4001_v34  ;;  %v4013_v12 = vand.u32 4294901760, %v9992_v23  ;;  %v10040_v57 = vld [vmem:[%s10723_s4 + $0x78] sm:$0xff] }
 0x3db   : > { %v10056_v34 = vpack.c.bf16 %v4064_v37, %v4061_v58  ;;  %v4218_v15 = vsub.f32 %v9940_v4, %v11362_v3  ;;  %v10096_v3 = vsub.f32 %v9959_v39, %v4010_v29  ;;  %v11369_v39 = vand.u32 4294901760, %v10035_v28 }
 0x3dc   : > { %7191 = vmatpush3.bf16.msra.mxu1 %v9888_v63  ;;  %11352 = vst [vmem:[#allocation7_spill] sm:$0xff] %v9949_v17  ;;  %v11374_v63 = vand.u32 4294901760, %v9973_v33 }
 0x3dd   : > { %7193 = vmatprep.subr.bf16.mxu1 %v9891_v24  ;;  %11357 = vst [vmem:[#allocation32_spill] sm:$0xff] %v10056_v34  ;;  %v11367_v24 = vand.u32 4294901760, %v9944_v42 }
 0x3e0   : > { %7195 = vmatpush3.bf16.msra.mxu1 %v9911_v22  ;;  %v10084_v22 = vsub.f32 %v9954_v35, %v4007_v7  ;;  %v4219_v7 = vand.u32 4294901760, %v4218_v15  ;;  %v10128_v15 = vsub.f32 %v9992_v23, %v4013_v12  ;;  %v10980_v35 = vand.u32 4294901760, %v9985_v21 }
 0x3e1   : > { %7197 = vmatprep.subr.bf16.mxu1 %v9914_v53  ;;  %v10064_v53 = vpack.c.bf16 %v11358_v56, %v4013_v12  ;;  %v4212_v56 = vand.u32 4294901760, %v4211_v19  ;;  %v10975_v19 = vand.u32 4294901760, %v9967_v44  ;;  %v10982_v12 = vand.u32 4294901760, %v10012_v49 }
 0x3e2   : > { %v11376_v23 = vand.u32 4294901760, %v9908_v31 }
 0x3e3   : > { %11359 = vst [vmem:[#allocation36_spill] sm:$0xff] %v10064_v53 }
 0x3e4   : > { %7199 = vmatpush3.bf16.msra.mxu1 %v9949_v17  ;;  %v10060_v17 = vsub.f32 %v3076_v10, %v4058_v43  ;;  %v4205_v43 = vand.u32 4294901760, %v4204_v60  ;;  %v11365_v10 = vand.u32 4294901760, %v10026_v8 }
 0x3e5   : > { %7201 = vmatprep.subr.bf16.mxu1 %v9964_v41  ;;  %v10054_v41 = vsub.f32 %v3075_v40, %v4055_v25  ;;  %v4092_v40 = vsub.f32 %v9928_v13, %v11360_v38  ;;  %v11361_v25 = vand.u32 4294901760, %v9938_v62 }
 0x3e7   : > { %v4099_v18 = vsub.f32 %v9938_v62, %v11361_v25  ;;  %v11364_v25 = vand.u32 4294901760, %v10021_v2 }
 0x3e8   : > { %7203 = vmatpush3.bf16.msra.mxu1 %v10002_v27 }
 0x3e9   : > { %7205 = vmatprep.subr.bf16.mxu1 %v10009_v14  ;;  %v11363_v14 = vand.u32 4294901760, %v9942_v47  ;;  %v10091_v27 = vpack.c.bf16 %v11365_v10, %v11364_v25  ;;  %v4106_v10 = vsub.f32 %v9944_v42, %v11367_v24  ;;  %v11368_v25 = vand.u32 4294901760, %v9946_v61 }
 0x3eb   : > { %v4225_v38 = vsub.f32 %v9942_v47, %v11363_v14  ;;  %11366 = vst [vmem:[#allocation37_spill] sm:$0xff] %v10091_v27  ;;  %v4093_v14 = vand.u32 4294901760, %v4092_v40  ;;  %v4113_v60 = vsub.f32 %v9946_v61, %v11368_v25  ;;  %v4239_v25 = vsub.f32 %v9967_v44, %v10975_v19 }
 0x3ec   : > { %7207 = vmatpush3.bf16.msra.mxu1 %v10030_v20  ;;  %v10098_v20 = vsub.f32 %v3077_v52, %v4061_v58  ;;  %v11370_v52 = vand.u32 4294901760, %v10040_v57  ;;  %v7216_v58 = vpack.c.bf16 %v4212_v56, %v4205_v43  ;;  %v11372_v43 = vand.u32 4294901760, %v9969_v5 }
 0x3ed   : > { %7209 = vmatprep.subr.bf16.mxu1 %v10056_v34  ;;  %v4100_v34 = vand.u32 4294901760, %v4099_v18  ;;  %v4226_v40 = vand.u32 4294901760, %v4225_v38  ;;  %v11371_v18 = vand.u32 4294901760, %v9961_v30  ;;  %v11373_v38 = vand.u32 4294901760, %v9971_v11 }
 0x3ee   : > { %v10113_v29 = vpack.c.bf16 %v11370_v52, %v11369_v39  ;;  %v10125_v39 = vsub.f32 %v9981_v6, %v4064_v37  ;;  %v4120_v56 = vsub.f32 %v9969_v5, %v11372_v43  ;;  %v4107_v19 = vand.u32 4294901760, %v4106_v10 }
 0x3ef   : > { %v4232_v24 = vsub.f32 %v9961_v30, %v11371_v18  ;;  %v4127_v52 = vsub.f32 %v9971_v11, %v11373_v38  ;;  %v7218_v18 = vpack.c.bf16 %v4100_v34, %v4093_v14  ;;  %v7220_v6 = vpack.c.bf16 %v4226_v40, %v4219_v7 }
 0x3f0   : > { %7211 = vmatpush3.bf16.msra.mxu1 %v10064_v53  ;;  %v10981_v37 = vand.u32 4294901760, %v10000_v9  ;;  %v4240_v53 = vand.u32 4294901760, %v4239_v25  ;;  %v4246_v34 = vsub.f32 %v9973_v33, %v11374_v63  ;;  %v4121_v10 = vand.u32 4294901760, %v4120_v56 }
 0x3f1   : > { %7213 = vmatprep.subr.bf16.mxu1 %v10091_v27  ;;  %v4114_v27 = vand.u32 4294901760, %v4113_v60  ;;  %v4233_v43 = vand.u32 4294901760, %v4232_v24  ;;  %v11375_v60 = vand.u32 4294901760, %v9983_v54  ;;  %v4128_v38 = vand.u32 4294901760, %v4127_v52 }
 0x3f2   : > { %v10984_v7 = vand.u32 4294901760, %v10014_v55  ;;  %v10983_v40 = vand.u32 4294901760, %v10028_v32  ;;  %v4134_v24 = vsub.f32 %v9985_v21, %v10980_v35  ;;  %v4141_v56 = vsub.f32 %v10000_v9, %v10981_v37 }
 0x3f3   : > { %v4253_v14 = vsub.f32 %v9983_v54, %v11375_v60  ;;  %v11377_v52 = vand.u32 4294901760, %v10007_v46  ;;  %v4247_v60 = vand.u32 4294901760, %v4246_v34  ;;  %v11379_v25 = vand.u32 4294901760, %v10021_v2 }
 0x3f4   : > { %7215 = vmatpush3.bf16.msra.mxu1 %v10113_v29  ;;  %v7226_v63 = vpack.c.bf16 %v4128_v38, %v4121_v10  ;;  %v4142_v10 = vand.u32 4294901760, %v4141_v56 }
 0x3f5   : > { %7217 = vmatprep.subr.bf16.mxu1 %v7216_v58  ;;  %v7222_v58 = vpack.c.bf16 %v4114_v27, %v4107_v19  ;;  %v4260_v31 = vsub.f32 %v10007_v46, %v11377_v52  ;;  %v4267_v27 = vsub.f32 %v10012_v49, %v10982_v12  ;;  %v11378_v19 = vand.u32 4294901760, %v9997_v48 }
 0x3f6   : > { %v4254_v35 = vand.u32 4294901760, %v4253_v14  ;;  %v10174_v37 = vsub.f32 %v10021_v2, %v11379_v25  ;;  %v4148_v52 = vsub.f32 %v10014_v55, %v10984_v7  ;;  %v4155_v12 = vsub.f32 %v10028_v32, %v10983_v40 }
 0x3f7   : > { %4083 = vmatmul.mubr.f32.vlgmr.msra.gmra.mrb[12].mxu1 %v11376_v23  ;;  %v10169_v23 = vsub.f32 %v9997_v48, %v11378_v19  ;;  %v11380_v48 = vand.u32 4294901760, %v10054_v41  ;;  %v4135_v14 = vand.u32 4294901760, %v4134_v24  ;;  %v4261_v38 = vand.u32 4294901760, %v4260_v31 }
 0x3f8   : > { %7219 = vmatpush3.bf16.msra.mxu1 %v7218_v18  ;;  %4313 = vmatprep.mubr.f32.mxu1 %v9803_v45  ;;  %v7224_v18 = vpack.c.bf16 %v4240_v53, %v4233_v43  ;;  %v4268_v25 = vand.u32 4294901760, %v4267_v27  ;;  %v11382_v19 = vand.u32 4294901760, %v10026_v8  ;;  %v10985_v7 = vand.u32 4294901760, %v10098_v20 }
 0x3f9   : > { %7221 = vmatprep.subr.bf16.mxu1 %v7220_v6  ;;  %v4274_v53 = vsub.f32 %v10054_v41, %v11380_v48  ;;  %v11381_v6 = vand.u32 4294901760, %v10060_v17  ;;  %v7228_v48 = vpack.c.bf16 %v4254_v35, %v4247_v60  ;;  %v11383_v2 = vand.u32 4294901760, %v10035_v28 }
 0x3fa   : > { %v10193_v40 = vsub.f32 %v10026_v8, %v11382_v19  ;;  %v4149_v56 = vand.u32 4294901760, %v4148_v52  ;;  %v4156_v31 = vand.u32 4294901760, %v4155_v12  ;;  %v11385_v35 = vand.u32 4294901760, %v10084_v22 }
 0x3fb   : > { %v4281_v43 = vsub.f32 %v10060_v17, %v11381_v6  ;;  %v10200_v34 = vsub.f32 %v10035_v28, %v11383_v2  ;;  %v4275_v8 = vand.u32 4294901760, %v4274_v53  ;;  %v11386_v60 = vand.u32 4294901760, %v10096_v3 }
 0x3fc   : > { %7223 = vmatpush3.bf16.msra.mxu1 %v7222_v58  ;;  %v11384_v58 = vand.u32 4294901760, %v10040_v57  ;;  %v7230_v28 = vpack.c.bf16 %v4142_v10, %v4135_v14  ;;  %v7232_v2 = vpack.c.bf16 %v4268_v25, %v4261_v38  ;;  %v10988_v6 = vand.u32 4294901760, %v10128_v15 }
 0x3fd   : > { %7225 = vmatprep.subr.bf16.mxu1 %v7224_v18  ;;  %v4282_v27 = vand.u32 4294901760, %v4281_v43  ;;  %v4162_v18 = vsub.f32 %v10084_v22, %v11385_v35  ;;  %v4169_v19 = vsub.f32 %v10096_v3, %v11386_v60  ;;  %v4288_v12 = vsub.f32 %v10098_v20, %v10985_v7 }
 0x3fe   : > { %v10205_v24 = vsub.f32 %v10040_v57, %v11384_v58  ;;  %v10987_v57 = vand.u32 4294901760, %v10169_v23  ;;  %v11387_v52 = vand.u32 4294901760, %v10125_v39  ;;  %v10986_v43 = vand.u32 4294901760, %v10174_v37 }
 0x3ff   : > { %v4308_v58 = vand.u32 4294901760, %v10193_v40  ;;  %v7236_v14 = vpack.c.bf16 %v4282_v27, %v4275_v8  ;;  %v4163_v10 = vand.u32 4294901760, %v4162_v18  ;;  %v4170_v38 = vand.u32 4294901760, %v4169_v19 }
 0x400   : > { %7227 = vmatpush3.bf16.msra.mxu1 %v7226_v63  ;;  %v4295_v53 = vsub.f32 %v10125_v39, %v11387_v52  ;;  %v7234_v63 = vpack.c.bf16 %v4156_v31, %v4149_v56  ;;  %v4176_v25 = vsub.f32 %v10128_v15, %v10988_v6  ;;  %v10989_v35 = vand.u32 4294901760, %v10200_v34 }
 0x401   : > { %7229 = vmatprep.subr.bf16.mxu1 %v7228_v48  ;;  %v4183_v48 = vsub.f32 %v10169_v23, %v10987_v57  ;;  %v4196_v60 = vand.u32 4294901760, %v10205_v24  ;;  %v4289_v52 = vand.u32 4294901760, %v4288_v12  ;;  %v4302_v56 = vsub.f32 %v10174_v37, %v10986_v43 }
 0x402   : > { %v4296_v7 = vand.u32 4294901760, %v4295_v53  ;;  %v4309_v31 = vsub.f32 %v10193_v40, %v4308_v58  ;;  %v7238_v8 = vpack.c.bf16 %v4170_v38, %v4163_v10  ;;  %v4177_v27 = vand.u32 4294901760, %v4176_v25 }
 0x403   : > { %v4184_v18 = vand.u32 4294901760, %v4183_v48  ;;  %v4190_v19 = vsub.f32 %v10200_v34, %v10989_v35  ;;  %v4303_v12 = vand.u32 4294901760, %v4302_v56  ;;  %v7248_v35 = vpack.c.bf16 %v9926_v59, %v9923_v50 }
 0x404   : > { %7231 = vmatpush3.bf16.msra.mxu1 %v7230_v28  ;;  %v4197_v28 = vsub.f32 %v10205_v24, %v4196_v60  ;;  %v4310_v53 = vand.u32 4294901760, %v4309_v31  ;;  %v7262_v56 = vpack.c.bf16 %v10000_v9, %v9985_v21  ;;  %v7264_v31 = vpack.c.bf16 %v10012_v49, %v10007_v46 }
 0x405   : > { %7233 = vmatprep.subr.bf16.mxu1 %v7232_v2  ;;  %v7240_v2 = vpack.c.bf16 %v4296_v7, %v4289_v52  ;;  %v7242_v10 = vpack.c.bf16 %v4184_v18, %v4177_v27  ;;  %v7250_v7 = vpack.c.bf16 %v9938_v62, %v9928_v13  ;;  %v7258_v52 = vpack.c.bf16 %v9971_v11, %v9969_v5 }
 0x406   : > { %v4198_v38 = vand.u32 4294901760, %v4197_v28  ;;  %v7244_v25 = vpack.c.bf16 %v4310_v53, %v4303_v12  ;;  %v7268_v27 = vpack.c.bf16 %v10060_v17, %v10054_v41  ;;  %v7270_v18 = vpack.c.bf16 %v10096_v3, %v10084_v22 }
 0x407   : > { %v7274_v53 = vpack.c.bf16 %v10169_v23, %v10128_v15 }
 0x408   : > { %7235 = vmatpush3.bf16.msra.mxu1 %v7234_v63  ;;  %v4191_v63 = vand.u32 4294901760, %v4190_v19  ;;  %v7272_v19 = vpack.c.bf16 %v10125_v39, %v10098_v20 }
 0x409   : > { %7237 = vmatprep.subr.bf16.mxu1 %v7236_v14  ;;  %v7256_v14 = vpack.c.bf16 %v9967_v44, %v9961_v30 }
 0x40a   : > { %v5716_v43 = vpop.f32.mrb[0].mxu1  ;;  %v7246_v48 = vpack.c.bf16 %v4198_v38, %v4191_v63  ;;  %v7278_v38 = vpack.c.bf16 %v10205_v24, %v10200_v34  ;;  %v4859_v24 = vld [vmem:[%s10726_s7 + $0x18] sm:$0xff] }
 0x40b   : > { %v5717_v57 = vpop.f32.mrb[1].mxu1 }
 0x40c   : > { %v5718_v6 = vadd.f32 %v5717_v57, %v5716_v43  ;;  %7239 = vmatpush3.bf16.msra.mxu1 %v7238_v8  ;;  %v7252_v57 = vpack.c.bf16 %v9942_v47, %v9940_v4  ;;  %v7254_v43 = vpack.c.bf16 %v9946_v61, %v9944_v42  ;;  %v7266_v8 = vpack.c.bf16 %v10028_v32, %v10014_v55 }
 0x40d   : > { %7241 = vmatprep.subr.bf16.mxu1 %v7240_v2 }
 0x410   : > { %7243 = vmatpush3.bf16.msra.mxu1 %v7242_v10  ;;  %v7276_v10 = vpack.c.bf16 %v10193_v40, %v10174_v37 }
 0x411   : > { %7245 = vmatprep.subr.bf16.mxu1 %v7244_v25  ;;  %v11388_v25 = vand.u32 4294901760, %v9818_v26 }
 0x414   : > { %7247 = vmatpush3.bf16.msra.mxu1 %v7246_v48  ;;  %v11389_v48 = vld [vmem:[#allocation15_spill] sm:$0xff] }
 0x415   : > { %7249 = vmatprep.subr.bf16.mxu1 %v7248_v35  ;;  %v7260_v35 = vpack.c.bf16 %v9983_v54, %v9973_v33 }
 0x417   : > { %4315 = vmatmul.mubr.f32.vlgmr.msra.gmra.mrb[14].mxu1 %v9839_v36 }
 0x418   : > { %7251 = vmatpush3.bf16.msra.mxu1 %v7250_v7  ;;  %4450 = vmatprep.mubr.f32.mxu1 %v9818_v26  ;;  %v11391_v7 = vld [vmem:[#allocation25_spill] sm:$0xff] }
 0x419   : > { %7253 = vmatprep.subr.bf16.mxu1 %v7252_v57  ;;  %v11392_v57 = vld [vmem:[#allocation6_spill] sm:$0xff] }
 0x41c   : > { %7255 = vmatpush3.bf16.msra.mxu1 %v7254_v43  ;;  %v11393_v43 = vld [vmem:[#allocation7_spill] sm:$0xff] }
 0x41d   : > { %7257 = vmatprep.subr.bf16.mxu1 %v7256_v14  ;;  %v11394_v14 = vld [vmem:[#allocation8_spill] sm:$0xff] }
 0x420   : > { %7259 = vmatpush3.bf16.msra.mxu1 %v7258_v52  ;;  %v11395_v52 = vld [vmem:[#allocation10_spill] sm:$0xff] }
 0x421   : > { %7261 = vmatprep.subr.bf16.mxu1 %v7260_v35  ;;  %v11396_v35 = vld [vmem:[#allocation29_spill] sm:$0xff] }
 0x424   : > { %7263 = vmatpush3.bf16.msra.mxu1 %v7262_v56 }
 0x425   : > { %7265 = vmatprep.subr.bf16.mxu1 %v7264_v31 }
 0x428   : > { %7267 = vmatpush3.bf16.msra.mxu1 %v7266_v8  ;;  %v11397_v8 = vld [vmem:[#allocation30_spill] sm:$0xff] }
 0x429   : > { %7269 = vmatprep.subr.bf16.mxu1 %v7268_v27  ;;  %v11398_v27 = vld [vmem:[#allocation32_spill] sm:$0xff] }
 0x42a   : > { %v5751_v28 = vpop.f32.mrb[2].mxu1 }
 0x42b   : > { %v5752_v2 = vpop.f32.mrb[3].mxu1 }
 0x42c   : > { %v5753_v12 = vadd.f32 %v5752_v2, %v5751_v28  ;;  %7271 = vmatpush3.bf16.msra.mxu1 %v7270_v18  ;;  %v11400_v28 = vld [vmem:[#allocation37_spill] sm:$0xff]  ;;  %v11401_v2 = vand.u32 4294901760, %v9923_v50  ;;  %v11408_v50 = vand.u32 4294901760, %v9944_v42  ;;  %v11415_v42 = vand.u32 4294901760, %v9983_v54 }
 0x42d   : > { %7273 = vmatprep.subr.bf16.mxu1 %v7272_v19  ;;  %v11399_v19 = vld [vmem:[#allocation36_spill] sm:$0xff]  ;;  %v11422_v54 = vand.u32 4294901760, %v10054_v41  ;;  %v11428_v41 = vand.u32 4294901760, %v10128_v15  ;;  %v4857_v15 = vld [vmem:[%s10726_s7 + $0x8] sm:$0xff] }
 0x42e   : > { %v3455_v63 = vadd.f32 %v5753_v12, %v5718_v6  ;;  %v11390_v6 = vld [vmem:[#allocation19_spill] sm:$0xff]  ;;  %v11402_v12 = vand.u32 4294901760, %v9926_v59  ;;  %v11409_v59 = vand.u32 4294901760, %v9946_v61  ;;  %v11416_v61 = vand.u32 4294901760, %v9985_v21 }
 0x42f   : > { %v11423_v21 = vand.u32 4294901760, %v10060_v17  ;;  %v11429_v17 = vand.u32 4294901760, %v10169_v23  ;;  %v4883_v23 = vand.u32 4294901760, %v4857_v15 }
 0x430   : > { %7275 = vmatpush3.bf16.msra.mxu1 %v7274_v53  ;;  %v7312_v53 = vpack.c.bf16 %v11402_v12, %v11401_v2  ;;  %v11411_v2 = vand.u32 4294901760, %v9967_v44  ;;  %v11418_v44 = vand.u32 4294901760, %v10007_v46  ;;  %v11425_v46 = vand.u32 4294901760, %v10096_v3 }
 0x431   : > { %7277 = vmatprep.subr.bf16.mxu1 %v7276_v10  ;;  %v11403_v10 = vand.u32 4294901760, %v9928_v13  ;;  %v7318_v13 = vpack.c.bf16 %v11409_v59, %v11408_v50 }
 0x434   : > { %7279 = vmatpush3.bf16.msra.mxu1 %v7278_v38  ;;  %v11404_v38 = vand.u32 4294901760, %v9938_v62  ;;  %v11410_v62 = vand.u32 4294901760, %v9961_v30  ;;  %v11417_v30 = vand.u32 4294901760, %v10000_v9  ;;  %v11424_v9 = vand.u32 4294901760, %v10084_v22 }
 0x435   : > { %7281 = vmatprep.subr.bf16.mxu1 %v9844_v51  ;;  %v11430_v22 = vand.u32 4294901760, %v10174_v37 }
 0x437   : > { %4453 = vmatmul.mubr.f32.vlgmr.msra.gmra.mrb[16].mxu1 %v9864_v16  ;;  %v7340_v3 = vpack.c.bf16 %v4308_v58, %v11430_v22 }
 0x438   : > { %7283 = vmatpush3.bf16.msra.mxu1 %v9867_v0  ;;  %4557 = vmatprep.mubr.f32.mxu1 %v11388_v25  ;;  %v7314_v25 = vpack.c.bf16 %v11404_v38, %v11403_v10  ;;  %v7326_v38 = vpack.c.bf16 %v11417_v30, %v11416_v61 }
 0x439   : > { %7285 = vmatprep.subr.bf16.mxu1 %v9870_v1 }
 0x43c   : > { %7287 = vmatpush3.bf16.msra.mxu1 %v11389_v48 }
 0x43d   : > { %7289 = vmatprep.subr.bf16.mxu1 %v11390_v6 }
 0x440   : > { %7291 = vmatpush3.bf16.msra.mxu1 %v11391_v7 }
 0x441   : > { %7293 = vmatprep.subr.bf16.mxu1 %v11392_v57 }
 0x444   : > { %7295 = vmatpush3.bf16.msra.mxu1 %v11393_v43 }
 0x445   : > { %7297 = vmatprep.subr.bf16.mxu1 %v11394_v14 }
 0x448   : > { %7299 = vmatpush3.bf16.msra.mxu1 %v11395_v52 }
 0x449   : > { %7301 = vmatprep.subr.bf16.mxu1 %v11396_v35 }
 0x44a   : > { %v5786_v26 = vpop.f32.mrb[4].mxu1 }
 0x44b   : > { %v5787_v56 = vpop.f32.mrb[5].mxu1 }
 0x44c   : > { %v5788_v31 = vadd.f32 %v5787_v56, %v5786_v26  ;;  %7303 = vmatpush3.bf16.msra.mxu1 %v11397_v8  ;;  %v11405_v26 = vand.u32 4294901760, %v9940_v4  ;;  %v7320_v4 = vpack.c.bf16 %v11411_v2, %v11410_v62 }
 0x44d   : > { %7305 = vmatprep.subr.bf16.mxu1 %v11398_v27 }
 0x44e   : > { %v3593_v18 = vadd.f32 %v5788_v31, %v3455_v63  ;;  %v11406_v63 = vand.u32 4294901760, %v9942_v47  ;;  %v11407_v31 = vand.u32 4294901760, %v9864_v16  ;;  %v11412_v47 = vand.u32 4294901760, %v9969_v5 }
 0x44f   : > { %v11413_v16 = vand.u32 4294901760, %v9971_v11  ;;  %v11419_v5 = vand.u32 4294901760, %v10012_v49  ;;  %v11420_v11 = vand.u32 4294901760, %v10014_v55  ;;  %v11426_v49 = vand.u32 4294901760, %v10098_v20 }
 0x450   : > { %7307 = vmatpush3.bf16.msra.mxu1 %v11399_v19  ;;  %v7316_v56 = vpack.c.bf16 %v11406_v63, %v11405_v26  ;;  %v7332_v63 = vpack.c.bf16 %v11423_v21, %v11422_v54  ;;  %v11427_v55 = vand.u32 4294901760, %v10125_v39  ;;  %v11431_v20 = vand.u32 4294901760, %v10200_v34  ;;  %v4858_v34 = vld [vmem:[%s10726_s7 + $0x10] sm:$0xff] }
 0x451   : > { %7309 = vmatprep.subr.bf16.mxu1 %v11400_v28  ;;  %v7322_v12 = vpack.c.bf16 %v11413_v16, %v11412_v47  ;;  %v4866_v16 = vld [vmem:[%s10726_s7 + $0x50] sm:$0xff] }
 0x452   : > { %v7342_v39 = vpack.c.bf16 %v4196_v60, %v11431_v20  ;;  %v4886_v60 = vand.u32 4294901760, %v4858_v34  ;;  %v4910_v61 = vand.u32 4294901760, %v4866_v16 }
 0x454   : > { %7311 = vmatpush3.bf16.msra.mxu1 %v10113_v29 }
 0x455   : > { %7313 = vmatprep.subr.bf16.mxu1 %v7312_v53  ;;  %v11414_v53 = vand.u32 4294901760, %v9973_v33  ;;  %v11421_v33 = vand.u32 4294901760, %v10028_v32 }
 0x457   : > { %4561 = vmatmul.mubr.f32.vlgmr.msra.gmra.mrb[18].mxu1 %v11407_v31  ;;  %v7324_v10 = vpack.c.bf16 %v11415_v42, %v11414_v53  ;;  %v7330_v26 = vpack.c.bf16 %v11421_v33, %v11420_v11  ;;  %v7336_v31 = vpack.c.bf16 %v11427_v55, %v11426_v49  ;;  %v10439_v42 = vsub.f32 %v4857_v15, %v4883_v23 }
 0x458   : > { %7315 = vmatpush3.bf16.msra.mxu1 %v7314_v25  ;;  %4727 = vmatprep.mubr.f32.mxu1 %v9803_v45  ;;  %v7328_v25 = vpack.c.bf16 %v11419_v5, %v11418_v44  ;;  %v10453_v44 = vld [vmem:[%s10726_s7 + $0x68] sm:$0xff]  ;;  %v10455_v5 = vsub.f32 %v4858_v34, %v4886_v60 }
 0x459   : > { %7317 = vmatprep.subr.bf16.mxu1 %v7316_v56  ;;  %v7334_v56 = vpack.c.bf16 %v11425_v46, %v11424_v9  ;;  %v4980_v33 = vand.u32 4294901760, %v10439_v42  ;;  %v4919_v21 = vand.u32 4294901760, %v10453_v44  ;;  %v10475_v9 = vld [vmem:[%s10726_s7 + $0x78] sm:$0xff] }
 0x45a   : > { %v4925_v22 = vand.u32 4294901760, %v10475_v9 }
 0x45c   : > { %7319 = vmatpush3.bf16.msra.mxu1 %v7318_v13  ;;  %v7338_v13 = vpack.c.bf16 %v11429_v17, %v11428_v41 }
 0x45d   : > { %7321 = vmatprep.subr.bf16.mxu1 %v7320_v4 }
 0x460   : > { %7323 = vmatpush3.bf16.msra.mxu1 %v7322_v12  ;;  %v4867_v12 = vld [vmem:[%s10726_s7 + $0x58] sm:$0xff] }
 0x461   : > { %7325 = vmatprep.subr.bf16.mxu1 %v7324_v10  ;;  %v4913_v30 = vand.u32 4294901760, %v4867_v12 }
 0x464   : > { %7327 = vmatpush3.bf16.msra.mxu1 %v7326_v38  ;;  %v10448_v38 = vld [vmem:[%s10726_s7 + $0x60] sm:$0xff] }
 0x465   : > { %7329 = vmatprep.subr.bf16.mxu1 %v7328_v25  ;;  %v4916_v54 = vand.u32 4294901760, %v10448_v38 }
 0x467   : > { %v10490_v17 = vpack.c.bf16 %v4919_v21, %v4916_v54 }
 0x468   : > { %7331 = vmatpush3.bf16.msra.mxu1 %v7330_v26  ;;  %v10462_v26 = vpack.c.bf16 %v4913_v30, %v4910_v61 }
 0x469   : > { %7333 = vmatprep.subr.bf16.mxu1 %v7332_v63  ;;  %v10470_v63 = vld [vmem:[%s10726_s7 + $0x70] sm:$0xff] }
 0x46a   : > { %v5821_v32 = vpop.f32.mrb[6].mxu1 }
 0x46b   : > { %v5822_v50 = vpop.f32.mrb[7].mxu1 }
 0x46c   : > { %v5823_v59 = vadd.f32 %v5822_v50, %v5821_v32  ;;  %7335 = vmatpush3.bf16.msra.mxu1 %v7334_v56  ;;  %v4981_v32 = vsub.f32 %v10439_v42, %v4980_v33  ;;  %v4987_v50 = vand.u32 4294901760, %v10455_v5 }
 0x46d   : > { %7337 = vmatprep.subr.bf16.mxu1 %v7336_v31 }
 0x46e   : > { %v3701_v62 = vadd.f32 %v5823_v59, %v3593_v18 }
 0x470   : > { %7339 = vmatpush3.bf16.msra.mxu1 %v7338_v13  ;;  %v4922_v13 = vand.u32 4294901760, %v10470_v63 }
 0x471   : > { %7341 = vmatprep.subr.bf16.mxu1 %v7340_v3 }
 0x474   : > { %7343 = vmatpush3.bf16.msra.mxu1 %v7342_v39  ;;  %v4982_v39 = vand.u32 4294901760, %v4981_v32 }
 0x475   : > { %7345 = vmatprep.subr.bf16.mxu1 %v9844_v51 }
 0x477   : > { %4729 = vmatmul.mubr.f32.vlgmr.msra.gmra.mrb[20].mxu1 %v9839_v36 }
 0x478   : > { %7347 = vmatpush3.bf16.msra.mxu1 %v9867_v0  ;;  %4831 = vmatprep.mubr.f32.mxu1 %v9803_v45 }
 0x479   : > { %7349 = vmatprep.subr.bf16.mxu1 %v9870_v1  ;;  %v4856_v1 = vld [vmem:[%s10726_s7] sm:$0xff] }
 0x47a   : > { %v4880_v40 = vand.u32 4294901760, %v4856_v1 }
 0x47c   : > { %7351 = vmatpush3.bf16.msra.mxu1 %v11389_v48  ;;  %v10395_v58 = vpack.c.bf16 %v4883_v23, %v4880_v40  ;;  %v4889_v48 = vand.u32 4294901760, %v4859_v24  ;;  %v10437_v53 = vsub.f32 %v4856_v1, %v4880_v40  ;;  %v10509_v1 = vpack.c.bf16 %v4925_v22, %v4922_v13 }
 0x47d   : > { %7353 = vmatprep.subr.bf16.mxu1 %v11390_v6  ;;  %v7574_v6 = vmov 0.0|0.0  }
 0x47e   : > { %v10457_v25 = vsub.f32 %v4859_v24, %v4889_v48  ;;  %v4973_v11 = vand.u32 4294901760, %v10437_v53 }
 0x480   : > { %7355 = vmatpush3.bf16.msra.mxu1 %v11391_v7  ;;  %v4860_v7 = vld [vmem:[%s10726_s7 + $0x20] sm:$0xff]  ;;  %v4974_v31 = vsub.f32 %v10437_v53, %v4973_v11  ;;  %v4994_v59 = vand.u32 4294901760, %v10457_v25 }
 0x481   : > { %7357 = vmatprep.subr.bf16.mxu1 %v11392_v57  ;;  %v4861_v57 = vld [vmem:[%s10726_s7 + $0x28] sm:$0xff] }
 0x482   : > { %v4975_v20 = vand.u32 4294901760, %v4974_v31  ;;  %v10556_v31 = vsub.f32 %v10453_v44, %v4919_v21  ;;  %v10569_v21 = vsub.f32 %v10475_v9, %v4925_v22 }
 0x484   : > { %7359 = vmatpush3.bf16.msra.mxu1 %v11393_v43  ;;  %v4892_v43 = vand.u32 4294901760, %v4860_v7  ;;  %v7401_v34 = vpack.c.bf16 %v4982_v39, %v4975_v20 }
 0x485   : > { %7361 = vmatprep.subr.bf16.mxu1 %v11394_v14  ;;  %v4895_v14 = vand.u32 4294901760, %v4861_v57 }
 0x486   : > { %v10477_v46 = vsub.f32 %v4860_v7, %v4892_v43 }
 0x487   : > { %v10479_v56 = vsub.f32 %v4861_v57, %v4895_v14 }
 0x488   : > { %7363 = vmatpush3.bf16.msra.mxu1 %v11395_v52  ;;  %v11432_v52 = vmov 0.0   ;;  %v5001_v15 = vand.u32 4294901760, %v10477_v46 }
 0x489   : > { %7365 = vmatprep.subr.bf16.mxu1 %v11396_v35  ;;  %v4862_v35 = vld [vmem:[%s10726_s7 + $0x30] sm:$0xff] }
 0x48a   : > { %v5856_v51 = vpop.f32.mrb[8].mxu1 }
 0x48b   : > { %v5857_v45 = vpop.f32.mrb[9].mxu1 }
 0x48c   : > { %v5858_v0 = vadd.f32 %v5857_v45, %v5856_v51  ;;  %7367 = vmatpush3.bf16.msra.mxu1 %v11397_v8  ;;  %v10418_v8 = vpack.c.bf16 %v4895_v14, %v4892_v43  ;;  %v4988_v51 = vsub.f32 %v10455_v5, %v4987_v50  ;;  %v4995_v45 = vsub.f32 %v10457_v25, %v4994_v59 }
 0x48d   : > { %7369 = vmatprep.subr.bf16.mxu1 %v11398_v27  ;;  %v4898_v27 = vand.u32 4294901760, %v4862_v35  ;;  %v10528_v14 = vsub.f32 %v4866_v16, %v4910_v61 }
 0x48e   : > { %v10384_v37 = vadd.f32 %v5858_v0, %v3701_v62  ;;  %v4989_v24 = vand.u32 4294901760, %v4988_v51 }
 0x48f   : > { %v10495_v3 = vsub.f32 %v4862_v35, %v4898_v27  ;;  %v10530_v35 = vsub.f32 %v4867_v12, %v4913_v30  ;;  %v10545_v12 = vsub.f32 %v10448_v38, %v4916_v54  ;;  %v10560_v54 = vsub.f32 %v10470_v63, %v4922_v13 }
 0x490   : > { %7371 = vmatpush3.bf16.msra.mxu1 %v11399_v19  ;;  %v4864_v19 = vld [vmem:[%s10726_s7 + $0x40] sm:$0xff]  ;;  %v5064_v63 = vand.u32 4294901760, %v10556_v31 }
 0x491   : > { %7373 = vmatprep.subr.bf16.mxu1 %v11400_v28  ;;  %v4865_v28 = vld [vmem:[%s10726_s7 + $0x48] sm:$0xff]  ;;  %v4904_v4 = vand.u32 4294901760, %v4864_v19  ;;  %v5015_v57 = vand.u32 4294901760, %v10495_v3  ;;  %v5071_v22 = vand.u32 4294901760, %v10560_v54 }
 0x492   : > { %v4907_v47 = vand.u32 4294901760, %v4865_v28  ;;  %v5065_v9 = vsub.f32 %v10556_v31, %v5064_v63 }
 0x493   : > { %v10514_v40 = vsub.f32 %v4864_v19, %v4904_v4 }
 0x494   : > { %7375 = vmatpush3.bf16.msra.mxu1 %v10113_v29  ;;  %v10406_v29 = vpack.c.bf16 %v4889_v48, %v4886_v60  ;;  %v10442_v10 = vpack.c.bf16 %v4907_v47, %v4904_v4  ;;  %v10516_v23 = vsub.f32 %v4865_v28, %v4907_v47  ;;  %v4996_v60 = vand.u32 4294901760, %v4995_v45 }
 0x495   : > { %7376 = vmatprep.subr.bf16.mxu1 %v7574_v6  ;;  %v5002_v48 = vsub.f32 %v10477_v46, %v5001_v15  ;;  %v5016_v47 = vsub.f32 %v10495_v3, %v5015_v57 }
 0x496   : > { %v5036_v19 = vand.u32 4294901760, %v10516_v23 }
 0x497   : > { %4833 = vmatmul.mubr.f32.vlgmr.msra.gmra.mrb[22].mxu1 %v9839_v36  ;;  %v4863_v36 = vld [vmem:[%s10726_s7 + $0x38] sm:$0xff]  ;;  %v5003_v28 = vand.u32 4294901760, %v5002_v48 }
 0x498   : > { %7378 = vmatpush3.bf16.msra.mxu1 %v10395_v58  ;;  %6238 = vmatprep.mubr.msk.f32.mxu1 %vm7575_vm3, %v11432_v52  ;;  %v4901_v18 = vand.u32 4294901760, %v4863_v36  ;;  %v5037_v30 = vsub.f32 %v10516_v23, %v5036_v19 }
 0x499   : > { %7379 = vmatprep.subr.bf16.mxu1 %v7574_v6 }
 0x49a   : > { %v10428_v2 = vpack.c.bf16 %v4901_v18, %v4898_v27  ;;  %v10506_v0 = vsub.f32 %v4863_v36, %v4901_v18  ;;  %v11433_v36 = vld [vmem:[#allocation26_spill] sm:$0xff]  ;;  %v7404_v27 = vpack.c.bf16 %v4996_v60, %v4989_v24  ;;  %v5029_v18 = vand.u32 4294901760, %v10514_v40 }
 0x49b   : > { %v5038_v39 = vand.u32 4294901760, %v5037_v30 }
 0x49c   : > { %7381 = vmatpush3.bf16.msra.mxu1 %v10406_v29  ;;  %v5022_v43 = vand.u32 4294901760, %v10506_v0  ;;  %v5030_v61 = vsub.f32 %v10514_v40, %v5029_v18 }
 0x49d   : > { %7382 = vmatprep.subr.bf16.mxu1 %v7574_v6 }
 0x49e   : > { %v5023_v16 = vsub.f32 %v10506_v0, %v5022_v43  ;;  %v5031_v20 = vand.u32 4294901760, %v5030_v61 }
 0x4a0   : > { %7384 = vmatpush3.bf16.msra.mxu1 %v10418_v8  ;;  %v5024_v38 = vand.u32 4294901760, %v5023_v16  ;;  %v7413_v13 = vpack.c.bf16 %v5038_v39, %v5031_v20 }
 0x4a1   : > { %7385 = vmatprep.subr.bf16.mxu1 %v7574_v6 }
 0x4a4   : > { %7387 = vmatpush3.bf16.msra.mxu1 %v10428_v2 }
 0x4a5   : > { %7388 = vmatprep.subr.bf16.mxu1 %v7574_v6 }
 0x4a8   : > { %7390 = vmatpush3.bf16.msra.mxu1 %v10442_v10 }
 0x4a9   : > { %7391 = vmatprep.subr.bf16.mxu1 %v7574_v6 }
 0x4aa   : > { %v5891_v49 = vpop.f32.mrb[10].mxu1 }
 0x4ab   : > { %v5892_v55 = vpop.f32.mrb[11].mxu1 }
 0x4ac   : > { %v5893_v41 = vadd.f32 %v5892_v55, %v5891_v49  ;;  %7393 = vmatpush3.bf16.msra.mxu1 %v10462_v26  ;;  %v5043_v49 = vand.u32 4294901760, %v10528_v14  ;;  %v5050_v55 = vand.u32 4294901760, %v10530_v35 }
 0x4ad   : > { %7394 = vmatprep.subr.bf16.mxu1 %v7574_v6 }
 0x4ae   : > { %v10498_v62 = vadd.f32 %v5893_v41, %v10384_v37  ;;  %v5008_v37 = vand.u32 4294901760, %v10479_v56  ;;  %v5017_v41 = vand.u32 4294901760, %v5016_v47  ;;  %v5044_v51 = vsub.f32 %v10528_v14, %v5043_v49 }
 0x4af   : > { %v5051_v44 = vsub.f32 %v10530_v35, %v5050_v55 }
 0x4b0   : > { %7396 = vmatpush3.bf16.msra.mxu1 %v10490_v17  ;;  %v5009_v7 = vsub.f32 %v10479_v56, %v5008_v37  ;;  %v7410_v45 = vpack.c.bf16 %v5024_v38, %v5017_v41  ;;  %v5045_v24 = vand.u32 4294901760, %v5044_v51  ;;  %v7425_v51 = vpack.c.bf16 %v10439_v42, %v10437_v53 }
 0x4b1   : > { %7397 = vmatprep.subr.bf16.mxu1 %v7574_v6  ;;  %v5052_v60 = vand.u32 4294901760, %v5051_v44  ;;  %v11434_v44 = vld [vmem:[#allocation17_spill] sm:$0xff]  ;;  %v7479_v53 = vpack.c.bf16 %v5008_v37, %v5001_v15  ;;  %v7482_v42 = vpack.c.bf16 %v5022_v43, %v5015_v57 }
 0x4b2   : > { %v5010_v4 = vand.u32 4294901760, %v5009_v7  ;;  %v5078_v7 = vand.u32 4294901760, %v10569_v21 }
 0x4b4   : > { %7399 = vmatpush3.bf16.msra.mxu1 %v10509_v1  ;;  %v7407_v32 = vpack.c.bf16 %v5010_v4, %v5003_v28  ;;  %v5066_v28 = vand.u32 4294901760, %v5065_v9  ;;  %v5072_v4 = vsub.f32 %v10560_v54, %v5071_v22  ;;  %v5079_v47 = vsub.f32 %v10569_v21, %v5078_v7 }
 0x4b5   : > { %7400 = vmatprep.subr.bf16.mxu1 %v7574_v6 }
 0x4b6   : > { %v5073_v41 = vand.u32 4294901760, %v5072_v4  ;;  %v5080_v38 = vand.u32 4294901760, %v5079_v47  ;;  %v7446_v4 = vpack.c.bf16 %v10569_v21, %v10560_v54  ;;  %v11435_v47 = vld [vmem:[#allocation22_spill] sm:$0xff] }
 0x4b7   : > { %6239 = vmatmul.mubr.f32.vlgmr.msra.gmra.mrb[24].mxu1 %v11433_v36  ;;  %v7416_v36 = vpack.c.bf16 %v5052_v60, %v5045_v24  ;;  %v7437_v24 = vpack.c.bf16 %v10516_v23, %v10514_v40  ;;  %v7440_v60 = vpack.c.bf16 %v10530_v35, %v10528_v14  ;;  %v5680_v54 = vld [vmem:[%s10725_s6] ss:$0 sm:$0xff] }
 0x4b8   : > { %7402 = vmatpush3.bf16.msra.mxu1 %v7401_v34  ;;  %6273 = vmatprep.mubr.msk.f32.mxu1 %vm7575_vm3, %v11432_v52  ;;  %v5057_v34 = vand.u32 4294901760, %v10545_v12  ;;  %v7422_v39 = vpack.c.bf16 %v5080_v38, %v5073_v41  ;;  %v7473_v41 = vpack.c.bf16 %v4980_v33, %v4973_v11  ;;  %v11436_v38 = vld [vmem:[#allocation23_spill] sm:$0xff] }
 0x4b9   : > { %7403 = vmatprep.subr.bf16.mxu1 %v7574_v6 }
 0x4ba   : > { %v5058_v48 = vsub.f32 %v10545_v12, %v5057_v34 }
 0x4bc   : > { %7405 = vmatpush3.bf16.msra.mxu1 %v7404_v27  ;;  %v5059_v27 = vand.u32 4294901760, %v5058_v48 }
 0x4bd   : > { %7406 = vmatprep.subr.bf16.mxu1 %v7574_v6 }
 0x4c0   : > { %7408 = vmatpush3.bf16.msra.mxu1 %v7407_v32  ;;  %v7419_v32 = vpack.c.bf16 %v5066_v28, %v5059_v27  ;;  %v7443_v27 = vpack.c.bf16 %v10556_v31, %v10545_v12 }
 0x4c1   : > { %7409 = vmatprep.subr.bf16.mxu1 %v7574_v6 }
 0x4c4   : > { %7411 = vmatpush3.bf16.msra.mxu1 %v7410_v45  ;;  %v7428_v45 = vpack.c.bf16 %v10457_v25, %v10455_v5  ;;  %v7485_v5 = vpack.c.bf16 %v5036_v19, %v5029_v18  ;;  %v7488_v25 = vpack.c.bf16 %v5050_v55, %v5043_v49  ;;  %v5679_v55 = vld [vmem:[%s10724_s5] ss:$0 sm:$0xff] }
 0x4c5   : > { %7412 = vmatprep.subr.bf16.mxu1 %v7574_v6 }
 0x4c8   : > { %7414 = vmatpush3.bf16.msra.mxu1 %v7413_v13  ;;  %v7434_v13 = vpack.c.bf16 %v10506_v0, %v10495_v3 }
 0x4c9   : > { %7415 = vmatprep.subr.bf16.mxu1 %v7574_v6 }
 0x4ca   : > { %v5926_v16 = vpop.f32.mrb[12].mxu1 }
 0x4cb   : > { %v5927_v61 = vpop.f32.mrb[13].mxu1 }
 0x4cc   : > { %v5928_v30 = vadd.f32 %v5927_v61, %v5926_v16  ;;  %7417 = vmatpush3.bf16.msra.mxu1 %v7416_v36 }
 0x4cd   : > { %7418 = vmatprep.subr.bf16.mxu1 %v7574_v6 }
 0x4ce   : > { %v4085_v20 = vadd.f32 %v5928_v30, %v10498_v62  ;;  %v7431_v62 = vpack.c.bf16 %v10479_v56, %v10477_v46  ;;  %v7491_v56 = vpack.c.bf16 %v5064_v63, %v5057_v34 }
 0x4d0   : > { %7420 = vmatpush3.bf16.msra.mxu1 %v7419_v32 }
 0x4d1   : > { %7421 = vmatprep.subr.bf16.mxu1 %v7574_v6 }
 0x4d4   : > { %7423 = vmatpush3.bf16.msra.mxu1 %v7422_v39 }
 0x4d5   : > { %7424 = vmatprep.subr.bf16.mxu1 %v7574_v6 }
 0x4d7   : > { %6274 = vmatmul.mubr.f32.vlgmr.msra.gmra.mrb[26].mxu1 %v11434_v44 }
 0x4d8   : > { %7426 = vmatpush3.bf16.msra.mxu1 %v7425_v51  ;;  %6308 = vmatprep.mubr.msk.f32.mxu1 %vm7575_vm3, %v11432_v52 }
 0x4d9   : > { %7427 = vmatprep.subr.bf16.mxu1 %v7574_v6 }
 0x4dc   : > { %7429 = vmatpush3.bf16.msra.mxu1 %v7428_v45 }
 0x4dd   : > { %7430 = vmatprep.subr.bf16.mxu1 %v7574_v6 }
 0x4e0   : > { %7432 = vmatpush3.bf16.msra.mxu1 %v7431_v62 }
 0x4e1   : > { %7433 = vmatprep.subr.bf16.mxu1 %v7574_v6 }
 0x4e4   : > { %7435 = vmatpush3.bf16.msra.mxu1 %v7434_v13 }
 0x4e5   : > { %7436 = vmatprep.subr.bf16.mxu1 %v7574_v6 }
 0x4e8   : > { %7438 = vmatpush3.bf16.msra.mxu1 %v7437_v24 }
 0x4e9   : > { %7439 = vmatprep.subr.bf16.mxu1 %v7574_v6 }
 0x4ea   : > { %v5961_v48 = vpop.f32.mrb[14].mxu1 }
 0x4eb   : > { %v5962_v9 = vpop.f32.mrb[15].mxu1 }
 0x4ec   : > { %v5963_v36 = vadd.f32 %v5962_v9, %v5961_v48  ;;  %7441 = vmatpush3.bf16.msra.mxu1 %v7440_v60 }
 0x4ed   : > { %7442 = vmatprep.subr.bf16.mxu1 %v7574_v6 }
 0x4ee   : > { %v4317_v28 = vadd.f32 %v5963_v36, %v4085_v20  ;;  %v7476_v20 = vpack.c.bf16 %v4994_v59, %v4987_v50  ;;  %v7494_v59 = vpack.c.bf16 %v5078_v7, %v5071_v22 }
 0x4f0   : > { %7444 = vmatpush3.bf16.msra.mxu1 %v7443_v27 }
 0x4f1   : > { %7445 = vmatprep.subr.bf16.mxu1 %v7574_v6 }
 0x4f4   : > { %7447 = vmatpush3.bf16.msra.mxu1 %v7446_v4 }
 0x4f5   : > { %7448 = vmatprep.subr.bf16.mxu1 %v7574_v6 }
 0x4f7   : > { %6309 = vmatmul.mubr.f32.vlgmr.msra.gmra.mrb[28].mxu1 %v11435_v47 }
 0x4f8   : > { %7450 = vmatpush3.bf16.msra.mxu1 %v10395_v58  ;;  %6343 = vmatprep.mubr.msk.f32.mxu1 %vm7575_vm3, %v11432_v52 }
 0x4f9   : > { %7451 = vmatprep.subr.bf16.mxu1 %v7574_v6 }
 0x4fc   : > { %7453 = vmatpush3.bf16.msra.mxu1 %v10406_v29 }
 0x4fd   : > { %7454 = vmatprep.subr.bf16.mxu1 %v7574_v6 }
 0x500   : > { %7456 = vmatpush3.bf16.msra.mxu1 %v10418_v8 }
 0x501   : > { %7457 = vmatprep.subr.bf16.mxu1 %v7574_v6 }
 0x504   : > { %7459 = vmatpush3.bf16.msra.mxu1 %v10428_v2 }
 0x505   : > { %7460 = vmatprep.subr.bf16.mxu1 %v7574_v6 }
 0x508   : > { %7462 = vmatpush3.bf16.msra.mxu1 %v10442_v10 }
 0x509   : > { %7463 = vmatprep.subr.bf16.mxu1 %v7574_v6 }
 0x50a   : > { %v5996_v16 = vpop.f32.mrb[16].mxu1 }
 0x50b   : > { %v5997_v61 = vpop.f32.mrb[17].mxu1 }
 0x50c   : > { %v5998_v30 = vadd.f32 %v5997_v61, %v5996_v16  ;;  %7465 = vmatpush3.bf16.msra.mxu1 %v10462_v26 }
 0x50d   : > { %7466 = vmatprep.subr.bf16.mxu1 %v7574_v6 }
 0x50e   : > { %v4455_v32 = vadd.f32 %v5998_v30, %v4317_v28 }
 0x510   : > { %7468 = vmatpush3.bf16.msra.mxu1 %v10490_v17 }
 0x511   : > { %7469 = vmatprep.subr.bf16.mxu1 %v7574_v6 }
 0x514   : > { %7471 = vmatpush3.bf16.msra.mxu1 %v10509_v1 }
 0x515   : > { %7472 = vmatprep.subr.bf16.mxu1 %v7574_v6 }
 0x517   : > { %6344 = vmatmul.mubr.f32.vlgmr.msra.gmra.mrb[30].mxu1 %v11436_v38 }
 0x518   : > { %7474 = vmatpush3.bf16.msra.mxu1 %v7473_v41  ;;  %6378 = vmatprep.mubr.msk.f32.mxu1 %vm7575_vm3, %v11432_v52 }
 0x519   : > { %7475 = vmatprep.subr.bf16.mxu1 %v7574_v6 }
 0x51c   : > { %7477 = vmatpush3.bf16.msra.mxu1 %v7476_v20 }
 0x51d   : > { %7478 = vmatprep.subr.bf16.mxu1 %v7574_v6 }
 0x520   : > { %7480 = vmatpush3.bf16.msra.mxu1 %v7479_v53 }
 0x521   : > { %7481 = vmatprep.subr.bf16.mxu1 %v7574_v6 }
 0x524   : > { %7483 = vmatpush3.bf16.msra.mxu1 %v7482_v42 }
 0x525   : > { %7484 = vmatprep.subr.bf16.mxu1 %v7574_v6 }
 0x528   : > { %7486 = vmatpush3.bf16.msra.mxu1 %v7485_v5 }
 0x529   : > { %7487 = vmatprep.subr.bf16.mxu1 %v7574_v6 }
 0x52a   : > { %v6031_v11 = vpop.f32.mrb[18].mxu1 }
 0x52b   : > { %v6032_v33 = vpop.f32.mrb[19].mxu1 }
 0x52c   : > { %v6033_v46 = vadd.f32 %v6032_v33, %v6031_v11  ;;  %7489 = vmatpush3.bf16.msra.mxu1 %v7488_v25 }
 0x52d   : > { %7490 = vmatprep.subr.bf16.mxu1 %v7574_v6 }
 0x52e   : > { %v4563_v50 = vadd.f32 %v6033_v46, %v4455_v32 }
 0x530   : > { %7492 = vmatpush3.bf16.msra.mxu1 %v7491_v56 }
 0x531   : > { %7493 = vmatprep.subr.bf16.mxu1 %v7574_v6 }
 0x534   : > { %7495 = vmatpush3.bf16.msra.mxu1 %v7494_v59 }
 0x535   : > { %7496 = vmatprep.subr.bf16.mxu1 %v7574_v6 }
 0x537   : > { %6379 = vmatmul.mubr.f32.vlgmr.msra.gmra.mrb[32].mxu1 %v11434_v44 }
 0x538   : > { %7498 = vmatpush3.bf16.msra.mxu1 %v10395_v58  ;;  %6413 = vmatprep.mubr.msk.f32.mxu1 %vm7575_vm3, %v11432_v52 }
 0x539   : > { %7499 = vmatprep.subr.bf16.mxu1 %v7574_v6 }
 0x53c   : > { %7501 = vmatpush3.bf16.msra.mxu1 %v10406_v29 }
 0x53d   : > { %7502 = vmatprep.subr.bf16.mxu1 %v7574_v6 }
 0x540   : > { %7504 = vmatpush3.bf16.msra.mxu1 %v10418_v8 }
 0x541   : > { %7505 = vmatprep.subr.bf16.mxu1 %v7574_v6 }
 0x544   : > { %7507 = vmatpush3.bf16.msra.mxu1 %v10428_v2 }
 0x545   : > { %7508 = vmatprep.subr.bf16.mxu1 %v7574_v6 }
 0x548   : > { %7510 = vmatpush3.bf16.msra.mxu1 %v10442_v10 }
 0x549   : > { %7511 = vmatprep.subr.bf16.mxu1 %v7574_v6 }
 0x54a   : > { %v6066_v58 = vpop.f32.mrb[20].mxu1 }
 0x54b   : > { %v6067_v52 = vpop.f32.mrb[21].mxu1 }
 0x54c   : > { %v6068_v3 = vadd.f32 %v6067_v52, %v6066_v58  ;;  %7513 = vmatpush3.bf16.msra.mxu1 %v10462_v26  ;;  %v5681_v26 = vld [vmem:[%s10727_s8] ss:$0 sm:$0xff] }
 0x54d   : > { %7514 = vmatprep.subr.bf16.mxu1 %v7574_v6 }
 0x54e   : > { %v4731_v29 = vadd.f32 %v6068_v3, %v4563_v50 }
 0x550   : > { %7516 = vmatpush3.bf16.msra.mxu1 %v10490_v17 }
 0x551   : > { %7517 = vmatprep.subr.bf16.mxu1 %v7574_v6 }
 0x554   : > { %7519 = vmatpush3.bf16.msra.mxu1 %v10509_v1 }
 0x557   : > { %6414 = vmatmul.mubr.f32.vlgmr.msra.gmra.mrb[34].mxu1 %v11434_v44 }
 0x56a   : > { %v6101_v8 = vpop.f32.mrb[22].mxu1 }
 0x56b   : > { %v6102_v2 = vpop.f32.mrb[23].mxu1 }
 0x56c   : > { %v6103_v10 = vadd.f32 %v6102_v2, %v6101_v8 }
 0x56e   : > { %v4835_v0 = vadd.f32 %v6103_v10, %v4731_v29 }
 0x570   : > { %v4845_v31 = vadd.f32 %v5679_v55, %v4835_v0 }
 0x572   : > { %v4854_v21 = vmul.f32 %v5680_v54, %v4845_v31  ;;  %vm4846_vm4 = vcmp.ge.f32.partialorder %v4845_v31, 0.0 }
 0x574   : > { %v4855_v7 = vsel %vm4846_vm4, %v4845_v31, %v4854_v21 }
 0x58a   : > { %v4966_v15 = vpop.f32.mrb[24].mxu1 }
 0x58b   : > { %v6240_v37 = vpop.f32.mrb[25].mxu1  ;;  %v4967_v40 = vadd.f32 %v5681_v26, %v4966_v15 }
 0x5aa   : > { %v5117_v23 = vpop.f32.mrb[26].mxu1 }
 0x5ab   : > { %v5118_v57 = vadd.f32 %v5117_v23, %v4967_v40  ;;  %v6275_v17 = vpop.f32.mrb[27].mxu1 }
 0x5ca   : > { %v5221_v43 = vpop.f32.mrb[28].mxu1 }
 0x5cb   : > { %v5222_v6 = vadd.f32 %v5221_v43, %v5118_v57  ;;  %v6310_v1 = vpop.f32.mrb[29].mxu1 }
 0x5ea   : > { %v5310_v14 = vpop.f32.mrb[30].mxu1 }
 0x5eb   : > { %v5311_v35 = vadd.f32 %v5310_v14, %v5222_v6  ;;  %v6345_v18 = vpop.f32.mrb[31].mxu1 }
 0x60a   : > { %v5429_v19 = vpop.f32.mrb[32].mxu1 }
 0x60b   : > { %v5430_v12 = vadd.f32 %v5429_v19, %v5311_v35  ;;  %v6380_v49 = vpop.f32.mrb[33].mxu1 }
 0x62a   : > { %v5516_v34 = vpop.f32.mrb[34].mxu1 }
 0x62b   : > { %v5517_v63 = vadd.f32 %v5516_v34, %v5430_v12  ;;  %v6415_v22 = vpop.f32.mrb[35].mxu1 }
 0x62d   : > { %v5520_v39 = vadd.f32 %v5517_v63, %v4855_v7 }
 0x62f   : > { %5522 = vst.msk [vmem:[%s327_s19] sm:$0xff] %vm5521_vm5, %v5520_v39 }
 0x630 PF: > { %s19_s30 = sadd.s32 1, %s7571_s30  }
 0x631   : > { %p16_p4 = scmp.ge.s32.totalorder %s19_s30, 4  }
 0x633   :  { %18 = sbr.rel (!%p16_p4) target bundleno = 1 (0x1), region = 89 }

</bundles_post_ra>
